<compile_context>
chip_gen: v7x
topology: tpu7x:2x2x1
jax: 0.10.0
libtpu: 0.0.40
codegen_flags: <defaults>
</compile_context>

<pallas_src>
import math

import jax
import jax.numpy as jnp
from jax.experimental import pallas as pl
from jax.experimental.pallas import tpu as pltpu

# --- model dims (constructor args of SarcasmModel, shrunk for a small example) --
TEXT_DIM = 768      # hard-coded in module (LayerNorm(768))
IMAGE_DIM = 512     # hard-coded in module (LayerNorm(512))
ATTN_DIM = 256      # attention_dim (shrunk from the 1024 default)
FUSION_DIM = 128    # fusion_dim   (shrunk from the 256 default)
RANK = 64           # rank
HID = FUSION_DIM // 4
OUT_DIM = 4         # output_dim
BATCH = 8
LN_EPS = 1e-5
PACKED_IN = TEXT_DIM + IMAGE_DIM + TEXT_DIM   # 2048

# The slab packing below relies on these widths coinciding (all == 256):
assert ATTN_DIM == 2 * FUSION_DIM == 2 * RANK + FUSION_DIM
assert 2 * HID <= FUSION_DIM

# ------------------------- packed-slab row offsets ------------------------------
# slab256: weights whose lane (out) dim is 256
R256_IT_W1 = 0
R256_IMG_W1 = R256_IT_W1 + TEXT_DIM          # 768
R256_TXT_W1 = R256_IMG_W1 + IMAGE_DIM        # 1280
R256_ITL_W1 = R256_TXT_W1 + TEXT_DIM         # 2048
R256_TXTL_W1 = R256_ITL_W1 + FUSION_DIM      # 2176
R256_FUS1_W = R256_TXTL_W1 + FUSION_DIM      # 2304  (256,256) = [Wa/Wb | bn W1a/W1b]
R256_FUS2_W = R256_FUS1_W + 2 * FUSION_DIM   # 2560
R256_BN1_W2 = R256_FUS2_W + 2 * FUSION_DIM   # 2816  (128,256) block-diag, zero-pad rows
R256_BN2_W2 = R256_BN1_W2 + FUSION_DIM       # 2944
R256_ROWS = R256_BN2_W2 + FUSION_DIM         # 3072

# slab128: weights whose lane (out) dim is 128
R128_IT_W2 = 0
R128_IMG_W2 = R128_IT_W2 + ATTN_DIM          # 256
R128_TXT_W2 = R128_IMG_W2 + ATTN_DIM         # 512
R128_ITL_W2 = R128_TXT_W2 + ATTN_DIM         # 768
R128_TXTL_W2 = R128_ITL_W2 + ATTN_DIM        # 1024
R128_LRF1_WO = R128_TXTL_W2 + ATTN_DIM       # 1280  (128,128) = [Wo;Wo]/2
R128_LRF2_WO = R128_LRF1_WO + 2 * RANK       # 1408
R128_GATE_W = R128_LRF2_WO + 2 * RANK        # 1536
R128_ROWS = R128_GATE_W + FUSION_DIM         # 1664

# single f32 vector slab, (N_VROWS, 768), each row zero-padded on the right
V_LN_IT_G, V_LN_IT_B = 0, 1          # 768 wide
V_LN_IM_G, V_LN_IM_B = 2, 3          # 512 wide
V_LN_TX_G, V_LN_TX_B = 4, 5          # 768 wide
V_LN_ITL_G, V_LN_ITL_B = 6, 7        # 128 wide
V_LN_TXTL_G, V_LN_TXTL_B = 8, 9      # 128 wide
V_FUS1_B1, V_FUS1_BO, V_FUS1_B2 = 10, 11, 12     # 256 / 128 / 256 wide
V_FUS2_B1, V_FUS2_BO, V_FUS2_B2 = 13, 14, 15
V_GATE_B = 16                        # 128 wide
V_LN_CLS_G, V_LN_CLS_B = 17, 18
V_LN_TCLS_G, V_LN_TCLS_B = 19, 20
V_LN_ICLS_G, V_LN_ICLS_B = 21, 22
V_CLS_HID_B = 23                     # 384 wide
V_HEAD_B = 24                        # 12 wide
N_VROWS = 25


# ------------------------------ the Pallas kernel --------------------------------
def sarcasm_kernel(x_ref, w256_ref, w128_ref, wcls_ref, whead_ref, vec_ref, out_ref):
    f32, bf16 = jnp.float32, jnp.bfloat16
    c_gelu = math.sqrt(2.0 / math.pi)

    def mm(x, w):
        # bf16 x bf16 MXU matmul, f32 accumulate
        return jnp.dot(x.astype(bf16), w, preferred_element_type=f32)

    def gelu(x):
        # tanh-approx GELU (EUP tanh path instead of a long erf VPU polynomial).
        # TODO(synk): PyTorch nn.GELU() default is the exact erf form; swap back to
        # lax.erf if bit-level parity with the reference is required.
        return 0.5 * x * (1.0 + jnp.tanh(c_gelu * (x + 0.044715 * (x * x * x))))

    def ln(x, g, b):
        mu = jnp.mean(x, axis=-1, keepdims=True)
        var = jnp.mean(jnp.square(x - mu), axis=-1, keepdims=True)
        return (x - mu) * jax.lax.rsqrt(var + LN_EPS) * g + b

    def vrow(row, width):
        return vec_ref[row:row + 1, :width]

    # LayerNorm -> Linear(no bias) -> GELU -> Linear(no bias) -> GELU -> Dropout(id)
    def proj(x, g_row, b_row, in_dim, w1_row, w2_row):
        xn = ln(x, vrow(g_row, in_dim), vrow(b_row, in_dim))
        h = gelu(mm(xn, w256_ref[w1_row:w1_row + in_dim, :]))
        return gelu(mm(h, w128_ref[w2_row:w2_row + ATTN_DIM, :]))

    # One fusion stage = LowRankFusion(x1, x2), bottleneck[0](x1), bottleneck[1](x2),
    # with the low-rank and bottleneck first-layer matmuls fused into a single
    # block-diagonal (2F, 2R+F) matmul over the shared concatenated LHS.
    # TODO(synk): LowRankFusion source not provided; assumed standard low-rank
    # bilinear fusion (x1@Wa+ba)*(x2@Wb+bb)@Wo+bo with inference-mode dropout = id.
    def fusion_stage(x1, x2, wf_row, b1_row, wo_row, bo_row, w2_row, b2_row):
        xc = jnp.concatenate([x1, x2], axis=-1)                 # (B, 2F)
        wf = w256_ref[wf_row:wf_row + 2 * FUSION_DIM, :]        # (2F, 2R+F)
        h = mm(xc, wf) + vrow(b1_row, 2 * RANK + FUSION_DIM)    # (B, 2R+F)
        h_lr = h[:, :2 * RANK]                                  # [x1@Wa+ba | x2@Wb+bb]
        h_bn = gelu(h[:, 2 * RANK:])                            # bottleneck hidden; padded lanes stay 0
        # low-rank bilinear product kept lane-dense via an XLU lane rotation:
        # both halves of `prod` hold (x1@Wa+ba)*(x2@Wb+bb); [Wo;Wo]/2 folds them back.
        prod = h_lr * pltpu.roll(h_lr, shift=RANK, axis=1)
        wo = w128_ref[wo_row:wo_row + 2 * RANK, :]              # (2R,128) = [Wo;Wo]/2
        fused = mm(prod, wo) + vrow(bo_row, FUSION_DIM)
        # bottleneck second layers: block-diag (F,2F), zero rows under the padding
        w2 = w256_ref[w2_row:w2_row + FUSION_DIM, :]
        o = gelu(mm(h_bn, w2) + vrow(b2_row, 2 * FUSION_DIM))
        return fused, o[:, :FUSION_DIM], o[:, FUSION_DIM:]

    # ---- encoder-pooled inputs (split from the packed (B,2048) activation slab) --
    imgtxt_cls = x_ref[:, :TEXT_DIM]
    image_feats = x_ref[:, TEXT_DIM:TEXT_DIM + IMAGE_DIM]
    text_cls = x_ref[:, TEXT_DIM + IMAGE_DIM:]

    # --------------------------------- forward ------------------------------------
    image_text = proj(imgtxt_cls, V_LN_IT_G, V_LN_IT_B, TEXT_DIM,
                      R256_IT_W1, R128_IT_W2)
    image_emb = proj(image_feats, V_LN_IM_G, V_LN_IM_B, IMAGE_DIM,
                     R256_IMG_W1, R128_IMG_W2)

    fused, it_b, im_b = fusion_stage(image_text, image_emb, R256_FUS1_W, V_FUS1_B1,
                                     R128_LRF1_WO, V_FUS1_BO, R256_BN1_W2, V_FUS1_B2)
    fused_res = fused + (it_b + im_b)

    text_emb = proj(text_cls, V_LN_TX_G, V_LN_TX_B, TEXT_DIM,
                    R256_TXT_W1, R128_TXT_W2)

    fused_out = proj(fused_res, V_LN_ITL_G, V_LN_ITL_B, FUSION_DIM,
                     R256_ITL_W1, R128_ITL_W2) + fused_res
    text_cap = proj(text_emb, V_LN_TXTL_G, V_LN_TXTL_B, FUSION_DIM,
                    R256_TXTL_W1, R128_TXTL_W2) + text_emb

    cross, fo_b, tc_b = fusion_stage(fused_out, text_cap, R256_FUS2_W, V_FUS2_B1,
                                     R128_LRF2_WO, V_FUS2_BO, R256_BN2_W2, V_FUS2_B2)
    cross_res = cross + (fo_b + tc_b)

    # TODO(synk): GatingModule source not provided; assumed sigmoid(Linear(x)) * x.
    gate = jax.nn.sigmoid(
        mm(cross_res, w128_ref[R128_GATE_W:R128_GATE_W + FUSION_DIM, :])
        + vrow(V_GATE_B, FUSION_DIM))
    pooled = gate * cross_res                                   # gating_dropout = identity

    # ---- three heads: LN x3 -> one block-diag (3F,3F) matmul -> GELU -> (3F,12) ---
    # Spec wiring: classifier(pooled), text_classifier(tc_b), image_classifier(fo_b)
    # (the PyTorch forward re-binds text_caption_out / fused_out to the bottleneck
    #  outputs before the aux heads).
    n_cls = ln(pooled, vrow(V_LN_CLS_G, FUSION_DIM), vrow(V_LN_CLS_B, FUSION_DIM))
    n_tcls = ln(tc_b, vrow(V_LN_TCLS_G, FUSION_DIM), vrow(V_LN_TCLS_B, FUSION_DIM))
    n_icls = ln(fo_b, vrow(V_LN_ICLS_G, FUSION_DIM), vrow(V_LN_ICLS_B, FUSION_DIM))
    hc = jnp.concatenate([n_cls, n_tcls, n_icls], axis=-1)      # (B, 3F)
    h = gelu(mm(hc, wcls_ref[...]) + vrow(V_CLS_HID_B, 3 * FUSION_DIM))
    out = mm(h, whead_ref[...]) + vrow(V_HEAD_B, 3 * OUT_DIM)   # (B, 12)
    out_ref[...] = out


# ------------------------------ parameter packing --------------------------------
def make_packed_params(key):
    keys = iter(jax.random.split(key, 64))

    def xavier(fan_in, fan_out):
        # matches nn.init.xavier_uniform_ on a torch (out,in) weight; stored (in,out)
        a = math.sqrt(6.0 / (fan_in + fan_out))
        return jax.random.uniform(next(keys), (fan_in, fan_out), jnp.float32,
                                  minval=-a, maxval=a)

    zeros = lambda *s: jnp.zeros(s, jnp.float32)
    ones = lambda *s: jnp.ones(s, jnp.float32)

    # projection blocks (Linear layers have no bias)
    it_w1, it_w2 = xavier(TEXT_DIM, ATTN_DIM), xavier(ATTN_DIM, FUSION_DIM)
    img_w1, img_w2 = xavier(IMAGE_DIM, ATTN_DIM), xavier(ATTN_DIM, FUSION_DIM)
    txt_w1, txt_w2 = xavier(TEXT_DIM, ATTN_DIM), xavier(ATTN_DIM, FUSION_DIM)
    itl_w1, itl_w2 = xavier(FUSION_DIM, ATTN_DIM), xavier(ATTN_DIM, FUSION_DIM)
    txtl_w1, txtl_w2 = xavier(FUSION_DIM, ATTN_DIM), xavier(ATTN_DIM, FUSION_DIM)

    def fusion_stage_params():
        # LowRankFusion (assumed): (x1@Wa+ba)*(x2@Wb+bb)@Wo+bo ; biases init to 0
        wa, wb = xavier(FUSION_DIM, RANK), xavier(FUSION_DIM, RANK)
        wo = xavier(RANK, FUSION_DIM)
        ba, bb, bo = zeros(RANK), zeros(RANK), zeros(FUSION_DIM)
        # bottleneck pair: Linear(F,H)+GELU+Linear(H,F)+GELU (biases init to 0)
        w1a, w2a = xavier(FUSION_DIM, HID), xavier(HID, FUSION_DIM)
        w1b, w2b = xavier(FUSION_DIM, HID), xavier(HID, FUSION_DIM)
        b1a, b1b = zeros(HID), zeros(HID)
        b2a, b2b = zeros(FUSION_DIM), zeros(FUSION_DIM)

        # fused first matmul RHS (2F, 2R+F): [block-diag(Wa,Wb) | block-diag(W1a,W1b) pad]
        wf = zeros(2 * FUSION_DIM, 2 * RANK + FUSION_DIM)
        wf = wf.at[:FUSION_DIM, :RANK].set(wa)
        wf = wf.at[FUSION_DIM:, RANK:2 * RANK].set(wb)
        wf = wf.at[:FUSION_DIM, 2 * RANK:2 * RANK + HID].set(w1a)
        wf = wf.at[FUSION_DIM:, 2 * RANK + HID:2 * RANK + 2 * HID].set(w1b)
        b1 = zeros(2 * RANK + FUSION_DIM)
        b1 = b1.at[:RANK].set(ba).at[RANK:2 * RANK].set(bb)
        b1 = b1.at[2 * RANK:2 * RANK + HID].set(b1a)
        b1 = b1.at[2 * RANK + HID:2 * RANK + 2 * HID].set(b1b)

        wo_ext = jnp.concatenate([wo, wo], axis=0) * 0.5        # [Wo;Wo]/2 for roll trick

        w2 = zeros(FUSION_DIM, 2 * FUSION_DIM)                  # zero rows under padding
        w2 = w2.at[:HID, :FUSION_DIM].set(w2a).at[HID:2 * HID, FUSION_DIM:].set(w2b)
        b2 = jnp.concatenate([b2a, b2b])
        return wf, b1, wo_ext, bo, w2, b2

    fus1_w, fus1_b1, lrf1_wo, fus1_bo, bn1_w2, fus1_b2 = fusion_stage_params()
    fus2_w, fus2_b1, lrf2_wo, fus2_bo, bn2_w2, fus2_b2 = fusion_stage_params()

    gate_w, gate_b = xavier(FUSION_DIM, FUSION_DIM), zeros(FUSION_DIM)

    # three classifier heads: LN -> Linear(F,F)+b -> GELU -> Linear(F,OUT)+b
    cls_w1, cls_w2 = xavier(FUSION_DIM, FUSION_DIM), xavier(FUSION_DIM, OUT_DIM)
    tcls_w1, tcls_w2 = xavier(FUSION_DIM, FUSION_DIM), xavier(FUSION_DIM, OUT_DIM)
    icls_w1, icls_w2 = xavier(FUSION_DIM, FUSION_DIM), xavier(FUSION_DIM, OUT_DIM)
    wcls = zeros(3 * FUSION_DIM, 3 * FUSION_DIM)
    wcls = (wcls.at[:FUSION_DIM, :FUSION_DIM].set(cls_w1)
                .at[FUSION_DIM:2 * FUSION_DIM, FUSION_DIM:2 * FUSION_DIM].set(tcls_w1)
                .at[2 * FUSION_DIM:, 2 * FUSION_DIM:].set(icls_w1))
    whead = zeros(3 * FUSION_DIM, 3 * OUT_DIM)
    whead = (whead.at[:FUSION_DIM, :OUT_DIM].set(cls_w2)
                  .at[FUSION_DIM:2 * FUSION_DIM, OUT_DIM:2 * OUT_DIM].set(tcls_w2)
                  .at[2 * FUSION_DIM:, 2 * OUT_DIM:].set(icls_w2))

    # ------------------------------ weight slabs (bf16) --------------------------
    slab256 = jnp.concatenate([it_w1, img_w1, txt_w1, itl_w1, txtl_w1,
                               fus1_w, fus2_w, bn1_w2, bn2_w2],
                              axis=0).astype(jnp.bfloat16)
    assert slab256.shape == (R256_ROWS, ATTN_DIM)
    slab128 = jnp.concatenate([it_w2, img_w2, txt_w2, itl_w2, txtl_w2,
                               lrf1_wo, lrf2_wo, gate_w],
                              axis=0).astype(jnp.bfloat16)
    assert slab128.shape == (R128_ROWS, FUSION_DIM)
    wcls = wcls.astype(jnp.bfloat16)
    whead = whead.astype(jnp.bfloat16)

    # ------------------------------ vector slab (f32) ----------------------------
    vec = jnp.zeros((N_VROWS, TEXT_DIM), jnp.float32)

    def setrow(v, row, val):
        return v.at[row, :val.shape[0]].set(val)

    vec = setrow(vec, V_LN_IT_G, ones(TEXT_DIM));    vec = setrow(vec, V_LN_IT_B, zeros(TEXT_DIM))
    vec = setrow(vec, V_LN_IM_G, ones(IMAGE_DIM));   vec = setrow(vec, V_LN_IM_B, zeros(IMAGE_DIM))
    vec = setrow(vec, V_LN_TX_G, ones(TEXT_DIM));    vec = setrow(vec, V_LN_TX_B, zeros(TEXT_DIM))
    vec = setrow(vec, V_LN_ITL_G, ones(FUSION_DIM)); vec = setrow(vec, V_LN_ITL_B, zeros(FUSION_DIM))
    vec = setrow(vec, V_LN_TXTL_G, ones(FUSION_DIM)); vec = setrow(vec, V_LN_TXTL_B, zeros(FUSION_DIM))
    vec = setrow(vec, V_FUS1_B1, fus1_b1); vec = setrow(vec, V_FUS1_BO, fus1_bo)
    vec = setrow(vec, V_FUS1_B2, fus1_b2)
    vec = setrow(vec, V_FUS2_B1, fus2_b1); vec = setrow(vec, V_FUS2_BO, fus2_bo)
    vec = setrow(vec, V_FUS2_B2, fus2_b2)
    vec = setrow(vec, V_GATE_B, gate_b)
    vec = setrow(vec, V_LN_CLS_G, ones(FUSION_DIM));  vec = setrow(vec, V_LN_CLS_B, zeros(FUSION_DIM))
    vec = setrow(vec, V_LN_TCLS_G, ones(FUSION_DIM)); vec = setrow(vec, V_LN_TCLS_B, zeros(FUSION_DIM))
    vec = setrow(vec, V_LN_ICLS_G, ones(FUSION_DIM)); vec = setrow(vec, V_LN_ICLS_B, zeros(FUSION_DIM))
    vec = setrow(vec, V_CLS_HID_B, zeros(3 * FUSION_DIM))   # hidden biases (init 0)
    vec = setrow(vec, V_HEAD_B, zeros(3 * OUT_DIM))         # head biases (init 0)

    return (slab256, slab128, wcls, whead, vec)


# ------------------------------ wrapper -------------------------------------------
@jax.jit
def sarcasm_forward(imgtxt_cls, image_feats, text_cls, packed):
    slab256, slab128, wcls, whead, vec = packed
    B = imgtxt_cls.shape[0]
    # single lane-dense activation slab (768 + 512 + 768 = 2048 lanes)
    x_packed = jnp.concatenate([imgtxt_cls, image_feats, text_cls], axis=-1)

    vmem = pl.BlockSpec(memory_space=pltpu.MemorySpace.VMEM)
    operands = (x_packed, slab256, slab128, wcls, whead, vec)
    bytes_accessed = int(sum(a.size * a.dtype.itemsize for a in operands)
                         + B * 3 * OUT_DIM * 4)
    cost = pl.CostEstimate(flops=B * 2_302_976,        # sum over all MXU matmuls
                           transcendentals=B * 3_200,  # tanh (GELU) + sigmoid, approx
                           bytes_accessed=bytes_accessed)

    out = pl.pallas_call(
        sarcasm_kernel,
        out_shape=jax.ShapeDtypeStruct((B, 3 * OUT_DIM), jnp.float32),
        in_specs=[vmem] * len(operands),
        out_specs=vmem,
        cost_estimate=cost,
    )(*operands)

    classify = out[:, 0:OUT_DIM]
    text_aux = out[:, OUT_DIM:2 * OUT_DIM]
    image_aux = out[:, 2 * OUT_DIM:3 * OUT_DIM]
    return classify, text_aux, image_aux


# ------------------------------ main ------------------------------------------------
if __name__ == "__main__":
    key = jax.random.PRNGKey(0)
    k_params, k_it, k_im, k_tx = jax.random.split(key, 4)

    packed = make_packed_params(k_params)

    # stand-ins for: text_embeder(img_txt).last_hidden_state[:, 0, :]  (B, 768),
    # image_embeder.get_image_features(**image)                        (B, 512),
    # text_embeder(text).last_hidden_state[:, 0, :]                    (B, 768)
    img_txt_cls = jax.random.normal(k_it, (BATCH, TEXT_DIM), jnp.float32)
    image_feats = jax.random.normal(k_im, (BATCH, IMAGE_DIM), jnp.float32)
    text_cls = jax.random.normal(k_tx, (BATCH, TEXT_DIM), jnp.float32)

    classify, text_aux, image_aux = sarcasm_forward(img_txt_cls, image_feats, text_cls, packed)
    jax.block_until_ready((classify, text_aux, image_aux))

    assert classify.shape == (BATCH, OUT_DIM)
    assert text_aux.shape == (BATCH, OUT_DIM)
    assert image_aux.shape == (BATCH, OUT_DIM)
    print("KERNEL_OK")
</pallas_src>

<mosaic_0001>
module attributes {stable_mosaic.version = 11 : i64} {
  func.func @sarcasm_kernel(%arg0: memref<8x2048xf32, #tpu.memory_space<vmem>>, %arg1: memref<3072x256xbf16, #tpu.memory_space<vmem>>, %arg2: memref<1664x128xbf16, #tpu.memory_space<vmem>>, %arg3: memref<384x384xbf16, #tpu.memory_space<vmem>>, %arg4: memref<384x12xbf16, #tpu.memory_space<vmem>>, %arg5: memref<25x768xf32, #tpu.memory_space<vmem>>, %arg6: memref<8x12xf32, #tpu.memory_space<vmem>>) attributes {dimension_semantics = [], scalar_prefetch = 0 : i64, scratch_operands = 0 : i64, tpu.core_type = #tpu.core_type<tc>} {
    %c0 = arith.constant 0 : index
    %c0_0 = arith.constant 0 : index
    %0 = vector.load %arg0[%c0, %c0_0] : memref<8x2048xf32, #tpu.memory_space<vmem>>, vector<8x768xf32>
    %c0_1 = arith.constant 0 : index
    %c768 = arith.constant 768 : index
    %1 = vector.load %arg0[%c0_1, %c768] : memref<8x2048xf32, #tpu.memory_space<vmem>>, vector<8x512xf32>
    %c0_2 = arith.constant 0 : index
    %c1280 = arith.constant 1280 : index
    %2 = vector.load %arg0[%c0_2, %c1280] : memref<8x2048xf32, #tpu.memory_space<vmem>>, vector<8x768xf32>
    %c0_3 = arith.constant 0 : index
    %c0_4 = arith.constant 0 : index
    %3 = vector.load %arg5[%c0_3, %c0_4] : memref<25x768xf32, #tpu.memory_space<vmem>>, vector<1x768xf32>
    %c1 = arith.constant 1 : index
    %c0_5 = arith.constant 0 : index
    %4 = vector.load %arg5[%c1, %c0_5] : memref<25x768xf32, #tpu.memory_space<vmem>>, vector<1x768xf32>
    %cst = arith.constant dense<0.000000e+00> : vector<8xf32>
    %5 = vector.multi_reduction <add>, %0, %cst [1] : vector<8x768xf32> to vector<8xf32>
    %6 = vector.shape_cast %5 : vector<8xf32> to vector<8x1xf32>
    %cst_6 = arith.constant 7.680000e+02 : f32
    %7 = vector.broadcast %cst_6 : f32 to vector<8x1xf32>
    %8 = arith.divf %6, %7 : vector<8x1xf32>
    %9 = vector.broadcast %8 : vector<8x1xf32> to vector<8x768xf32>
    %10 = arith.subf %0, %9 : vector<8x768xf32>
    %11 = arith.mulf %10, %10 : vector<8x768xf32>
    %cst_7 = arith.constant dense<0.000000e+00> : vector<8xf32>
    %12 = vector.multi_reduction <add>, %11, %cst_7 [1] : vector<8x768xf32> to vector<8xf32>
    %13 = vector.shape_cast %12 : vector<8xf32> to vector<8x1xf32>
    %cst_8 = arith.constant 7.680000e+02 : f32
    %14 = vector.broadcast %cst_8 : f32 to vector<8x1xf32>
    %15 = arith.divf %13, %14 : vector<8x1xf32>
    %16 = vector.broadcast %8 : vector<8x1xf32> to vector<8x768xf32>
    %17 = arith.subf %0, %16 : vector<8x768xf32>
    %cst_9 = arith.constant 9.99999974E-6 : f32
    %18 = vector.broadcast %cst_9 : f32 to vector<8x1xf32>
    %19 = arith.addf %15, %18 : vector<8x1xf32>
    %20 = math.rsqrt %19 : vector<8x1xf32>
    %21 = vector.broadcast %20 : vector<8x1xf32> to vector<8x768xf32>
    %22 = arith.mulf %17, %21 : vector<8x768xf32>
    %23 = vector.broadcast %3 : vector<1x768xf32> to vector<8x768xf32>
    %24 = arith.mulf %22, %23 : vector<8x768xf32>
    %25 = vector.broadcast %4 : vector<1x768xf32> to vector<8x768xf32>
    %26 = arith.addf %24, %25 : vector<8x768xf32>
    %c0_10 = arith.constant 0 : index
    %c0_11 = arith.constant 0 : index
    %27 = vector.load %arg1[%c0_10, %c0_11] : memref<3072x256xbf16, #tpu.memory_space<vmem>>, vector<768x256xbf16>
    %28 = arith.truncf %26 : vector<8x768xf32> to vector<8x768xbf16>
    %cst_12 = arith.constant dense<0.000000e+00> : vector<8x256xf32>
    %29 = tpu.matmul %28, %27, %cst_12 {dimension_numbers = #tpu.dot_dimension_numbers<[1], [0], [0], [1], [0, 0, 1, 1], [], []>} : vector<8x768xbf16>, vector<768x256xbf16>, vector<8x256xf32> -> vector<8x256xf32>
    %cst_13 = arith.constant 5.000000e-01 : f32
    %30 = vector.broadcast %cst_13 : f32 to vector<8x256xf32>
    %31 = arith.mulf %30, %29 : vector<8x256xf32>
    %32 = arith.mulf %29, %29 : vector<8x256xf32>
    %33 = arith.mulf %32, %29 : vector<8x256xf32>
    %cst_14 = arith.constant 4.471500e-02 : f32
    %34 = vector.broadcast %cst_14 : f32 to vector<8x256xf32>
    %35 = arith.mulf %34, %33 : vector<8x256xf32>
    %36 = arith.addf %29, %35 : vector<8x256xf32>
    %cst_15 = arith.constant 0.797884583 : f32
    %37 = vector.broadcast %cst_15 : f32 to vector<8x256xf32>
    %38 = arith.mulf %37, %36 : vector<8x256xf32>
    %39 = math.tanh %38 : vector<8x256xf32>
    %cst_16 = arith.constant 1.000000e+00 : f32
    %40 = vector.broadcast %cst_16 : f32 to vector<8x256xf32>
    %41 = arith.addf %40, %39 : vector<8x256xf32>
    %42 = arith.mulf %31, %41 : vector<8x256xf32>
    %c0_17 = arith.constant 0 : index
    %c0_18 = arith.constant 0 : index
    %43 = vector.load %arg2[%c0_17, %c0_18] : memref<1664x128xbf16, #tpu.memory_space<vmem>>, vector<256x128xbf16>
    %44 = arith.truncf %42 : vector<8x256xf32> to vector<8x256xbf16>
    %cst_19 = arith.constant dense<0.000000e+00> : vector<8x128xf32>
    %45 = tpu.matmul %44, %43, %cst_19 {dimension_numbers = #tpu.dot_dimension_numbers<[1], [0], [0], [1], [0, 0, 1, 1], [], []>} : vector<8x256xbf16>, vector<256x128xbf16>, vector<8x128xf32> -> vector<8x128xf32>
    %cst_20 = arith.constant 5.000000e-01 : f32
    %46 = vector.broadcast %cst_20 : f32 to vector<8x128xf32>
    %47 = arith.mulf %46, %45 : vector<8x128xf32>
    %48 = arith.mulf %45, %45 : vector<8x128xf32>
    %49 = arith.mulf %48, %45 : vector<8x128xf32>
    %cst_21 = arith.constant 4.471500e-02 : f32
    %50 = vector.broadcast %cst_21 : f32 to vector<8x128xf32>
    %51 = arith.mulf %50, %49 : vector<8x128xf32>
    %52 = arith.addf %45, %51 : vector<8x128xf32>
    %cst_22 = arith.constant 0.797884583 : f32
    %53 = vector.broadcast %cst_22 : f32 to vector<8x128xf32>
    %54 = arith.mulf %53, %52 : vector<8x128xf32>
    %55 = math.tanh %54 : vector<8x128xf32>
    %cst_23 = arith.constant 1.000000e+00 : f32
    %56 = vector.broadcast %cst_23 : f32 to vector<8x128xf32>
    %57 = arith.addf %56, %55 : vector<8x128xf32>
    %58 = arith.mulf %47, %57 : vector<8x128xf32>
    %c2 = arith.constant 2 : index
    %c0_24 = arith.constant 0 : index
    %59 = vector.load %arg5[%c2, %c0_24] : memref<25x768xf32, #tpu.memory_space<vmem>>, vector<1x512xf32>
    %c3 = arith.constant 3 : index
    %c0_25 = arith.constant 0 : index
    %60 = vector.load %arg5[%c3, %c0_25] : memref<25x768xf32, #tpu.memory_space<vmem>>, vector<1x512xf32>
    %cst_26 = arith.constant dense<0.000000e+00> : vector<8xf32>
    %61 = vector.multi_reduction <add>, %1, %cst_26 [1] : vector<8x512xf32> to vector<8xf32>
    %62 = vector.shape_cast %61 : vector<8xf32> to vector<8x1xf32>
    %cst_27 = arith.constant 5.120000e+02 : f32
    %63 = vector.broadcast %cst_27 : f32 to vector<8x1xf32>
    %64 = arith.divf %62, %63 : vector<8x1xf32>
    %65 = vector.broadcast %64 : vector<8x1xf32> to vector<8x512xf32>
    %66 = arith.subf %1, %65 : vector<8x512xf32>
    %67 = arith.mulf %66, %66 : vector<8x512xf32>
    %cst_28 = arith.constant dense<0.000000e+00> : vector<8xf32>
    %68 = vector.multi_reduction <add>, %67, %cst_28 [1] : vector<8x512xf32> to vector<8xf32>
    %69 = vector.shape_cast %68 : vector<8xf32> to vector<8x1xf32>
    %cst_29 = arith.constant 5.120000e+02 : f32
    %70 = vector.broadcast %cst_29 : f32 to vector<8x1xf32>
    %71 = arith.divf %69, %70 : vector<8x1xf32>
    %72 = vector.broadcast %64 : vector<8x1xf32> to vector<8x512xf32>
    %73 = arith.subf %1, %72 : vector<8x512xf32>
    %cst_30 = arith.constant 9.99999974E-6 : f32
    %74 = vector.broadcast %cst_30 : f32 to vector<8x1xf32>
    %75 = arith.addf %71, %74 : vector<8x1xf32>
    %76 = math.rsqrt %75 : vector<8x1xf32>
    %77 = vector.broadcast %76 : vector<8x1xf32> to vector<8x512xf32>
    %78 = arith.mulf %73, %77 : vector<8x512xf32>
    %79 = vector.broadcast %59 : vector<1x512xf32> to vector<8x512xf32>
    %80 = arith.mulf %78, %79 : vector<8x512xf32>
    %81 = vector.broadcast %60 : vector<1x512xf32> to vector<8x512xf32>
    %82 = arith.addf %80, %81 : vector<8x512xf32>
    %c768_31 = arith.constant 768 : index
    %c0_32 = arith.constant 0 : index
    %83 = vector.load %arg1[%c768_31, %c0_32] : memref<3072x256xbf16, #tpu.memory_space<vmem>>, vector<512x256xbf16>
    %84 = arith.truncf %82 : vector<8x512xf32> to vector<8x512xbf16>
    %cst_33 = arith.constant dense<0.000000e+00> : vector<8x256xf32>
    %85 = tpu.matmul %84, %83, %cst_33 {dimension_numbers = #tpu.dot_dimension_numbers<[1], [0], [0], [1], [0, 0, 1, 1], [], []>} : vector<8x512xbf16>, vector<512x256xbf16>, vector<8x256xf32> -> vector<8x256xf32>
    %cst_34 = arith.constant 5.000000e-01 : f32
    %86 = vector.broadcast %cst_34 : f32 to vector<8x256xf32>
    %87 = arith.mulf %86, %85 : vector<8x256xf32>
    %88 = arith.mulf %85, %85 : vector<8x256xf32>
    %89 = arith.mulf %88, %85 : vector<8x256xf32>
    %cst_35 = arith.constant 4.471500e-02 : f32
    %90 = vector.broadcast %cst_35 : f32 to vector<8x256xf32>
    %91 = arith.mulf %90, %89 : vector<8x256xf32>
    %92 = arith.addf %85, %91 : vector<8x256xf32>
    %cst_36 = arith.constant 0.797884583 : f32
    %93 = vector.broadcast %cst_36 : f32 to vector<8x256xf32>
    %94 = arith.mulf %93, %92 : vector<8x256xf32>
    %95 = math.tanh %94 : vector<8x256xf32>
    %cst_37 = arith.constant 1.000000e+00 : f32
    %96 = vector.broadcast %cst_37 : f32 to vector<8x256xf32>
    %97 = arith.addf %96, %95 : vector<8x256xf32>
    %98 = arith.mulf %87, %97 : vector<8x256xf32>
    %c256 = arith.constant 256 : index
    %c0_38 = arith.constant 0 : index
    %99 = vector.load %arg2[%c256, %c0_38] : memref<1664x128xbf16, #tpu.memory_space<vmem>>, vector<256x128xbf16>
    %100 = arith.truncf %98 : vector<8x256xf32> to vector<8x256xbf16>
    %cst_39 = arith.constant dense<0.000000e+00> : vector<8x128xf32>
    %101 = tpu.matmul %100, %99, %cst_39 {dimension_numbers = #tpu.dot_dimension_numbers<[1], [0], [0], [1], [0, 0, 1, 1], [], []>} : vector<8x256xbf16>, vector<256x128xbf16>, vector<8x128xf32> -> vector<8x128xf32>
    %cst_40 = arith.constant 5.000000e-01 : f32
    %102 = vector.broadcast %cst_40 : f32 to vector<8x128xf32>
    %103 = arith.mulf %102, %101 : vector<8x128xf32>
    %104 = arith.mulf %101, %101 : vector<8x128xf32>
    %105 = arith.mulf %104, %101 : vector<8x128xf32>
    %cst_41 = arith.constant 4.471500e-02 : f32
    %106 = vector.broadcast %cst_41 : f32 to vector<8x128xf32>
    %107 = arith.mulf %106, %105 : vector<8x128xf32>
    %108 = arith.addf %101, %107 : vector<8x128xf32>
    %cst_42 = arith.constant 0.797884583 : f32
    %109 = vector.broadcast %cst_42 : f32 to vector<8x128xf32>
    %110 = arith.mulf %109, %108 : vector<8x128xf32>
    %111 = math.tanh %110 : vector<8x128xf32>
    %cst_43 = arith.constant 1.000000e+00 : f32
    %112 = vector.broadcast %cst_43 : f32 to vector<8x128xf32>
    %113 = arith.addf %112, %111 : vector<8x128xf32>
    %114 = arith.mulf %103, %113 : vector<8x128xf32>
    %115 = tpu.concatenate %58, %114 in 1 : vector<8x128xf32>, vector<8x128xf32> -> vector<8x256xf32>
    %c2304 = arith.constant 2304 : index
    %c0_44 = arith.constant 0 : index
    %116 = vector.load %arg1[%c2304, %c0_44] : memref<3072x256xbf16, #tpu.memory_space<vmem>>, vector<256x256xbf16>
    %117 = arith.truncf %115 : vector<8x256xf32> to vector<8x256xbf16>
    %cst_45 = arith.constant dense<0.000000e+00> : vector<8x256xf32>
    %118 = tpu.matmul %117, %116, %cst_45 {dimension_numbers = #tpu.dot_dimension_numbers<[1], [0], [0], [1], [0, 0, 1, 1], [], []>} : vector<8x256xbf16>, vector<256x256xbf16>, vector<8x256xf32> -> vector<8x256xf32>
    %c10 = arith.constant 10 : index
    %c0_46 = arith.constant 0 : index
    %119 = vector.load %arg5[%c10, %c0_46] : memref<25x768xf32, #tpu.memory_space<vmem>>, vector<1x256xf32>
    %120 = vector.broadcast %119 : vector<1x256xf32> to vector<8x256xf32>
    %121 = arith.addf %118, %120 : vector<8x256xf32>
    %122 = vector.extract_strided_slice %121 {offsets = [0, 0], sizes = [8, 128], strides = [1, 1]} : vector<8x256xf32> to vector<8x128xf32>
    %123 = vector.extract_strided_slice %121 {offsets = [0, 128], sizes = [8, 128], strides = [1, 1]} : vector<8x256xf32> to vector<8x128xf32>
    %cst_47 = arith.constant 5.000000e-01 : f32
    %124 = vector.broadcast %cst_47 : f32 to vector<8x128xf32>
    %125 = arith.mulf %124, %123 : vector<8x128xf32>
    %126 = arith.mulf %123, %123 : vector<8x128xf32>
    %127 = arith.mulf %126, %123 : vector<8x128xf32>
    %cst_48 = arith.constant 4.471500e-02 : f32
    %128 = vector.broadcast %cst_48 : f32 to vector<8x128xf32>
    %129 = arith.mulf %128, %127 : vector<8x128xf32>
    %130 = arith.addf %123, %129 : vector<8x128xf32>
    %cst_49 = arith.constant 0.797884583 : f32
    %131 = vector.broadcast %cst_49 : f32 to vector<8x128xf32>
    %132 = arith.mulf %131, %130 : vector<8x128xf32>
    %133 = math.tanh %132 : vector<8x128xf32>
    %cst_50 = arith.constant 1.000000e+00 : f32
    %134 = vector.broadcast %cst_50 : f32 to vector<8x128xf32>
    %135 = arith.addf %134, %133 : vector<8x128xf32>
    %136 = arith.mulf %125, %135 : vector<8x128xf32>
    %c64_i32 = arith.constant 64 : i32
    %137 = tpu.dynamic_rotate %122 by %c64_i32 dim 1 : vector<8x128xf32>, i32 -> vector<8x128xf32>
    %138 = arith.mulf %122, %137 : vector<8x128xf32>
    %c1280_51 = arith.constant 1280 : index
    %c0_52 = arith.constant 0 : index
    %139 = vector.load %arg2[%c1280_51, %c0_52] : memref<1664x128xbf16, #tpu.memory_space<vmem>>, vector<128x128xbf16>
    %140 = arith.truncf %138 : vector<8x128xf32> to vector<8x128xbf16>
    %cst_53 = arith.constant dense<0.000000e+00> : vector<8x128xf32>
    %141 = tpu.matmul %140, %139, %cst_53 {dimension_numbers = #tpu.dot_dimension_numbers<[1], [0], [0], [1], [0, 0, 1, 1], [], []>} : vector<8x128xbf16>, vector<128x128xbf16>, vector<8x128xf32> -> vector<8x128xf32>
    %c11 = arith.constant 11 : index
    %c0_54 = arith.constant 0 : index
    %142 = vector.load %arg5[%c11, %c0_54] : memref<25x768xf32, #tpu.memory_space<vmem>>, vector<1x128xf32>
    %143 = vector.broadcast %142 : vector<1x128xf32> to vector<8x128xf32>
    %144 = arith.addf %141, %143 : vector<8x128xf32>
    %c2816 = arith.constant 2816 : index
    %c0_55 = arith.constant 0 : index
    %145 = vector.load %arg1[%c2816, %c0_55] : memref<3072x256xbf16, #tpu.memory_space<vmem>>, vector<128x256xbf16>
    %146 = arith.truncf %136 : vector<8x128xf32> to vector<8x128xbf16>
    %cst_56 = arith.constant dense<0.000000e+00> : vector<8x256xf32>
    %147 = tpu.matmul %146, %145, %cst_56 {dimension_numbers = #tpu.dot_dimension_numbers<[1], [0], [0], [1], [0, 0, 1, 1], [], []>} : vector<8x128xbf16>, vector<128x256xbf16>, vector<8x256xf32> -> vector<8x256xf32>
    %c12 = arith.constant 12 : index
    %c0_57 = arith.constant 0 : index
    %148 = vector.load %arg5[%c12, %c0_57] : memref<25x768xf32, #tpu.memory_space<vmem>>, vector<1x256xf32>
    %149 = vector.broadcast %148 : vector<1x256xf32> to vector<8x256xf32>
    %150 = arith.addf %147, %149 : vector<8x256xf32>
    %cst_58 = arith.constant 5.000000e-01 : f32
    %151 = vector.broadcast %cst_58 : f32 to vector<8x256xf32>
    %152 = arith.mulf %151, %150 : vector<8x256xf32>
    %153 = arith.mulf %150, %150 : vector<8x256xf32>
    %154 = arith.mulf %153, %150 : vector<8x256xf32>
    %cst_59 = arith.constant 4.471500e-02 : f32
    %155 = vector.broadcast %cst_59 : f32 to vector<8x256xf32>
    %156 = arith.mulf %155, %154 : vector<8x256xf32>
    %157 = arith.addf %150, %156 : vector<8x256xf32>
    %cst_60 = arith.constant 0.797884583 : f32
    %158 = vector.broadcast %cst_60 : f32 to vector<8x256xf32>
    %159 = arith.mulf %158, %157 : vector<8x256xf32>
    %160 = math.tanh %159 : vector<8x256xf32>
    %cst_61 = arith.constant 1.000000e+00 : f32
    %161 = vector.broadcast %cst_61 : f32 to vector<8x256xf32>
    %162 = arith.addf %161, %160 : vector<8x256xf32>
    %163 = arith.mulf %152, %162 : vector<8x256xf32>
    %164 = vector.extract_strided_slice %163 {offsets = [0, 0], sizes = [8, 128], strides = [1, 1]} : vector<8x256xf32> to vector<8x128xf32>
    %165 = vector.extract_strided_slice %163 {offsets = [0, 128], sizes = [8, 128], strides = [1, 1]} : vector<8x256xf32> to vector<8x128xf32>
    %166 = arith.addf %164, %165 : vector<8x128xf32>
    %167 = arith.addf %144, %166 : vector<8x128xf32>
    %c4 = arith.constant 4 : index
    %c0_62 = arith.constant 0 : index
    %168 = vector.load %arg5[%c4, %c0_62] : memref<25x768xf32, #tpu.memory_space<vmem>>, vector<1x768xf32>
    %c5 = arith.constant 5 : index
    %c0_63 = arith.constant 0 : index
    %169 = vector.load %arg5[%c5, %c0_63] : memref<25x768xf32, #tpu.memory_space<vmem>>, vector<1x768xf32>
    %cst_64 = arith.constant dense<0.000000e+00> : vector<8xf32>
    %170 = vector.multi_reduction <add>, %2, %cst_64 [1] : vector<8x768xf32> to vector<8xf32>
    %171 = vector.shape_cast %170 : vector<8xf32> to vector<8x1xf32>
    %cst_65 = arith.constant 7.680000e+02 : f32
    %172 = vector.broadcast %cst_65 : f32 to vector<8x1xf32>
    %173 = arith.divf %171, %172 : vector<8x1xf32>
    %174 = vector.broadcast %173 : vector<8x1xf32> to vector<8x768xf32>
    %175 = arith.subf %2, %174 : vector<8x768xf32>
    %176 = arith.mulf %175, %175 : vector<8x768xf32>
    %cst_66 = arith.constant dense<0.000000e+00> : vector<8xf32>
    %177 = vector.multi_reduction <add>, %176, %cst_66 [1] : vector<8x768xf32> to vector<8xf32>
    %178 = vector.shape_cast %177 : vector<8xf32> to vector<8x1xf32>
    %cst_67 = arith.constant 7.680000e+02 : f32
    %179 = vector.broadcast %cst_67 : f32 to vector<8x1xf32>
    %180 = arith.divf %178, %179 : vector<8x1xf32>
    %181 = vector.broadcast %173 : vector<8x1xf32> to vector<8x768xf32>
    %182 = arith.subf %2, %181 : vector<8x768xf32>
    %cst_68 = arith.constant 9.99999974E-6 : f32
    %183 = vector.broadcast %cst_68 : f32 to vector<8x1xf32>
    %184 = arith.addf %180, %183 : vector<8x1xf32>
    %185 = math.rsqrt %184 : vector<8x1xf32>
    %186 = vector.broadcast %185 : vector<8x1xf32> to vector<8x768xf32>
    %187 = arith.mulf %182, %186 : vector<8x768xf32>
    %188 = vector.broadcast %168 : vector<1x768xf32> to vector<8x768xf32>
    %189 = arith.mulf %187, %188 : vector<8x768xf32>
    %190 = vector.broadcast %169 : vector<1x768xf32> to vector<8x768xf32>
    %191 = arith.addf %189, %190 : vector<8x768xf32>
    %c1280_69 = arith.constant 1280 : index
    %c0_70 = arith.constant 0 : index
    %192 = vector.load %arg1[%c1280_69, %c0_70] : memref<3072x256xbf16, #tpu.memory_space<vmem>>, vector<768x256xbf16>
    %193 = arith.truncf %191 : vector<8x768xf32> to vector<8x768xbf16>
    %cst_71 = arith.constant dense<0.000000e+00> : vector<8x256xf32>
    %194 = tpu.matmul %193, %192, %cst_71 {dimension_numbers = #tpu.dot_dimension_numbers<[1], [0], [0], [1], [0, 0, 1, 1], [], []>} : vector<8x768xbf16>, vector<768x256xbf16>, vector<8x256xf32> -> vector<8x256xf32>
    %cst_72 = arith.constant 5.000000e-01 : f32
    %195 = vector.broadcast %cst_72 : f32 to vector<8x256xf32>
    %196 = arith.mulf %195, %194 : vector<8x256xf32>
    %197 = arith.mulf %194, %194 : vector<8x256xf32>
    %198 = arith.mulf %197, %194 : vector<8x256xf32>
    %cst_73 = arith.constant 4.471500e-02 : f32
    %199 = vector.broadcast %cst_73 : f32 to vector<8x256xf32>
    %200 = arith.mulf %199, %198 : vector<8x256xf32>
    %201 = arith.addf %194, %200 : vector<8x256xf32>
    %cst_74 = arith.constant 0.797884583 : f32
    %202 = vector.broadcast %cst_74 : f32 to vector<8x256xf32>
    %203 = arith.mulf %202, %201 : vector<8x256xf32>
    %204 = math.tanh %203 : vector<8x256xf32>
    %cst_75 = arith.constant 1.000000e+00 : f32
    %205 = vector.broadcast %cst_75 : f32 to vector<8x256xf32>
    %206 = arith.addf %205, %204 : vector<8x256xf32>
    %207 = arith.mulf %196, %206 : vector<8x256xf32>
    %c512 = arith.constant 512 : index
    %c0_76 = arith.constant 0 : index
    %208 = vector.load %arg2[%c512, %c0_76] : memref<1664x128xbf16, #tpu.memory_space<vmem>>, vector<256x128xbf16>
    %209 = arith.truncf %207 : vector<8x256xf32> to vector<8x256xbf16>
    %cst_77 = arith.constant dense<0.000000e+00> : vector<8x128xf32>
    %210 = tpu.matmul %209, %208, %cst_77 {dimension_numbers = #tpu.dot_dimension_numbers<[1], [0], [0], [1], [0, 0, 1, 1], [], []>} : vector<8x256xbf16>, vector<256x128xbf16>, vector<8x128xf32> -> vector<8x128xf32>
    %cst_78 = arith.constant 5.000000e-01 : f32
    %211 = vector.broadcast %cst_78 : f32 to vector<8x128xf32>
    %212 = arith.mulf %211, %210 : vector<8x128xf32>
    %213 = arith.mulf %210, %210 : vector<8x128xf32>
    %214 = arith.mulf %213, %210 : vector<8x128xf32>
    %cst_79 = arith.constant 4.471500e-02 : f32
    %215 = vector.broadcast %cst_79 : f32 to vector<8x128xf32>
    %216 = arith.mulf %215, %214 : vector<8x128xf32>
    %217 = arith.addf %210, %216 : vector<8x128xf32>
    %cst_80 = arith.constant 0.797884583 : f32
    %218 = vector.broadcast %cst_80 : f32 to vector<8x128xf32>
    %219 = arith.mulf %218, %217 : vector<8x128xf32>
    %220 = math.tanh %219 : vector<8x128xf32>
    %cst_81 = arith.constant 1.000000e+00 : f32
    %221 = vector.broadcast %cst_81 : f32 to vector<8x128xf32>
    %222 = arith.addf %221, %220 : vector<8x128xf32>
    %223 = arith.mulf %212, %222 : vector<8x128xf32>
    %c6 = arith.constant 6 : index
    %c0_82 = arith.constant 0 : index
    %224 = vector.load %arg5[%c6, %c0_82] : memref<25x768xf32, #tpu.memory_space<vmem>>, vector<1x128xf32>
    %c7 = arith.constant 7 : index
    %c0_83 = arith.constant 0 : index
    %225 = vector.load %arg5[%c7, %c0_83] : memref<25x768xf32, #tpu.memory_space<vmem>>, vector<1x128xf32>
    %cst_84 = arith.constant dense<0.000000e+00> : vector<8xf32>
    %226 = vector.multi_reduction <add>, %167, %cst_84 [1] : vector<8x128xf32> to vector<8xf32>
    %227 = vector.shape_cast %226 : vector<8xf32> to vector<8x1xf32>
    %cst_85 = arith.constant 1.280000e+02 : f32
    %228 = vector.broadcast %cst_85 : f32 to vector<8x1xf32>
    %229 = arith.divf %227, %228 : vector<8x1xf32>
    %230 = vector.broadcast %229 : vector<8x1xf32> to vector<8x128xf32>
    %231 = arith.subf %167, %230 : vector<8x128xf32>
    %232 = arith.mulf %231, %231 : vector<8x128xf32>
    %cst_86 = arith.constant dense<0.000000e+00> : vector<8xf32>
    %233 = vector.multi_reduction <add>, %232, %cst_86 [1] : vector<8x128xf32> to vector<8xf32>
    %234 = vector.shape_cast %233 : vector<8xf32> to vector<8x1xf32>
    %cst_87 = arith.constant 1.280000e+02 : f32
    %235 = vector.broadcast %cst_87 : f32 to vector<8x1xf32>
    %236 = arith.divf %234, %235 : vector<8x1xf32>
    %237 = vector.broadcast %229 : vector<8x1xf32> to vector<8x128xf32>
    %238 = arith.subf %167, %237 : vector<8x128xf32>
    %cst_88 = arith.constant 9.99999974E-6 : f32
    %239 = vector.broadcast %cst_88 : f32 to vector<8x1xf32>
    %240 = arith.addf %236, %239 : vector<8x1xf32>
    %241 = math.rsqrt %240 : vector<8x1xf32>
    %242 = vector.broadcast %241 : vector<8x1xf32> to vector<8x128xf32>
    %243 = arith.mulf %238, %242 : vector<8x128xf32>
    %244 = vector.broadcast %224 : vector<1x128xf32> to vector<8x128xf32>
    %245 = arith.mulf %243, %244 : vector<8x128xf32>
    %246 = vector.broadcast %225 : vector<1x128xf32> to vector<8x128xf32>
    %247 = arith.addf %245, %246 : vector<8x128xf32>
    %c2048 = arith.constant 2048 : index
    %c0_89 = arith.constant 0 : index
    %248 = vector.load %arg1[%c2048, %c0_89] : memref<3072x256xbf16, #tpu.memory_space<vmem>>, vector<128x256xbf16>
    %249 = arith.truncf %247 : vector<8x128xf32> to vector<8x128xbf16>
    %cst_90 = arith.constant dense<0.000000e+00> : vector<8x256xf32>
    %250 = tpu.matmul %249, %248, %cst_90 {dimension_numbers = #tpu.dot_dimension_numbers<[1], [0], [0], [1], [0, 0, 1, 1], [], []>} : vector<8x128xbf16>, vector<128x256xbf16>, vector<8x256xf32> -> vector<8x256xf32>
    %cst_91 = arith.constant 5.000000e-01 : f32
    %251 = vector.broadcast %cst_91 : f32 to vector<8x256xf32>
    %252 = arith.mulf %251, %250 : vector<8x256xf32>
    %253 = arith.mulf %250, %250 : vector<8x256xf32>
    %254 = arith.mulf %253, %250 : vector<8x256xf32>
    %cst_92 = arith.constant 4.471500e-02 : f32
    %255 = vector.broadcast %cst_92 : f32 to vector<8x256xf32>
    %256 = arith.mulf %255, %254 : vector<8x256xf32>
    %257 = arith.addf %250, %256 : vector<8x256xf32>
    %cst_93 = arith.constant 0.797884583 : f32
    %258 = vector.broadcast %cst_93 : f32 to vector<8x256xf32>
    %259 = arith.mulf %258, %257 : vector<8x256xf32>
    %260 = math.tanh %259 : vector<8x256xf32>
    %cst_94 = arith.constant 1.000000e+00 : f32
    %261 = vector.broadcast %cst_94 : f32 to vector<8x256xf32>
    %262 = arith.addf %261, %260 : vector<8x256xf32>
    %263 = arith.mulf %252, %262 : vector<8x256xf32>
    %c768_95 = arith.constant 768 : index
    %c0_96 = arith.constant 0 : index
    %264 = vector.load %arg2[%c768_95, %c0_96] : memref<1664x128xbf16, #tpu.memory_space<vmem>>, vector<256x128xbf16>
    %265 = arith.truncf %263 : vector<8x256xf32> to vector<8x256xbf16>
    %cst_97 = arith.constant dense<0.000000e+00> : vector<8x128xf32>
    %266 = tpu.matmul %265, %264, %cst_97 {dimension_numbers = #tpu.dot_dimension_numbers<[1], [0], [0], [1], [0, 0, 1, 1], [], []>} : vector<8x256xbf16>, vector<256x128xbf16>, vector<8x128xf32> -> vector<8x128xf32>
    %cst_98 = arith.constant 5.000000e-01 : f32
    %267 = vector.broadcast %cst_98 : f32 to vector<8x128xf32>
    %268 = arith.mulf %267, %266 : vector<8x128xf32>
    %269 = arith.mulf %266, %266 : vector<8x128xf32>
    %270 = arith.mulf %269, %266 : vector<8x128xf32>
    %cst_99 = arith.constant 4.471500e-02 : f32
    %271 = vector.broadcast %cst_99 : f32 to vector<8x128xf32>
    %272 = arith.mulf %271, %270 : vector<8x128xf32>
    %273 = arith.addf %266, %272 : vector<8x128xf32>
    %cst_100 = arith.constant 0.797884583 : f32
    %274 = vector.broadcast %cst_100 : f32 to vector<8x128xf32>
    %275 = arith.mulf %274, %273 : vector<8x128xf32>
    %276 = math.tanh %275 : vector<8x128xf32>
    %cst_101 = arith.constant 1.000000e+00 : f32
    %277 = vector.broadcast %cst_101 : f32 to vector<8x128xf32>
    %278 = arith.addf %277, %276 : vector<8x128xf32>
    %279 = arith.mulf %268, %278 : vector<8x128xf32>
    %280 = arith.addf %279, %167 : vector<8x128xf32>
    %c8 = arith.constant 8 : index
    %c0_102 = arith.constant 0 : index
    %281 = vector.load %arg5[%c8, %c0_102] : memref<25x768xf32, #tpu.memory_space<vmem>>, vector<1x128xf32>
    %c9 = arith.constant 9 : index
    %c0_103 = arith.constant 0 : index
    %282 = vector.load %arg5[%c9, %c0_103] : memref<25x768xf32, #tpu.memory_space<vmem>>, vector<1x128xf32>
    %cst_104 = arith.constant dense<0.000000e+00> : vector<8xf32>
    %283 = vector.multi_reduction <add>, %223, %cst_104 [1] : vector<8x128xf32> to vector<8xf32>
    %284 = vector.shape_cast %283 : vector<8xf32> to vector<8x1xf32>
    %cst_105 = arith.constant 1.280000e+02 : f32
    %285 = vector.broadcast %cst_105 : f32 to vector<8x1xf32>
    %286 = arith.divf %284, %285 : vector<8x1xf32>
    %287 = vector.broadcast %286 : vector<8x1xf32> to vector<8x128xf32>
    %288 = arith.subf %223, %287 : vector<8x128xf32>
    %289 = arith.mulf %288, %288 : vector<8x128xf32>
    %cst_106 = arith.constant dense<0.000000e+00> : vector<8xf32>
    %290 = vector.multi_reduction <add>, %289, %cst_106 [1] : vector<8x128xf32> to vector<8xf32>
    %291 = vector.shape_cast %290 : vector<8xf32> to vector<8x1xf32>
    %cst_107 = arith.constant 1.280000e+02 : f32
    %292 = vector.broadcast %cst_107 : f32 to vector<8x1xf32>
    %293 = arith.divf %291, %292 : vector<8x1xf32>
    %294 = vector.broadcast %286 : vector<8x1xf32> to vector<8x128xf32>
    %295 = arith.subf %223, %294 : vector<8x128xf32>
    %cst_108 = arith.constant 9.99999974E-6 : f32
    %296 = vector.broadcast %cst_108 : f32 to vector<8x1xf32>
    %297 = arith.addf %293, %296 : vector<8x1xf32>
    %298 = math.rsqrt %297 : vector<8x1xf32>
    %299 = vector.broadcast %298 : vector<8x1xf32> to vector<8x128xf32>
    %300 = arith.mulf %295, %299 : vector<8x128xf32>
    %301 = vector.broadcast %281 : vector<1x128xf32> to vector<8x128xf32>
    %302 = arith.mulf %300, %301 : vector<8x128xf32>
    %303 = vector.broadcast %282 : vector<1x128xf32> to vector<8x128xf32>
    %304 = arith.addf %302, %303 : vector<8x128xf32>
    %c2176 = arith.constant 2176 : index
    %c0_109 = arith.constant 0 : index
    %305 = vector.load %arg1[%c2176, %c0_109] : memref<3072x256xbf16, #tpu.memory_space<vmem>>, vector<128x256xbf16>
    %306 = arith.truncf %304 : vector<8x128xf32> to vector<8x128xbf16>
    %cst_110 = arith.constant dense<0.000000e+00> : vector<8x256xf32>
    %307 = tpu.matmul %306, %305, %cst_110 {dimension_numbers = #tpu.dot_dimension_numbers<[1], [0], [0], [1], [0, 0, 1, 1], [], []>} : vector<8x128xbf16>, vector<128x256xbf16>, vector<8x256xf32> -> vector<8x256xf32>
    %cst_111 = arith.constant 5.000000e-01 : f32
    %308 = vector.broadcast %cst_111 : f32 to vector<8x256xf32>
    %309 = arith.mulf %308, %307 : vector<8x256xf32>
    %310 = arith.mulf %307, %307 : vector<8x256xf32>
    %311 = arith.mulf %310, %307 : vector<8x256xf32>
    %cst_112 = arith.constant 4.471500e-02 : f32
    %312 = vector.broadcast %cst_112 : f32 to vector<8x256xf32>
    %313 = arith.mulf %312, %311 : vector<8x256xf32>
    %314 = arith.addf %307, %313 : vector<8x256xf32>
    %cst_113 = arith.constant 0.797884583 : f32
    %315 = vector.broadcast %cst_113 : f32 to vector<8x256xf32>
    %316 = arith.mulf %315, %314 : vector<8x256xf32>
    %317 = math.tanh %316 : vector<8x256xf32>
    %cst_114 = arith.constant 1.000000e+00 : f32
    %318 = vector.broadcast %cst_114 : f32 to vector<8x256xf32>
    %319 = arith.addf %318, %317 : vector<8x256xf32>
    %320 = arith.mulf %309, %319 : vector<8x256xf32>
    %c1024 = arith.constant 1024 : index
    %c0_115 = arith.constant 0 : index
    %321 = vector.load %arg2[%c1024, %c0_115] : memref<1664x128xbf16, #tpu.memory_space<vmem>>, vector<256x128xbf16>
    %322 = arith.truncf %320 : vector<8x256xf32> to vector<8x256xbf16>
    %cst_116 = arith.constant dense<0.000000e+00> : vector<8x128xf32>
    %323 = tpu.matmul %322, %321, %cst_116 {dimension_numbers = #tpu.dot_dimension_numbers<[1], [0], [0], [1], [0, 0, 1, 1], [], []>} : vector<8x256xbf16>, vector<256x128xbf16>, vector<8x128xf32> -> vector<8x128xf32>
    %cst_117 = arith.constant 5.000000e-01 : f32
    %324 = vector.broadcast %cst_117 : f32 to vector<8x128xf32>
    %325 = arith.mulf %324, %323 : vector<8x128xf32>
    %326 = arith.mulf %323, %323 : vector<8x128xf32>
    %327 = arith.mulf %326, %323 : vector<8x128xf32>
    %cst_118 = arith.constant 4.471500e-02 : f32
    %328 = vector.broadcast %cst_118 : f32 to vector<8x128xf32>
    %329 = arith.mulf %328, %327 : vector<8x128xf32>
    %330 = arith.addf %323, %329 : vector<8x128xf32>
    %cst_119 = arith.constant 0.797884583 : f32
    %331 = vector.broadcast %cst_119 : f32 to vector<8x128xf32>
    %332 = arith.mulf %331, %330 : vector<8x128xf32>
    %333 = math.tanh %332 : vector<8x128xf32>
    %cst_120 = arith.constant 1.000000e+00 : f32
    %334 = vector.broadcast %cst_120 : f32 to vector<8x128xf32>
    %335 = arith.addf %334, %333 : vector<8x128xf32>
    %336 = arith.mulf %325, %335 : vector<8x128xf32>
    %337 = arith.addf %336, %223 : vector<8x128xf32>
    %338 = tpu.concatenate %280, %337 in 1 : vector<8x128xf32>, vector<8x128xf32> -> vector<8x256xf32>
    %c2560 = arith.constant 2560 : index
    %c0_121 = arith.constant 0 : index
    %339 = vector.load %arg1[%c2560, %c0_121] : memref<3072x256xbf16, #tpu.memory_space<vmem>>, vector<256x256xbf16>
    %340 = arith.truncf %338 : vector<8x256xf32> to vector<8x256xbf16>
    %cst_122 = arith.constant dense<0.000000e+00> : vector<8x256xf32>
    %341 = tpu.matmul %340, %339, %cst_122 {dimension_numbers = #tpu.dot_dimension_numbers<[1], [0], [0], [1], [0, 0, 1, 1], [], []>} : vector<8x256xbf16>, vector<256x256xbf16>, vector<8x256xf32> -> vector<8x256xf32>
    %c13 = arith.constant 13 : index
    %c0_123 = arith.constant 0 : index
    %342 = vector.load %arg5[%c13, %c0_123] : memref<25x768xf32, #tpu.memory_space<vmem>>, vector<1x256xf32>
    %343 = vector.broadcast %342 : vector<1x256xf32> to vector<8x256xf32>
    %344 = arith.addf %341, %343 : vector<8x256xf32>
    %345 = vector.extract_strided_slice %344 {offsets = [0, 0], sizes = [8, 128], strides = [1, 1]} : vector<8x256xf32> to vector<8x128xf32>
    %346 = vector.extract_strided_slice %344 {offsets = [0, 128], sizes = [8, 128], strides = [1, 1]} : vector<8x256xf32> to vector<8x128xf32>
    %cst_124 = arith.constant 5.000000e-01 : f32
    %347 = vector.broadcast %cst_124 : f32 to vector<8x128xf32>
    %348 = arith.mulf %347, %346 : vector<8x128xf32>
    %349 = arith.mulf %346, %346 : vector<8x128xf32>
    %350 = arith.mulf %349, %346 : vector<8x128xf32>
    %cst_125 = arith.constant 4.471500e-02 : f32
    %351 = vector.broadcast %cst_125 : f32 to vector<8x128xf32>
    %352 = arith.mulf %351, %350 : vector<8x128xf32>
    %353 = arith.addf %346, %352 : vector<8x128xf32>
    %cst_126 = arith.constant 0.797884583 : f32
    %354 = vector.broadcast %cst_126 : f32 to vector<8x128xf32>
    %355 = arith.mulf %354, %353 : vector<8x128xf32>
    %356 = math.tanh %355 : vector<8x128xf32>
    %cst_127 = arith.constant 1.000000e+00 : f32
    %357 = vector.broadcast %cst_127 : f32 to vector<8x128xf32>
    %358 = arith.addf %357, %356 : vector<8x128xf32>
    %359 = arith.mulf %348, %358 : vector<8x128xf32>
    %c64_i32_128 = arith.constant 64 : i32
    %360 = tpu.dynamic_rotate %345 by %c64_i32_128 dim 1 : vector<8x128xf32>, i32 -> vector<8x128xf32>
    %361 = arith.mulf %345, %360 : vector<8x128xf32>
    %c1408 = arith.constant 1408 : index
    %c0_129 = arith.constant 0 : index
    %362 = vector.load %arg2[%c1408, %c0_129] : memref<1664x128xbf16, #tpu.memory_space<vmem>>, vector<128x128xbf16>
    %363 = arith.truncf %361 : vector<8x128xf32> to vector<8x128xbf16>
    %cst_130 = arith.constant dense<0.000000e+00> : vector<8x128xf32>
    %364 = tpu.matmul %363, %362, %cst_130 {dimension_numbers = #tpu.dot_dimension_numbers<[1], [0], [0], [1], [0, 0, 1, 1], [], []>} : vector<8x128xbf16>, vector<128x128xbf16>, vector<8x128xf32> -> vector<8x128xf32>
    %c14 = arith.constant 14 : index
    %c0_131 = arith.constant 0 : index
    %365 = vector.load %arg5[%c14, %c0_131] : memref<25x768xf32, #tpu.memory_space<vmem>>, vector<1x128xf32>
    %366 = vector.broadcast %365 : vector<1x128xf32> to vector<8x128xf32>
    %367 = arith.addf %364, %366 : vector<8x128xf32>
    %c2944 = arith.constant 2944 : index
    %c0_132 = arith.constant 0 : index
    %368 = vector.load %arg1[%c2944, %c0_132] : memref<3072x256xbf16, #tpu.memory_space<vmem>>, vector<128x256xbf16>
    %369 = arith.truncf %359 : vector<8x128xf32> to vector<8x128xbf16>
    %cst_133 = arith.constant dense<0.000000e+00> : vector<8x256xf32>
    %370 = tpu.matmul %369, %368, %cst_133 {dimension_numbers = #tpu.dot_dimension_numbers<[1], [0], [0], [1], [0, 0, 1, 1], [], []>} : vector<8x128xbf16>, vector<128x256xbf16>, vector<8x256xf32> -> vector<8x256xf32>
    %c15 = arith.constant 15 : index
    %c0_134 = arith.constant 0 : index
    %371 = vector.load %arg5[%c15, %c0_134] : memref<25x768xf32, #tpu.memory_space<vmem>>, vector<1x256xf32>
    %372 = vector.broadcast %371 : vector<1x256xf32> to vector<8x256xf32>
    %373 = arith.addf %370, %372 : vector<8x256xf32>
    %cst_135 = arith.constant 5.000000e-01 : f32
    %374 = vector.broadcast %cst_135 : f32 to vector<8x256xf32>
    %375 = arith.mulf %374, %373 : vector<8x256xf32>
    %376 = arith.mulf %373, %373 : vector<8x256xf32>
    %377 = arith.mulf %376, %373 : vector<8x256xf32>
    %cst_136 = arith.constant 4.471500e-02 : f32
    %378 = vector.broadcast %cst_136 : f32 to vector<8x256xf32>
    %379 = arith.mulf %378, %377 : vector<8x256xf32>
    %380 = arith.addf %373, %379 : vector<8x256xf32>
    %cst_137 = arith.constant 0.797884583 : f32
    %381 = vector.broadcast %cst_137 : f32 to vector<8x256xf32>
    %382 = arith.mulf %381, %380 : vector<8x256xf32>
    %383 = math.tanh %382 : vector<8x256xf32>
    %cst_138 = arith.constant 1.000000e+00 : f32
    %384 = vector.broadcast %cst_138 : f32 to vector<8x256xf32>
    %385 = arith.addf %384, %383 : vector<8x256xf32>
    %386 = arith.mulf %375, %385 : vector<8x256xf32>
    %387 = vector.extract_strided_slice %386 {offsets = [0, 0], sizes = [8, 128], strides = [1, 1]} : vector<8x256xf32> to vector<8x128xf32>
    %388 = vector.extract_strided_slice %386 {offsets = [0, 128], sizes = [8, 128], strides = [1, 1]} : vector<8x256xf32> to vector<8x128xf32>
    %389 = arith.addf %387, %388 : vector<8x128xf32>
    %390 = arith.addf %367, %389 : vector<8x128xf32>
    %c1536 = arith.constant 1536 : index
    %c0_139 = arith.constant 0 : index
    %391 = vector.load %arg2[%c1536, %c0_139] : memref<1664x128xbf16, #tpu.memory_space<vmem>>, vector<128x128xbf16>
    %392 = arith.truncf %390 : vector<8x128xf32> to vector<8x128xbf16>
    %cst_140 = arith.constant dense<0.000000e+00> : vector<8x128xf32>
    %393 = tpu.matmul %392, %391, %cst_140 {dimension_numbers = #tpu.dot_dimension_numbers<[1], [0], [0], [1], [0, 0, 1, 1], [], []>} : vector<8x128xbf16>, vector<128x128xbf16>, vector<8x128xf32> -> vector<8x128xf32>
    %c16 = arith.constant 16 : index
    %c0_141 = arith.constant 0 : index
    %394 = vector.load %arg5[%c16, %c0_141] : memref<25x768xf32, #tpu.memory_space<vmem>>, vector<1x128xf32>
    %395 = vector.broadcast %394 : vector<1x128xf32> to vector<8x128xf32>
    %396 = arith.addf %393, %395 : vector<8x128xf32>
    %397 = arith.negf %396 : vector<8x128xf32>
    %398 = math.exp %397 : vector<8x128xf32>
    %cst_142 = arith.constant 1.000000e+00 : f32
    %399 = vector.broadcast %cst_142 : f32 to vector<8x128xf32>
    %400 = arith.addf %399, %398 : vector<8x128xf32>
    %401 = arith.divf %399, %400 : vector<8x128xf32>
    %402 = arith.mulf %401, %390 : vector<8x128xf32>
    %c17 = arith.constant 17 : index
    %c0_143 = arith.constant 0 : index
    %403 = vector.load %arg5[%c17, %c0_143] : memref<25x768xf32, #tpu.memory_space<vmem>>, vector<1x128xf32>
    %c18 = arith.constant 18 : index
    %c0_144 = arith.constant 0 : index
    %404 = vector.load %arg5[%c18, %c0_144] : memref<25x768xf32, #tpu.memory_space<vmem>>, vector<1x128xf32>
    %cst_145 = arith.constant dense<0.000000e+00> : vector<8xf32>
    %405 = vector.multi_reduction <add>, %402, %cst_145 [1] : vector<8x128xf32> to vector<8xf32>
    %406 = vector.shape_cast %405 : vector<8xf32> to vector<8x1xf32>
    %cst_146 = arith.constant 1.280000e+02 : f32
    %407 = vector.broadcast %cst_146 : f32 to vector<8x1xf32>
    %408 = arith.divf %406, %407 : vector<8x1xf32>
    %409 = vector.broadcast %408 : vector<8x1xf32> to vector<8x128xf32>
    %410 = arith.subf %402, %409 : vector<8x128xf32>
    %411 = arith.mulf %410, %410 : vector<8x128xf32>
    %cst_147 = arith.constant dense<0.000000e+00> : vector<8xf32>
    %412 = vector.multi_reduction <add>, %411, %cst_147 [1] : vector<8x128xf32> to vector<8xf32>
    %413 = vector.shape_cast %412 : vector<8xf32> to vector<8x1xf32>
    %cst_148 = arith.constant 1.280000e+02 : f32
    %414 = vector.broadcast %cst_148 : f32 to vector<8x1xf32>
    %415 = arith.divf %413, %414 : vector<8x1xf32>
    %416 = vector.broadcast %408 : vector<8x1xf32> to vector<8x128xf32>
    %417 = arith.subf %402, %416 : vector<8x128xf32>
    %cst_149 = arith.constant 9.99999974E-6 : f32
    %418 = vector.broadcast %cst_149 : f32 to vector<8x1xf32>
    %419 = arith.addf %415, %418 : vector<8x1xf32>
    %420 = math.rsqrt %419 : vector<8x1xf32>
    %421 = vector.broadcast %420 : vector<8x1xf32> to vector<8x128xf32>
    %422 = arith.mulf %417, %421 : vector<8x128xf32>
    %423 = vector.broadcast %403 : vector<1x128xf32> to vector<8x128xf32>
    %424 = arith.mulf %422, %423 : vector<8x128xf32>
    %425 = vector.broadcast %404 : vector<1x128xf32> to vector<8x128xf32>
    %426 = arith.addf %424, %425 : vector<8x128xf32>
    %c19 = arith.constant 19 : index
    %c0_150 = arith.constant 0 : index
    %427 = vector.load %arg5[%c19, %c0_150] : memref<25x768xf32, #tpu.memory_space<vmem>>, vector<1x128xf32>
    %c20 = arith.constant 20 : index
    %c0_151 = arith.constant 0 : index
    %428 = vector.load %arg5[%c20, %c0_151] : memref<25x768xf32, #tpu.memory_space<vmem>>, vector<1x128xf32>
    %cst_152 = arith.constant dense<0.000000e+00> : vector<8xf32>
    %429 = vector.multi_reduction <add>, %388, %cst_152 [1] : vector<8x128xf32> to vector<8xf32>
    %430 = vector.shape_cast %429 : vector<8xf32> to vector<8x1xf32>
    %cst_153 = arith.constant 1.280000e+02 : f32
    %431 = vector.broadcast %cst_153 : f32 to vector<8x1xf32>
    %432 = arith.divf %430, %431 : vector<8x1xf32>
    %433 = vector.broadcast %432 : vector<8x1xf32> to vector<8x128xf32>
    %434 = arith.subf %388, %433 : vector<8x128xf32>
    %435 = arith.mulf %434, %434 : vector<8x128xf32>
    %cst_154 = arith.constant dense<0.000000e+00> : vector<8xf32>
    %436 = vector.multi_reduction <add>, %435, %cst_154 [1] : vector<8x128xf32> to vector<8xf32>
    %437 = vector.shape_cast %436 : vector<8xf32> to vector<8x1xf32>
    %cst_155 = arith.constant 1.280000e+02 : f32
    %438 = vector.broadcast %cst_155 : f32 to vector<8x1xf32>
    %439 = arith.divf %437, %438 : vector<8x1xf32>
    %440 = vector.broadcast %432 : vector<8x1xf32> to vector<8x128xf32>
    %441 = arith.subf %388, %440 : vector<8x128xf32>
    %cst_156 = arith.constant 9.99999974E-6 : f32
    %442 = vector.broadcast %cst_156 : f32 to vector<8x1xf32>
    %443 = arith.addf %439, %442 : vector<8x1xf32>
    %444 = math.rsqrt %443 : vector<8x1xf32>
    %445 = vector.broadcast %444 : vector<8x1xf32> to vector<8x128xf32>
    %446 = arith.mulf %441, %445 : vector<8x128xf32>
    %447 = vector.broadcast %427 : vector<1x128xf32> to vector<8x128xf32>
    %448 = arith.mulf %446, %447 : vector<8x128xf32>
    %449 = vector.broadcast %428 : vector<1x128xf32> to vector<8x128xf32>
    %450 = arith.addf %448, %449 : vector<8x128xf32>
    %c21 = arith.constant 21 : index
    %c0_157 = arith.constant 0 : index
    %451 = vector.load %arg5[%c21, %c0_157] : memref<25x768xf32, #tpu.memory_space<vmem>>, vector<1x128xf32>
    %c22 = arith.constant 22 : index
    %c0_158 = arith.constant 0 : index
    %452 = vector.load %arg5[%c22, %c0_158] : memref<25x768xf32, #tpu.memory_space<vmem>>, vector<1x128xf32>
    %cst_159 = arith.constant dense<0.000000e+00> : vector<8xf32>
    %453 = vector.multi_reduction <add>, %387, %cst_159 [1] : vector<8x128xf32> to vector<8xf32>
    %454 = vector.shape_cast %453 : vector<8xf32> to vector<8x1xf32>
    %cst_160 = arith.constant 1.280000e+02 : f32
    %455 = vector.broadcast %cst_160 : f32 to vector<8x1xf32>
    %456 = arith.divf %454, %455 : vector<8x1xf32>
    %457 = vector.broadcast %456 : vector<8x1xf32> to vector<8x128xf32>
    %458 = arith.subf %387, %457 : vector<8x128xf32>
    %459 = arith.mulf %458, %458 : vector<8x128xf32>
    %cst_161 = arith.constant dense<0.000000e+00> : vector<8xf32>
    %460 = vector.multi_reduction <add>, %459, %cst_161 [1] : vector<8x128xf32> to vector<8xf32>
    %461 = vector.shape_cast %460 : vector<8xf32> to vector<8x1xf32>
    %cst_162 = arith.constant 1.280000e+02 : f32
    %462 = vector.broadcast %cst_162 : f32 to vector<8x1xf32>
    %463 = arith.divf %461, %462 : vector<8x1xf32>
    %464 = vector.broadcast %456 : vector<8x1xf32> to vector<8x128xf32>
    %465 = arith.subf %387, %464 : vector<8x128xf32>
    %cst_163 = arith.constant 9.99999974E-6 : f32
    %466 = vector.broadcast %cst_163 : f32 to vector<8x1xf32>
    %467 = arith.addf %463, %466 : vector<8x1xf32>
    %468 = math.rsqrt %467 : vector<8x1xf32>
    %469 = vector.broadcast %468 : vector<8x1xf32> to vector<8x128xf32>
    %470 = arith.mulf %465, %469 : vector<8x128xf32>
    %471 = vector.broadcast %451 : vector<1x128xf32> to vector<8x128xf32>
    %472 = arith.mulf %470, %471 : vector<8x128xf32>
    %473 = vector.broadcast %452 : vector<1x128xf32> to vector<8x128xf32>
    %474 = arith.addf %472, %473 : vector<8x128xf32>
    %475 = tpu.concatenate %426, %450, %474 in 1 : vector<8x128xf32>, vector<8x128xf32>, vector<8x128xf32> -> vector<8x384xf32>
    %c0_164 = arith.constant 0 : index
    %c0_165 = arith.constant 0 : index
    %476 = vector.load %arg3[%c0_164, %c0_165] : memref<384x384xbf16, #tpu.memory_space<vmem>>, vector<384x384xbf16>
    %477 = arith.truncf %475 : vector<8x384xf32> to vector<8x384xbf16>
    %cst_166 = arith.constant dense<0.000000e+00> : vector<8x384xf32>
    %478 = tpu.matmul %477, %476, %cst_166 {dimension_numbers = #tpu.dot_dimension_numbers<[1], [0], [0], [1], [0, 0, 1, 1], [], []>} : vector<8x384xbf16>, vector<384x384xbf16>, vector<8x384xf32> -> vector<8x384xf32>
    %c23 = arith.constant 23 : index
    %c0_167 = arith.constant 0 : index
    %479 = vector.load %arg5[%c23, %c0_167] : memref<25x768xf32, #tpu.memory_space<vmem>>, vector<1x384xf32>
    %480 = vector.broadcast %479 : vector<1x384xf32> to vector<8x384xf32>
    %481 = arith.addf %478, %480 : vector<8x384xf32>
    %cst_168 = arith.constant 5.000000e-01 : f32
    %482 = vector.broadcast %cst_168 : f32 to vector<8x384xf32>
    %483 = arith.mulf %482, %481 : vector<8x384xf32>
    %484 = arith.mulf %481, %481 : vector<8x384xf32>
    %485 = arith.mulf %484, %481 : vector<8x384xf32>
    %cst_169 = arith.constant 4.471500e-02 : f32
    %486 = vector.broadcast %cst_169 : f32 to vector<8x384xf32>
    %487 = arith.mulf %486, %485 : vector<8x384xf32>
    %488 = arith.addf %481, %487 : vector<8x384xf32>
    %cst_170 = arith.constant 0.797884583 : f32
    %489 = vector.broadcast %cst_170 : f32 to vector<8x384xf32>
    %490 = arith.mulf %489, %488 : vector<8x384xf32>
    %491 = math.tanh %490 : vector<8x384xf32>
    %cst_171 = arith.constant 1.000000e+00 : f32
    %492 = vector.broadcast %cst_171 : f32 to vector<8x384xf32>
    %493 = arith.addf %492, %491 : vector<8x384xf32>
    %494 = arith.mulf %483, %493 : vector<8x384xf32>
    %c0_172 = arith.constant 0 : index
    %c0_173 = arith.constant 0 : index
    %495 = vector.load %arg4[%c0_172, %c0_173] : memref<384x12xbf16, #tpu.memory_space<vmem>>, vector<384x12xbf16>
    %496 = arith.truncf %494 : vector<8x384xf32> to vector<8x384xbf16>
    %cst_174 = arith.constant dense<0.000000e+00> : vector<8x12xf32>
    %497 = tpu.matmul %496, %495, %cst_174 {dimension_numbers = #tpu.dot_dimension_numbers<[1], [0], [0], [1], [0, 0, 1, 1], [], []>} : vector<8x384xbf16>, vector<384x12xbf16>, vector<8x12xf32> -> vector<8x12xf32>
    %c24 = arith.constant 24 : index
    %c0_175 = arith.constant 0 : index
    %498 = vector.load %arg5[%c24, %c0_175] : memref<25x768xf32, #tpu.memory_space<vmem>>, vector<1x12xf32>
    %499 = vector.broadcast %498 : vector<1x12xf32> to vector<8x12xf32>
    %500 = arith.addf %497, %499 : vector<8x12xf32>
    %c0_176 = arith.constant 0 : index
    %c0_177 = arith.constant 0 : index
    %501 = vector.load %arg6[%c0_176, %c0_177] : memref<8x12xf32, #tpu.memory_space<vmem>>, vector<8x12xf32>
    tpu.vector_store %arg6[%c0_176, %c0_177], %500 {strides = array<i32>} : memref<8x12xf32, #tpu.memory_space<vmem>>, vector<8x12xf32>,
    return
  }
}

</mosaic_0001>

<bundles_post_ra>
// kernel: sarcasm_forward.1
= control target key start
LH: loop header
LB: loop body
LE: loop exit
PB: predicated region body
PF: predicated region fallthrough
CT: control target
= control target key end

     0   :  { %11 = vsyncpa [#allocation3], 0  ;;  %s8260_s0 = inlined_call_operand.vmem [shape: f32[8,2048], index: 0, kind: input, shape index: {}]   ;;  %s8261_s1 = inlined_call_operand.hbm [shape: bf16[3072,256], index: 1, kind: input, shape index: {}]   ;;  %s8262_s2 = inlined_call_operand.hbm [shape: bf16[1664,128], index: 2, kind: input, shape index: {}]   ;;  %s8263_s3 = inlined_call_operand.hbm [shape: bf16[384,384], index: 3, kind: input, shape index: {}]   ;;  %s8264_s4 = inlined_call_operand.vmem [shape: bf16[384,12], index: 4, kind: input, shape index: {}]   ;;  %s8265_s5 = inlined_call_operand.hbm [shape: f32[25,768], index: 5, kind: input, shape index: {}]   ;;  %s8266_s6 = inlined_call_operand.vmem [shape: f32[8,12], index: 6, kind: output, shape index: {}]  }
   0x1   :  { %12 = vsyncpa [#allocation5], 0 }
   0x2   :  { %13 = vsyncpa [#allocation8], 0  ;;  %s7685_s21 = smov [#allocation4]   ;;  %s7591_s25 = scalar_lea.hbm %s8262_s2, 13312 }
   0x3   :  { %s33_s22 = sshll.u32 %s7685_s21, 4  ;;  %p7592_p0 = scmp.ne.s32.totalorder %s8262_s2, %s7591_s25  ;;  %s34_s22 = int_to_ptr.vmem [resolvable:$true] %s33_s22 }
   0x4   :  { %p7595_p1 = scmp.lt.u32.totalorder %s7591_s25, %s8262_s2 }
   0x6   :  { %p7597_p2 = pnand %p7595_p1, %p7592_p0 }
   0x8   :  { %7600 = shalt.err (!%p7597_p2)
}
   0x9   :  { %s7601_s30 = scalar_lea.vmem %s34_s22, 13312  ;;  %p7606_p4 = scmp.lt.s32.totalorder %s34_s22, %s34_s22 }
   0xa   :  { %p7602_p3 = scmp.ne.s32.totalorder %s34_s22, %s7601_s30  ;;  %p7607_p5 = scmp.lt.s32.totalorder %s7601_s30, %s7601_s30 }
   0xc   :  { %p7608_p6 = por %p7607_p5, %p7606_p4 }
   0xe   :  { %p7609_p7 = pnand %p7608_p6, %p7602_p3 }
  0x10   :  { %7612 = shalt.err (!%p7609_p7)
}
  0x11   :  { %s7686_s7 = smov 64   ;;  %s7687_s8 = smov 4  }
  0x12   :  { %39 = dma.hbm_to_vmem [thread:$0]  %s8262_s2, 13312, %s34_s22, [#allocation5], %s7686_s7, %s7686_s7, %s7687_s8  }
  0x13   :  { %s7688_s11 = smov [#allocation2]   ;;  %s7613_s15 = scalar_lea.hbm %s8261_s1, 49152 }
  0x14   :  { %s21_s12 = sshll.u32 %s7688_s11, 4  ;;  %p7614_p8 = scmp.ne.s32.totalorder %s8261_s1, %s7613_s15  ;;  %s22_s12 = int_to_ptr.vmem [resolvable:$true] %s21_s12 }
  0x15   :  { %p7617_p9 = scmp.lt.u32.totalorder %s7613_s15, %s8261_s1 }
  0x17   :  { %p7619_p10 = pnand %p7617_p9, %p7614_p8 }
  0x19   :  { %7622 = shalt.err (!%p7619_p10)
}
  0x1a   :  { %s7623_s20 = scalar_lea.vmem %s22_s12, 49152  ;;  %p7628_p12 = scmp.lt.s32.totalorder %s22_s12, %s22_s12 }
  0x1b   :  { %p7624_p11 = scmp.ne.s32.totalorder %s22_s12, %s7623_s20  ;;  %p7629_p13 = scmp.lt.s32.totalorder %s7623_s20, %s7623_s20 }
  0x1d   :  { %p7630_p0 = por %p7629_p13, %p7628_p12 }
  0x1f   :  { %p7631_p1 = pnand %p7630_p0, %p7624_p11 }
  0x21   :  { %7634 = shalt.err (!%p7631_p1)
}
  0x22   :  { %s7689_s2 = smov 128   ;;  %s7690_s21 = smov 8  }
  0x23   :  { %27 = dma.hbm_to_vmem [thread:$0]  %s8261_s1, 49152, %s22_s12, [#allocation3], %s7689_s2, %s7689_s2, %s7690_s21  }
  0x24   :  { %s7691_s24 = smov [#allocation6]   ;;  %s7635_s28 = scalar_lea.hbm %s8263_s3, 9216 }
  0x25   :  { %s45_s25 = sshll.u32 %s7691_s24, 4  ;;  %p7636_p2 = scmp.ne.s32.totalorder %s8263_s3, %s7635_s28  ;;  %s46_s25 = int_to_ptr.vmem [resolvable:$true] %s45_s25 }
  0x26   :  { %p7639_p3 = scmp.lt.u32.totalorder %s7635_s28, %s8263_s3 }
  0x28   :  { %p7641_p4 = pnand %p7639_p3, %p7636_p2 }
  0x2a   :  { %7644 = shalt.err (!%p7641_p4)
}
  0x2b   :  { %s7645_s10 = scalar_lea.vmem %s46_s25, 9216  ;;  %p7650_p6 = scmp.lt.s32.totalorder %s46_s25, %s46_s25 }
  0x2c   :  { %p7646_p5 = scmp.ne.s32.totalorder %s46_s25, %s7645_s10  ;;  %p7651_p7 = scmp.lt.s32.totalorder %s7645_s10, %s7645_s10 }
  0x2e   :  { %p7652_p8 = por %p7651_p7, %p7650_p6 }
  0x30   :  { %p7653_p9 = pnand %p7652_p8, %p7646_p5 }
  0x32   :  { %7656 = shalt.err (!%p7653_p9)
}
  0x33   :  { %s7692_s1 = smov 192   ;;  %s7693_s11 = smov 12  }
  0x34   :  { %51 = dma.hbm_to_vmem [thread:$0]  %s8263_s3, 9216, %s46_s25, [#allocation5], %s7692_s1, %s7692_s1, %s7693_s11  }
  0x35   :  { %s7694_s14 = smov [#allocation7]   ;;  %s7657_s18 = scalar_lea.hbm %s8265_s5, 3072 }
  0x36   :  { %s59_s15 = sshll.u32 %s7694_s14, 4  ;;  %p7658_p10 = scmp.ne.s32.totalorder %s8265_s5, %s7657_s18  ;;  %s60_s15 = int_to_ptr.vmem [resolvable:$true] %s59_s15 }
  0x37   :  { %p7661_p11 = scmp.lt.u32.totalorder %s7657_s18, %s8265_s5 }
  0x39   :  { %p7663_p12 = pnand %p7661_p11, %p7658_p10 }
  0x3b   :  { %7666 = shalt.err (!%p7663_p12)
}
  0x3c   :  { %s7667_s22 = scalar_lea.vmem %s60_s15, 3072  ;;  %p7672_p0 = scmp.lt.s32.totalorder %s60_s15, %s60_s15 }
  0x3d   :  { %p7668_p13 = scmp.ne.s32.totalorder %s60_s15, %s7667_s22  ;;  %p7673_p1 = scmp.lt.s32.totalorder %s7667_s22, %s7667_s22 }
  0x3f   :  { %p7674_p2 = por %p7673_p1, %p7672_p0 }
  0x41   :  { %p7675_p3 = pnand %p7674_p2, %p7668_p13 }
  0x43   :  { %7678 = shalt.err (!%p7675_p3)
}
  0x44   :  { %s7695_s3 = smov 768   ;;  %s7696_s23 = smov 48  }
  0x45   :  { %65 = dma.hbm_to_vmem [thread:$0]  %s8265_s5, 3072, %s60_s15, [#allocation8], %s7695_s3, %s7695_s3, %s7696_s23  }
  0x46   :  { %7679 = dma.done.wait [#allocation3], 49152  }
  0x47   :  { %7680 = vsyncadd [#allocation3], 4294918144 }
  0x48   :  { %7681 = dma.done.wait [#allocation5], 22528  }
  0x49   :  { %7682 = vsyncadd [#allocation5], 4294944768 }
  0x4a   :  { %7683 = dma.done.wait [#allocation8], 3072  }
  0x4b   :  { %7684 = vsyncadd [#allocation8], 4294964224  ;;  %v7788_v0 = vld [vmem:[%s8260_s0] sm:$0xff]  ;;  %v7793_v1 = vld [vmem:[%s8260_s0 + $0x8] sm:$0xff]  ;;  %vm7698_vm0 = vmmov 0   ;;  %vm5784_vm1 = vcmask 97280  }
  0x4c   :  { %v7798_v2 = vld [vmem:[%s8260_s0 + $0x10] sm:$0xff]  ;;  %v7803_v3 = vld [vmem:[%s8260_s0 + $0x18] sm:$0xff]  ;;  %v102_v4 = vadd.f32 %v7793_v1, %v7788_v0  ;;  %v7810_v5 = vld [vmem:[%s8260_s0 + $0x20] sm:$0xff] }
  0x4d   :  { %v84_v7 = vld [vmem:[%s8260_s0 + $0x28] sm:$0xff]  ;;  %v6721_v13 = vld [vmem:[#allocation2 + $0x14] ss:$8 sps:$4 sm:$0xff]   ;;  %v6723_v16 = vld [vmem:[#allocation2 + $0x10] ss:$8 sps:$4 sm:$0xff]  }
  0x4e   :  { %v103_v6 = vadd.f32 %v102_v4, %v7798_v2  ;;  %v6718_v11 = vld [vmem:[#allocation2 + $0x4] ss:$8 sps:$4 sm:$0xff]   ;;  %v6720_v12 = vld [vmem:[#allocation2] ss:$8 sps:$4 sm:$0xff]   ;;  %v85_v14 = vld [vmem:[%s8260_s0 + $0x30] sm:$0xff] }
  0x4f   :  { %795 = vmatprep.subr.bf16.mxu0 %v6718_v11  ;;  %v86_v15 = vld [vmem:[%s8260_s0 + $0x38] sm:$0xff]  ;;  %v87_v17 = vld [vmem:[%s8260_s0 + $0x40] sm:$0xff]  ;;  %v88_v20 = vld [vmem:[%s8260_s0 + $0x48] sm:$0xff] }
  0x50   :  { %v104_v8 = vadd.f32 %v103_v6, %v7803_v3  ;;  %796 = vmatpush1.bf16.msra.mxu0 %v6720_v12  ;;  %v1119_v18 = vadd.f32 %v86_v15, %v85_v14  ;;  %v6724_v19 = vld [vmem:[#allocation2 + $0x24] ss:$8 sps:$4 sm:$0xff]   ;;  %v6726_v22 = vld [vmem:[#allocation2 + $0x20] ss:$8 sps:$4 sm:$0xff]   ;;  %v6727_v24 = vld [vmem:[#allocation2 + $0x34] ss:$8 sps:$4 sm:$0xff]  }
  0x51   :  { %797 = vmatprep.subr.bf16.mxu0 %v6721_v13  ;;  %v6729_v25 = vld [vmem:[#allocation2 + $0x30] ss:$8 sps:$4 sm:$0xff]   ;;  %v6730_v26 = vld [vmem:[#allocation2 + $0x44] ss:$8 sps:$4 sm:$0xff]   ;;  %v6732_v27 = vld [vmem:[#allocation2 + $0x40] ss:$8 sps:$4 sm:$0xff]  }
  0x52   :  { %v105_v9 = vadd.f32 %v104_v8, %v7810_v5  ;;  %v1120_v21 = vadd.f32 %v1119_v18, %v87_v17  ;;  %v6733_v28 = vld [vmem:[#allocation2 + $0x54] ss:$8 sps:$4 sm:$0xff]   ;;  %v6735_v29 = vld [vmem:[#allocation2 + $0x50] ss:$8 sps:$4 sm:$0xff]   ;;  %v6736_v30 = vld [vmem:[#allocation2 + $0x64] ss:$8 sps:$4 sm:$0xff]  }
  0x53   :  { %v6738_v31 = vld [vmem:[#allocation2 + $0x60] ss:$8 sps:$4 sm:$0xff]   ;;  %v6739_v32 = vld [vmem:[#allocation2 + $0x74] ss:$8 sps:$4 sm:$0xff]   ;;  %v6741_v33 = vld [vmem:[#allocation2 + $0x70] ss:$8 sps:$4 sm:$0xff]  }
  0x54   :  { %v106_v10 = vadd.f32 %v105_v9, %v84_v7  ;;  %798 = vmatpush1.bf16.msra.mxu0 %v6723_v16  ;;  %v1121_v23 = vadd.f32 %v1120_v21, %v88_v20  ;;  %v6742_v34 = vld [vmem:[#allocation2 + $0x84] ss:$8 sps:$4 sm:$0xff]   ;;  %v6744_v35 = vld [vmem:[#allocation2 + $0x80] ss:$8 sps:$4 sm:$0xff]   ;;  %v6745_v36 = vld [vmem:[#allocation2 + $0x94] ss:$8 sps:$4 sm:$0xff]  }
  0x55   :  { %799 = vmatprep.subr.bf16.mxu0 %v6724_v19  ;;  %v6747_v37 = vld [vmem:[#allocation2 + $0x90] ss:$8 sps:$4 sm:$0xff]   ;;  %v6748_v38 = vld [vmem:[#allocation2 + $0xa4] ss:$8 sps:$4 sm:$0xff]   ;;  %v6750_v59 = vld [vmem:[#allocation2 + $0xa0] ss:$8 sps:$4 sm:$0xff]  }
  0x56   :  { %107 = vadd.xlane.f32.xlu0 %v106_v10  ;;  %1122 = vadd.xlane.f32.xlu1 %v1121_v23  ;;  %v7586_v50 = vld [vmem:[%s8260_s0 + $0x28] sm:$0xff]  ;;  %v6751_v60 = vld [vmem:[#allocation2 + $0xb4] ss:$8 sps:$4 sm:$0xff]   ;;  %v6753_v61 = vld [vmem:[#allocation2 + $0xb0] ss:$8 sps:$4 sm:$0xff]  }
  0x57   :  { %v6754_v62 = vld [vmem:[#allocation2 + $0xc4] ss:$8 sps:$4 sm:$0xff]   ;;  %v6756_v63 = vld [vmem:[#allocation2 + $0xc0] ss:$8 sps:$4 sm:$0xff]   ;;  %v6763_v4 = vld [vmem:[#allocation2 + $0xf4] ss:$8 sps:$4 sm:$0xff]  }
  0x58   :  { %800 = vmatpush1.bf16.msra.mxu0 %v6726_v22  ;;  %v6768_v6 = vld [vmem:[#allocation2 + $0x104] ss:$8 sps:$4 sm:$0xff]   ;;  %v7587_v9 = vld [vmem:[%s8260_s0 + $0x30] sm:$0xff]  ;;  %v7588_v11 = vld [vmem:[%s8260_s0 + $0x38] sm:$0xff] }
  0x59   :  { %801 = vmatprep.subr.bf16.mxu0 %v6727_v24  ;;  %v7589_v13 = vld [vmem:[%s8260_s0 + $0x40] sm:$0xff]  ;;  %v7590_v17 = vld [vmem:[%s8260_s0 + $0x48] sm:$0xff] }
  0x5c   :  { %802 = vmatpush1.bf16.msra.mxu0 %v6729_v25 }
  0x5d   :  { %803 = vmatprep.subr.bf16.mxu0 %v6730_v26  ;;  %v140_v26 = vlaneseq }
  0x60   :  { %804 = vmatpush1.bf16.msra.mxu0 %v6732_v27 }
  0x61   :  { %805 = vmatprep.subr.bf16.mxu0 %v6733_v28  ;;  %v141_v28 = vshrl.u32 %v140_v26, 7  ;;  %v6783_v26 = vld [vmem:[#allocation2 + $0x154] ss:$8 sps:$4 sm:$0xff]  }
  0x64   :  { %806 = vmatpush1.bf16.msra.mxu0 %v6735_v29  ;;  %v95_v29 = vld [vmem:[#allocation7] ss:$8 sm:$0xf] }
  0x65   :  { %807 = vmatprep.subr.bf16.mxu0 %v6736_v30  ;;  %v96_v30 = vld [vmem:[#allocation7] ss:$8 sm:$0x30] }
  0x68   :  { %808 = vmatpush1.bf16.msra.mxu0 %v6738_v31  ;;  %v99_v31 = vld [vmem:[#allocation7 + $0x1] ss:$8 sm:$0xf] }
  0x69   :  { %809 = vmatprep.subr.bf16.mxu0 %v6739_v32  ;;  %v100_v32 = vld [vmem:[#allocation7 + $0x1] ss:$8 sm:$0x30] }
  0x6c   :  { %810 = vmatpush1.bf16.msra.mxu0 %v6741_v33  ;;  %v97_v33 = vor.u32 %v96_v30, %v95_v29  ;;  %v6784_v29 = vld [vmem:[#allocation2 + $0x160] ss:$8 sps:$4 sm:$0xff]   ;;  %v6789_v30 = vld [vmem:[#allocation2 + $0x174] ss:$8 sps:$4 sm:$0xff]  }
  0x6d   :  { %811 = vmatprep.subr.bf16.mxu0 %v6742_v34  ;;  %v7890_v34 = vsub.s32 1, %v141_v28 }
  0x70   :  { %812 = vmatpush1.bf16.msra.mxu0 %v6744_v35  ;;  %v7892_v35 = vsub.s32 0, %v141_v28 }
  0x71   :  { %813 = vmatprep.subr.bf16.mxu0 %v6745_v36  ;;  %v101_v36 = vor.u32 %v100_v32, %v99_v31  ;;  %v6787_v31 = vld [vmem:[#allocation2 + $0x170] ss:$8 sps:$4 sm:$0xff]   ;;  %v6792_v32 = vld [vmem:[#allocation2 + $0x184] ss:$8 sps:$4 sm:$0xff]  }
  0x74   :  { %814 = vmatpush1.bf16.msra.mxu0 %v6747_v37  ;;  %v7894_v37 = vsub.s32 3, %v141_v28 }
  0x75   :  { %815 = vmatprep.subr.bf16.mxu0 %v6748_v38  ;;  %v7896_v38 = vsub.s32 2, %v141_v28 }
  0x78   :  { %816 = vmatpush1.bf16.msra.mxu0 %v6750_v59 }
  0x79   :  { %817 = vmatprep.subr.bf16.mxu0 %v6751_v60 }
  0x7c   :  { %818 = vmatpush1.bf16.msra.mxu0 %v6753_v61 }
  0x7d   :  { %819 = vmatprep.subr.bf16.mxu0 %v6754_v62 }
  0x80   :  { %820 = vmatpush1.bf16.msra.mxu0 %v6756_v63 }
  0xe3   :  { %v108_v39 = vpop.xlane.xlu0 %107  ;;  %v1123_v7 = vpop.xlane.xlu1 %1122 }
  0xe4   :  { %v110_v40 = vmul.f32 0.0013020834, %v108_v39  ;;  %v1125_v8 = vmul.f32 0.001953125, %v1123_v7  ;;  %v7898_v39 = vsub.s32 5, %v141_v28 }
  0xe6   :  { %v7831_v41 = vsub.f32 %v7788_v0, %v110_v40  ;;  %v7834_v42 = vsub.f32 %v7793_v1, %v110_v40  ;;  %v7837_v43 = vsub.f32 %v7798_v2, %v110_v40  ;;  %v7840_v44 = vsub.f32 %v7803_v3, %v110_v40  ;;  %v6757_v0 = vld [vmem:[#allocation2 + $0xd4] ss:$8 sps:$4 sm:$0xff]   ;;  %v6759_v1 = vld [vmem:[#allocation2 + $0xd0] ss:$8 sps:$4 sm:$0xff]   ;;  %v6760_v2 = vld [vmem:[#allocation2 + $0xe4] ss:$8 sps:$4 sm:$0xff]  }
  0xe7   :  { %v7847_v47 = vsub.f32 %v7810_v5, %v110_v40  ;;  %v7854_v51 = vsub.f32 %v7586_v50, %v110_v40  ;;  %821 = vmatprep.subr.bf16.mxu0 %v6757_v0  ;;  %v6762_v3 = vld [vmem:[#allocation2 + $0xe0] ss:$8 sps:$4 sm:$0xff]   ;;  %v6765_v5 = vld [vmem:[#allocation2 + $0xf0] ss:$8 sps:$4 sm:$0xff]   ;;  %v7865_v10 = vsub.f32 %v7587_v9, %v1125_v8  ;;  %v7870_v12 = vsub.f32 %v7588_v11, %v1125_v8 }
  0xe8   :  { %v117_v45 = vmul.f32 %v7831_v41, %v7831_v41  ;;  %v118_v46 = vmul.f32 %v7834_v42, %v7834_v42  ;;  %v119_v48 = vmul.f32 %v7837_v43, %v7837_v43  ;;  %v120_v52 = vmul.f32 %v7840_v44, %v7840_v44  ;;  %822 = vmatpush1.bf16.msra.mxu0 %v6759_v1  ;;  %v6766_v11 = vld [vmem:[#allocation2 + $0x100] ss:$8 sps:$4 sm:$0xff]  }
  0xe9   :  { %v121_v54 = vmul.f32 %v7847_v47, %v7847_v47  ;;  %v122_v56 = vmul.f32 %v7854_v51, %v7854_v51  ;;  %823 = vmatprep.subr.bf16.mxu0 %v6760_v2  ;;  %v7875_v14 = vsub.f32 %v7589_v13, %v1125_v8  ;;  %v1130_v15 = vmul.f32 %v7865_v10, %v7865_v10  ;;  %v6771_v13 = vld [vmem:[#allocation2 + $0x114] ss:$8 sps:$4 sm:$0xff]  }
  0xea   :  { %v123_v49 = vadd.f32 %v118_v46, %v117_v45  ;;  %v1131_v16 = vmul.f32 %v7870_v12, %v7870_v12  ;;  %v7884_v18 = vsub.f32 %v7590_v17, %v1125_v8  ;;  %v7900_v40 = vsub.s32 4, %v141_v28  ;;  %v6863_v17 = vld [vmem:[#allocation4] sm:$0xff]  }
  0xeb   :  { %v1132_v19 = vmul.f32 %v7875_v14, %v7875_v14  ;;  %v147_v45 = vrot.slane %v97_v33, %v7890_v34  ;;  %v143_v46 = vrot.slane %v97_v33, %v7892_v35  ;;  %v151_v50 = vrot.slane %v97_v33, %v7896_v38  ;;  %v6786_v28 = vld [vmem:[#allocation2 + $0x164] ss:$8 sps:$4 sm:$0xff]  }
  0xec   :  { %v124_v53 = vadd.f32 %v123_v49, %v119_v48  ;;  %824 = vmatpush1.bf16.msra.mxu0 %v6762_v3  ;;  %v1134_v20 = vadd.f32 %v1131_v16, %v1130_v15  ;;  %v1133_v21 = vmul.f32 %v7884_v18, %v7884_v18  ;;  %v184_v48 = vrot.slane %v101_v36, %v7890_v34  ;;  %v6862_v16 = vld [vmem:[#allocation4 + $0x40] sm:$0xff]  }
  0xed   :  { %825 = vmatprep.subr.bf16.mxu0 %v6763_v4  ;;  %v155_v49 = vrot.slane %v97_v33, %v7894_v37  ;;  %v200_v63 = vrot.slane %v101_v36, %v7898_v39  ;;  %v196_v1 = vrot.slane %v101_v36, %v7900_v40  ;;  %6378 = vmatprep.subr.bf16.mxu1 %v6862_v16  ;;  %v6846_v16 = vld [vmem:[#allocation2 + $0x2a4] ss:$8 sps:$4 sm:$0xff]  }
  0xee   :  { %v125_v55 = vadd.f32 %v124_v53, %v120_v52  ;;  %v1135_v22 = vadd.f32 %v1134_v20, %v1132_v19  ;;  %v163_v52 = vrot.slane %v97_v33, %v7898_v39  ;;  %v6769_v19 = vld [vmem:[#allocation2 + $0x110] ss:$8 sps:$4 sm:$0xff]   ;;  %v6774_v20 = vld [vmem:[#allocation2 + $0x124] ss:$8 sps:$4 sm:$0xff]   ;;  %6379 = vmatpush3.bf16.msra.mxu1 %v6863_v17  ;;  %v6844_v17 = vld [vmem:[#allocation2 + $0x2a0] ss:$8 sps:$4 sm:$0xff]  }
  0xf0   :  { %v126_v57 = vadd.f32 %v125_v55, %v121_v54  ;;  %826 = vmatpush1.bf16.msra.mxu0 %v6765_v5  ;;  %v1136_v23 = vadd.f32 %v1135_v22, %v1133_v21  ;;  %v180_v54 = vrot.slane %v101_v36, %v7892_v35  ;;  %v192_v55 = vrot.slane %v101_v36, %v7894_v37  ;;  %v6772_v21 = vld [vmem:[#allocation2 + $0x120] ss:$8 sps:$4 sm:$0xff]   ;;  %v6777_v22 = vld [vmem:[#allocation2 + $0x134] ss:$8 sps:$4 sm:$0xff]  }
  0xf1   :  { %836 = vmatprep.subr.bf16.mxu0 %v6768_v6 }
  0xf2   :  { %v127_v58 = vadd.f32 %v126_v57, %v122_v56  ;;  %1137 = vadd.xlane.f32.xlu1 %v1136_v23  ;;  %v188_v56 = vrot.slane %v101_v36, %v7896_v38  ;;  %v159_v57 = vrot.slane %v97_v33, %v7900_v40  ;;  %v6775_v23 = vld [vmem:[#allocation2 + $0x130] ss:$8 sps:$4 sm:$0xff]   ;;  %v6790_v33 = vld [vmem:[#allocation2 + $0x180] ss:$8 sps:$4 sm:$0xff]   ;;  %v6795_v36 = vld [vmem:[#allocation2 + $0x194] ss:$8 sps:$4 sm:$0xff]  }
  0xf4   :  { %128 = vadd.xlane.f32.xlu0 %v127_v58 }
 0x181   :  { %v129_v24 = vpop.xlane.xlu0 %128 }
 0x182   :  { %v130_v25 = vmul.f32 0.0013020834, %v129_v24  ;;  %v6780_v24 = vld [vmem:[#allocation2 + $0x144] ss:$8 sps:$4 sm:$0xff]  }
 0x184   :  { %v131_v27 = vadd.f32 1e-05, %v130_v25  ;;  %v6778_v25 = vld [vmem:[#allocation2 + $0x140] ss:$8 sps:$4 sm:$0xff]  }
 0x186   :  { %7518 = vrsqrt.f32 %v131_v27  ;;  %v6781_v27 = vld [vmem:[#allocation2 + $0x150] ss:$8 sps:$4 sm:$0xff]  }
 0x190   :  { %v7519_v53 = vpop.eup %7518 }
 0x191   :  { %v134_v58 = vmul.f32 %v7519_v53, %v7834_v42  ;;  %v133_v59 = vmul.f32 %v7519_v53, %v7831_v41  ;;  %v136_v60 = vmul.f32 %v7519_v53, %v7840_v44  ;;  %v135_v61 = vmul.f32 %v7519_v53, %v7837_v43 }
 0x192   :  { %v138_v62 = vmul.f32 %v7519_v53, %v7854_v51  ;;  %v137_v0 = vmul.f32 %v7519_v53, %v7847_v47  ;;  %v6802_v53 = vld [vmem:[#allocation2 + $0x1c0] ss:$8 sps:$4 sm:$0xff]  }
 0x193   :  { %v171_v2 = vmul.f32 %v147_v45, %v134_v58  ;;  %v170_v3 = vmul.f32 %v143_v46, %v133_v59  ;;  %v173_v4 = vmul.f32 %v155_v49, %v136_v60  ;;  %v172_v5 = vmul.f32 %v151_v50, %v135_v61  ;;  %v6793_v45 = vld [vmem:[#allocation2 + $0x190] ss:$8 sps:$4 sm:$0xff]   ;;  %v6798_v46 = vld [vmem:[#allocation2 + $0x1a4] ss:$8 sps:$4 sm:$0xff]   ;;  %v6801_v49 = vld [vmem:[#allocation2 + $0x1b4] ss:$8 sps:$4 sm:$0xff]  }
 0x194   :  { %v175_v6 = vmul.f32 %v163_v52, %v138_v62  ;;  %v174_v42 = vmul.f32 %v159_v57, %v137_v0  ;;  %v6799_v50 = vld [vmem:[#allocation2 + $0x1b0] ss:$8 sps:$4 sm:$0xff]   ;;  %v6804_v52 = vld [vmem:[#allocation2 + $0x1c4] ss:$8 sps:$4 sm:$0xff]   ;;  %v6808_v57 = vld [vmem:[#allocation2 + $0x1e0] ss:$8 sps:$4 sm:$0xff]  }
 0x195   :  { %v208_v7 = vadd.f32 %v184_v48, %v171_v2  ;;  %v207_v41 = vadd.f32 %v180_v54, %v170_v3  ;;  %v210_v8 = vadd.f32 %v192_v55, %v173_v4  ;;  %v7920_v44 = vadd.f32 %v188_v56, %v172_v5  ;;  %v6796_v48 = vld [vmem:[#allocation2 + $0x1a0] ss:$8 sps:$4 sm:$0xff]   ;;  %v6807_v54 = vld [vmem:[#allocation2 + $0x1d4] ss:$8 sps:$4 sm:$0xff]   ;;  %v6805_v55 = vld [vmem:[#allocation2 + $0x1d0] ss:$8 sps:$4 sm:$0xff]  }
 0x196   :  { %v7922_v43 = vadd.f32 %v200_v63, %v175_v6  ;;  %v7924_v51 = vadd.f32 %v196_v1, %v174_v42  ;;  %v6810_v56 = vld [vmem:[#allocation2 + $0x1e4] ss:$8 sps:$4 sm:$0xff]   ;;  %v6813_v58 = vld [vmem:[#allocation2 + $0x1f4] ss:$8 sps:$4 sm:$0xff]   ;;  %v6811_v59 = vld [vmem:[#allocation2 + $0x1f0] ss:$8 sps:$4 sm:$0xff]  }
 0x197   :  { %v310_v9 = vpack.c.bf16 %v208_v7, %v208_v7  ;;  %v309_v47 = vpack.c.bf16 %v207_v41, %v207_v41  ;;  %v312_v15 = vpack.c.bf16 %v210_v8, %v210_v8  ;;  %v6816_v60 = vld [vmem:[#allocation2 + $0x204] ss:$8 sps:$4 sm:$0xff]   ;;  %v6814_v61 = vld [vmem:[#allocation2 + $0x200] ss:$8 sps:$4 sm:$0xff]   ;;  %v311_v62 = vpack.c.bf16 %v7920_v44, %v7920_v44  ;;  %v6819_v63 = vld [vmem:[#allocation2 + $0x214] ss:$8 sps:$4 sm:$0xff]  }
 0x198   :  { %v314_v0 = vpack.c.bf16 %v7922_v43, %v7922_v43  ;;  %v6817_v1 = vld [vmem:[#allocation2 + $0x210] ss:$8 sps:$4 sm:$0xff]   ;;  %v6822_v2 = vld [vmem:[#allocation2 + $0x224] ss:$8 sps:$4 sm:$0xff]   ;;  %v6820_v3 = vld [vmem:[#allocation2 + $0x220] ss:$8 sps:$4 sm:$0xff]  }
 0x199   :  { %827 = vmatprep.mubr.bf16.mxu0 %v310_v9  ;;  %v6825_v4 = vld [vmem:[#allocation2 + $0x234] ss:$8 sps:$4 sm:$0xff]   ;;  %v6823_v5 = vld [vmem:[#allocation2 + $0x230] ss:$8 sps:$4 sm:$0xff]   ;;  %v6828_v6 = vld [vmem:[#allocation2 + $0x244] ss:$8 sps:$4 sm:$0xff]  }
 0x19a   :  { %828 = vmatmul.mubr.bf16.vlgmr.msra.gmra.mrb[0].mxu0 %v309_v47  ;;  %v6826_v42 = vld [vmem:[#allocation2 + $0x240] ss:$8 sps:$4 sm:$0xff]   ;;  %v6831_v7 = vld [vmem:[#allocation2 + $0x254] ss:$8 sps:$4 sm:$0xff]   ;;  %v6829_v41 = vld [vmem:[#allocation2 + $0x250] ss:$8 sps:$4 sm:$0xff]  }
 0x19b   :  { %837 = vmatpush1.bf16.msra.mxu0 %v6766_v11  ;;  %868 = vmatprep.mubr.bf16.mxu0 %v312_v15  ;;  %v6834_v8 = vld [vmem:[#allocation2 + $0x264] ss:$8 sps:$4 sm:$0xff]   ;;  %v6832_v44 = vld [vmem:[#allocation2 + $0x260] ss:$8 sps:$4 sm:$0xff]   ;;  %v6837_v43 = vld [vmem:[#allocation2 + $0x274] ss:$8 sps:$4 sm:$0xff]  }
 0x19c   :  { %838 = vmatprep.subr.bf16.mxu0 %v6771_v13  ;;  %v6835_v9 = vld [vmem:[#allocation2 + $0x270] ss:$8 sps:$4 sm:$0xff]   ;;  %v6840_v11 = vld [vmem:[#allocation2 + $0x284] ss:$8 sps:$4 sm:$0xff]   ;;  %v6838_v47 = vld [vmem:[#allocation2 + $0x280] ss:$8 sps:$4 sm:$0xff]  }
 0x19d   :  { %v6843_v13 = vld [vmem:[#allocation2 + $0x294] ss:$8 sps:$4 sm:$0xff]   ;;  %v6841_v15 = vld [vmem:[#allocation2 + $0x290] ss:$8 sps:$4 sm:$0xff]  }
 0x19f   :  { %839 = vmatpush1.bf16.msra.mxu0 %v6769_v19  ;;  %v6849_v19 = vld [vmem:[#allocation2 + $0x2b4] ss:$8 sps:$4 sm:$0xff]  }
 0x1a0   :  { %840 = vmatprep.subr.bf16.mxu0 %v6774_v20  ;;  %v6847_v20 = vld [vmem:[#allocation2 + $0x2b0] ss:$8 sps:$4 sm:$0xff]  }
 0x1a3   :  { %841 = vmatpush1.bf16.msra.mxu0 %v6772_v21  ;;  %v6852_v21 = vld [vmem:[#allocation2 + $0x2c4] ss:$8 sps:$4 sm:$0xff]  }
 0x1a4   :  { %842 = vmatprep.subr.bf16.mxu0 %v6777_v22  ;;  %v6850_v22 = vld [vmem:[#allocation2 + $0x2c0] ss:$8 sps:$4 sm:$0xff]  }
 0x1a7   :  { %843 = vmatpush1.bf16.msra.mxu0 %v6775_v23  ;;  %v6855_v23 = vld [vmem:[#allocation2 + $0x2d4] ss:$8 sps:$4 sm:$0xff]  }
 0x1a8   :  { %844 = vmatprep.subr.bf16.mxu0 %v6780_v24  ;;  %v6853_v24 = vld [vmem:[#allocation2 + $0x2d0] ss:$8 sps:$4 sm:$0xff]  }
 0x1ab   :  { %845 = vmatpush1.bf16.msra.mxu0 %v6778_v25  ;;  %v6858_v25 = vld [vmem:[#allocation2 + $0x2e4] ss:$8 sps:$4 sm:$0xff]  }
 0x1ac   :  { %846 = vmatprep.subr.bf16.mxu0 %v6783_v26  ;;  %v1138_v26 = vpop.xlane.xlu1 %1137 }
 0x1af   :  { %847 = vmatpush1.bf16.msra.mxu0 %v6781_v27  ;;  %v1139_v27 = vmul.f32 0.001953125, %v1138_v26 }
 0x1b0   :  { %848 = vmatprep.subr.bf16.mxu0 %v6786_v28  ;;  %v6856_v28 = vld [vmem:[#allocation2 + $0x2e0] ss:$8 sps:$4 sm:$0xff]  }
 0x1b3   :  { %849 = vmatpush1.bf16.msra.mxu0 %v6784_v29  ;;  %v6861_v29 = vld [vmem:[#allocation2 + $0x2f4] ss:$8 sps:$4 sm:$0xff]  }
 0x1b4   :  { %850 = vmatprep.subr.bf16.mxu0 %v6789_v30  ;;  %v1140_v30 = vadd.f32 1e-05, %v1139_v27 }
 0x1b6   :  { %7520 = vrsqrt.f32 %v1140_v30 }
 0x1b7   :  { %851 = vmatpush1.bf16.msra.mxu0 %v6787_v31  ;;  %v6859_v31 = vld [vmem:[#allocation2 + $0x2f0] ss:$8 sps:$4 sm:$0xff]  }
 0x1b8   :  { %852 = vmatprep.subr.bf16.mxu0 %v6792_v32  ;;  %v313_v32 = vpack.c.bf16 %v7924_v51, %v7924_v51 }
 0x1bb   :  { %853 = vmatpush1.bf16.msra.mxu0 %v6790_v33 }
 0x1bc   :  { %854 = vmatprep.subr.bf16.mxu0 %v6795_v36  ;;  %v7934_v36 = vld [vmem:[#allocation7 + $0x2] ss:$8 sm:$0xf] }
 0x1bf   :  { %855 = vmatpush1.bf16.msra.mxu0 %v6793_v45  ;;  %v7936_v45 = vld [vmem:[#allocation7 + $0x3] ss:$8 sm:$0xf] }
 0x1c0   :  { %856 = vmatprep.subr.bf16.mxu0 %v6798_v46  ;;  %v7932_v33 = vpop.eup %7520 }
 0x1c1   :  { %v1145_v46 = vmul.f32 %v7932_v33, %v7884_v18 }
 0x1c3   :  { %857 = vmatpush1.bf16.msra.mxu0 %v6796_v48  ;;  %v1162_v48 = vrot.slane %v7934_v36, %v7894_v37 }
 0x1c4   :  { %858 = vmatprep.subr.bf16.mxu0 %v6801_v49  ;;  %v1144_v49 = vmul.f32 %v7932_v33, %v7875_v14  ;;  %v6866_v14 = vld [vmem:[#allocation4 + $0x50] sm:$0xff]  }
 0x1c5   :  { %v1170_v51 = vmul.f32 %v1162_v48, %v1145_v46  ;;  %v6878_v46 = vld [vmem:[#allocation2 + $0x300] ss:$8 sps:$4 sm:$0xff]  }
 0x1c7   :  { %859 = vmatpush1.bf16.msra.mxu0 %v6799_v50  ;;  %v1158_v50 = vrot.slane %v7934_v36, %v7896_v38 }
 0x1c8   :  { %860 = vmatprep.subr.bf16.mxu0 %v6804_v52  ;;  %v1187_v52 = vrot.slane %v7936_v45, %v7894_v37 }
 0x1cb   :  { %861 = vmatpush1.bf16.msra.mxu0 %v6802_v53  ;;  %v1169_v53 = vmul.f32 %v1158_v50, %v1144_v49  ;;  %v6881_v50 = vld [vmem:[#allocation2 + $0x310] ss:$8 sps:$4 sm:$0xff]  }
 0x1cc   :  { %862 = vmatprep.subr.bf16.mxu0 %v6807_v54  ;;  %v1183_v54 = vrot.slane %v7936_v45, %v7896_v38 }
 0x1ce   :  { %v7952_v18 = vadd.f32 %v1183_v54, %v1169_v53  ;;  %v6889_v53 = vld [vmem:[#allocation2 + $0x334] ss:$8 sps:$4 sm:$0xff]   ;;  %v6887_v54 = vld [vmem:[#allocation2 + $0x330] ss:$8 sps:$4 sm:$0xff]  }
 0x1cf   :  { %863 = vmatpush1.bf16.msra.mxu0 %v6805_v55  ;;  %v7950_v55 = vadd.f32 %v1187_v52, %v1170_v51  ;;  %v6886_v51 = vld [vmem:[#allocation2 + $0x324] ss:$8 sps:$4 sm:$0xff]   ;;  %v6884_v52 = vld [vmem:[#allocation2 + $0x320] ss:$8 sps:$4 sm:$0xff]  }
 0x1d0   :  { %864 = vmatprep.subr.bf16.mxu0 %v6810_v56  ;;  %v6864_v56 = vld [vmem:[#allocation4 + $0x48] sm:$0xff]  }
 0x1d1   :  { %6380 = vmatprep.subr.bf16.mxu1 %v6864_v56  ;;  %v6892_v56 = vld [vmem:[#allocation2 + $0x344] ss:$8 sps:$4 sm:$0xff]  }
 0x1d3   :  { %865 = vmatpush1.bf16.msra.mxu0 %v6808_v57  ;;  %v6865_v57 = vld [vmem:[#allocation4 + $0x8] sm:$0xff]  }
 0x1d4   :  { %866 = vmatprep.subr.bf16.mxu0 %v6813_v58  ;;  %6381 = vmatpush3.bf16.msra.mxu1 %v6865_v57  ;;  %v6867_v58 = vld [vmem:[#allocation4 + $0x10] sm:$0xff]   ;;  %v6890_v57 = vld [vmem:[#allocation2 + $0x340] ss:$8 sps:$4 sm:$0xff]  }
 0x1d5   :  { %6382 = vmatprep.subr.bf16.mxu1 %v6866_v14  ;;  %v6895_v14 = vld [vmem:[#allocation2 + $0x354] ss:$8 sps:$4 sm:$0xff]  }
 0x1d7   :  { %867 = vmatpush1.bf16.msra.mxu0 %v6811_v59  ;;  %v6868_v59 = vld [vmem:[#allocation4 + $0x58] sm:$0xff]  }
 0x1d8   :  { %877 = vmatprep.subr.bf16.mxu0 %v6816_v60  ;;  %6383 = vmatpush3.bf16.msra.mxu1 %v6867_v58  ;;  %v6869_v60 = vld [vmem:[#allocation4 + $0x18] sm:$0xff]  }
 0x1d9   :  { %6384 = vmatprep.subr.bf16.mxu1 %v6868_v59  ;;  %v6893_v58 = vld [vmem:[#allocation2 + $0x350] ss:$8 sps:$4 sm:$0xff]   ;;  %v6898_v59 = vld [vmem:[#allocation2 + $0x364] ss:$8 sps:$4 sm:$0xff]  }
 0x1da   :  { %869 = vmatmul.mubr.bf16.vlgmr.msra.gmra.mrb[0].mxu0 %v311_v62  ;;  %v6871_v62 = vld [vmem:[#allocation4 + $0x20] sm:$0xff]  }
 0x1db   :  { %878 = vmatpush1.bf16.msra.mxu0 %v6814_v61  ;;  %909 = vmatprep.mubr.bf16.mxu0 %v314_v0  ;;  %v6870_v61 = vld [vmem:[#allocation4 + $0x60] sm:$0xff]   ;;  %v6873_v0 = vld [vmem:[#allocation4 + $0x28] sm:$0xff]  }
 0x1dc   :  { %879 = vmatprep.subr.bf16.mxu0 %v6819_v63  ;;  %6385 = vmatpush3.bf16.msra.mxu1 %v6869_v60  ;;  %v6872_v63 = vld [vmem:[#allocation4 + $0x68] sm:$0xff]  }
 0x1dd   :  { %6386 = vmatprep.subr.bf16.mxu1 %v6870_v61  ;;  %v6896_v60 = vld [vmem:[#allocation2 + $0x360] ss:$8 sps:$4 sm:$0xff]   ;;  %v6901_v61 = vld [vmem:[#allocation2 + $0x374] ss:$8 sps:$4 sm:$0xff]  }
 0x1df   :  { %880 = vmatpush1.bf16.msra.mxu0 %v6817_v1  ;;  %v6874_v1 = vld [vmem:[#allocation4 + $0x70] sm:$0xff]  }
 0x1e0   :  { %881 = vmatprep.subr.bf16.mxu0 %v6822_v2  ;;  %6387 = vmatpush3.bf16.msra.mxu1 %v6871_v62  ;;  %v6875_v2 = vld [vmem:[#allocation4 + $0x30] sm:$0xff]  }
 0x1e1   :  { %6388 = vmatprep.subr.bf16.mxu1 %v6872_v63  ;;  %v6899_v62 = vld [vmem:[#allocation2 + $0x370] ss:$8 sps:$4 sm:$0xff]   ;;  %v6904_v63 = vld [vmem:[#allocation2 + $0x384] ss:$8 sps:$4 sm:$0xff]  }
 0x1e3   :  { %882 = vmatpush1.bf16.msra.mxu0 %v6820_v3  ;;  %v6876_v3 = vld [vmem:[#allocation4 + $0x78] sm:$0xff]  }
 0x1e4   :  { %883 = vmatprep.subr.bf16.mxu0 %v6825_v4  ;;  %6389 = vmatpush3.bf16.msra.mxu1 %v6873_v0  ;;  %v6877_v4 = vld [vmem:[#allocation4 + $0x38] sm:$0xff]   ;;  %v6902_v0 = vld [vmem:[#allocation2 + $0x380] ss:$8 sps:$4 sm:$0xff]  }
 0x1e5   :  { %6390 = vmatprep.subr.bf16.mxu1 %v6874_v1  ;;  %v6907_v1 = vld [vmem:[#allocation2 + $0x394] ss:$8 sps:$4 sm:$0xff]  }
 0x1e7   :  { %884 = vmatpush1.bf16.msra.mxu0 %v6823_v5  ;;  %v6880_v5 = vld [vmem:[#allocation2 + $0x304] ss:$8 sps:$4 sm:$0xff]  }
 0x1e8   :  { %885 = vmatprep.subr.bf16.mxu0 %v6828_v6  ;;  %6391 = vmatpush3.bf16.msra.mxu1 %v6875_v2  ;;  %v6905_v2 = vld [vmem:[#allocation2 + $0x390] ss:$8 sps:$4 sm:$0xff]  }
 0x1e9   :  { %6392 = vmatprep.subr.bf16.mxu1 %v6876_v3  ;;  %v6910_v3 = vld [vmem:[#allocation2 + $0x3a4] ss:$8 sps:$4 sm:$0xff]  }
 0x1eb   :  { %886 = vmatpush1.bf16.msra.mxu0 %v6826_v42 }
 0x1ec   :  { %887 = vmatprep.subr.bf16.mxu0 %v6831_v7  ;;  %6393 = vmatpush3.bf16.msra.mxu1 %v6877_v4  ;;  %v6908_v4 = vld [vmem:[#allocation2 + $0x3a0] ss:$8 sps:$4 sm:$0xff]  }
 0x1ed   :  { %1584 = vmatprep.subr.bf16.mxu1 %v6880_v5  ;;  %v6913_v5 = vld [vmem:[#allocation2 + $0x3b4] ss:$8 sps:$4 sm:$0xff]  }
 0x1ef   :  { %888 = vmatpush1.bf16.msra.mxu0 %v6829_v41 }
 0x1f0   :  { %889 = vmatprep.subr.bf16.mxu0 %v6834_v8 }
 0x1f3   :  { %890 = vmatpush1.bf16.msra.mxu0 %v6832_v44 }
 0x1f4   :  { %891 = vmatprep.subr.bf16.mxu0 %v6837_v43 }
 0x1f7   :  { %892 = vmatpush1.bf16.msra.mxu0 %v6835_v9 }
 0x1f8   :  { %893 = vmatprep.subr.bf16.mxu0 %v6840_v11 }
 0x1fb   :  { %894 = vmatpush1.bf16.msra.mxu0 %v6838_v47 }
 0x1fc   :  { %895 = vmatprep.subr.bf16.mxu0 %v6843_v13 }
 0x1ff   :  { %896 = vmatpush1.bf16.msra.mxu0 %v6841_v15 }
 0x200   :  { %897 = vmatprep.subr.bf16.mxu0 %v6846_v16 }
 0x203   :  { %898 = vmatpush1.bf16.msra.mxu0 %v6844_v17 }
 0x204   :  { %899 = vmatprep.subr.bf16.mxu0 %v6849_v19  ;;  %v1143_v19 = vmul.f32 %v7932_v33, %v7870_v12  ;;  %v6883_v12 = vld [vmem:[#allocation2 + $0x314] ss:$8 sps:$4 sm:$0xff]  }
 0x207   :  { %900 = vmatpush1.bf16.msra.mxu0 %v6847_v20  ;;  %v1154_v20 = vrot.slane %v7934_v36, %v7890_v34 }
 0x208   :  { %901 = vmatprep.subr.bf16.mxu0 %v6852_v21 }
 0x20b   :  { %902 = vmatpush1.bf16.msra.mxu0 %v6850_v22  ;;  %v1168_v22 = vmul.f32 %v1154_v20, %v1143_v19  ;;  %v6928_v19 = vld [vmem:[#allocation2 + $0x404] ss:$8 sps:$4 sm:$0xff]   ;;  %v6926_v20 = vld [vmem:[#allocation2 + $0x400] ss:$8 sps:$4 sm:$0xff]  }
 0x20c   :  { %903 = vmatprep.subr.bf16.mxu0 %v6855_v23  ;;  %v1179_v23 = vrot.slane %v7936_v45, %v7890_v34 }
 0x20f   :  { %904 = vmatpush1.bf16.msra.mxu0 %v6853_v24 }
 0x210   :  { %905 = vmatprep.subr.bf16.mxu0 %v6858_v25 }
 0x213   :  { %906 = vmatpush1.bf16.msra.mxu0 %v6856_v28 }
 0x214   :  { %907 = vmatprep.subr.bf16.mxu0 %v6861_v29 }
 0x217   :  { %908 = vmatpush1.bf16.msra.mxu0 %v6859_v31  ;;  %v1193_v31 = vadd.f32 %v1179_v23, %v1168_v22  ;;  %v6934_v22 = vld [vmem:[#allocation2 + $0x424] ss:$8 sps:$4 sm:$0xff]   ;;  %v6937_v23 = vld [vmem:[#allocation2 + $0x434] ss:$8 sps:$4 sm:$0xff]  }
 0x219   :  { %v1261_v49 = vpack.c.bf16 %v1193_v31, %v1193_v31  ;;  %v6947_v31 = vld [vmem:[#allocation2 + $0x470] ss:$8 sps:$4 sm:$0xff]  }
 0x21a   :  { %910 = vmatmul.mubr.bf16.vlgmr.msra.gmra.mrb[0].mxu0 %v313_v32 }
 0x2ed   :  { %v911_v6 = vpop.f32.mrb[0].mxu0 }
 0x2ee   :  { %v920_v42 = vmul.f32 %v911_v6, %v911_v6  ;;  %v913_v7 = vpop.f32.mrb[1].mxu0  ;;  %v918_v25 = vmul.f32 0.5, %v911_v6 }
 0x2ef   :  { %v921_v41 = vmul.f32 %v913_v7, %v913_v7  ;;  %v915_v8 = vpop.f32.mrb[2].mxu0  ;;  %v919_v27 = vmul.f32 0.5, %v913_v7 }
 0x2f0   :  { %v922_v44 = vmul.f32 %v920_v42, %v911_v6  ;;  %v916_v43 = vpop.f32.mrb[3].mxu0  ;;  %v6916_v42 = vld [vmem:[#allocation2 + $0x3c4] ss:$8 sps:$4 sm:$0xff]   ;;  %v6917_v8 = vld [vmem:[#allocation2 + $0x3d0] ss:$8 sps:$4 sm:$0xff]  }
 0x2f1   :  { %v923_v9 = vmul.f32 %v921_v41, %v913_v7  ;;  %v6919_v41 = vld [vmem:[#allocation2 + $0x3d4] ss:$8 sps:$4 sm:$0xff]   ;;  %v1142_v43 = vmul.f32 %v7932_v33, %v7865_v10  ;;  %v1263_v33 = vpack.c.bf16 %v7950_v55, %v7950_v55  ;;  %v6941_v55 = vld [vmem:[#allocation2 + $0x450] ss:$8 sps:$4 sm:$0xff]  }
 0x2f2   :  { %v924_v11 = vmul.f32 0.044715, %v922_v44  ;;  %v6922_v44 = vld [vmem:[#allocation2 + $0x3e4] ss:$8 sps:$4 sm:$0xff]   ;;  %v6931_v10 = vld [vmem:[#allocation2 + $0x414] ss:$8 sps:$4 sm:$0xff]  }
 0x2f3   :  { %v925_v47 = vmul.f32 0.044715, %v923_v9  ;;  %v1150_v9 = vrot.slane %v7934_v36, %v7892_v35  ;;  %v6929_v36 = vld [vmem:[#allocation2 + $0x410] ss:$8 sps:$4 sm:$0xff]  }
 0x2f4   :  { %v926_v13 = vadd.f32 %v924_v11, %v911_v6  ;;  %v6911_v6 = vld [vmem:[#allocation2 + $0x3b0] ss:$8 sps:$4 sm:$0xff]   ;;  %v6920_v11 = vld [vmem:[#allocation2 + $0x3e0] ss:$8 sps:$4 sm:$0xff]  }
 0x2f5   :  { %v927_v15 = vadd.f32 %v925_v47, %v913_v7  ;;  %v6914_v7 = vld [vmem:[#allocation2 + $0x3c0] ss:$8 sps:$4 sm:$0xff]   ;;  %v6925_v47 = vld [vmem:[#allocation2 + $0x3f4] ss:$8 sps:$4 sm:$0xff]  }
 0x2f6   :  { %v928_v16 = vmul.f32 0.7978846, %v926_v13  ;;  %v1167_v13 = vmul.f32 %v1150_v9, %v1142_v43  ;;  %v7993_v9 = vld [vmem:[%s8260_s0 + $0x68] sm:$0xff] }
 0x2f7   :  { %v929_v17 = vmul.f32 0.7978846, %v927_v15  ;;  %v1175_v15 = vrot.slane %v7936_v45, %v7892_v35  ;;  %v6932_v45 = vld [vmem:[#allocation2 + $0x420] ss:$8 sps:$4 sm:$0xff]  }
 0x2f8   :  { %7522 = vtanh.f32 %v928_v16  ;;  %v6923_v16 = vld [vmem:[#allocation2 + $0x3f0] ss:$8 sps:$4 sm:$0xff]  }
 0x2f9   :  { %7524 = vtanh.f32 %v929_v17  ;;  %v1192_v17 = vadd.f32 %v1175_v15, %v1167_v13  ;;  %v7999_v13 = vld [vmem:[%s8260_s0 + $0x70] sm:$0xff]  ;;  %v6981_v15 = vld [vmem:[#allocation4 + $0x98] sm:$0xff]  }
 0x302   :  { %v7523_v21 = vpop.eup %7522 }
 0x303   :  { %v7525_v24 = vpop.eup %7524  ;;  %v932_v26 = vadd.f32 1.0, %v7523_v21  ;;  %v1260_v21 = vpack.c.bf16 %v1192_v17, %v1192_v17  ;;  %v8005_v17 = vld [vmem:[%s8260_s0 + $0x78] sm:$0xff] }
 0x304   :  { %v933_v28 = vadd.f32 1.0, %v7525_v24  ;;  %v6935_v24 = vld [vmem:[#allocation2 + $0x430] ss:$8 sps:$4 sm:$0xff]  }
 0x305   :  { %v934_v29 = vmul.f32 %v932_v26, %v918_v25  ;;  %v6940_v25 = vld [vmem:[#allocation2 + $0x444] ss:$8 sps:$4 sm:$0xff]   ;;  %v6938_v26 = vld [vmem:[#allocation2 + $0x440] ss:$8 sps:$4 sm:$0xff]  }
 0x306   :  { %v935_v30 = vmul.f32 %v933_v28, %v919_v27  ;;  %v6943_v27 = vld [vmem:[#allocation2 + $0x454] ss:$8 sps:$4 sm:$0xff]   ;;  %v6946_v28 = vld [vmem:[#allocation2 + $0x464] ss:$8 sps:$4 sm:$0xff]  }
 0x307   :  { %v968_v48 = vpack.c.bf16 %v934_v29, %v934_v29  ;;  %v6944_v29 = vld [vmem:[#allocation2 + $0x460] ss:$8 sps:$4 sm:$0xff]  }
 0x308   :  { %v969_v32 = vpack.c.bf16 %v935_v30, %v935_v30  ;;  %v6949_v30 = vld [vmem:[#allocation2 + $0x474] ss:$8 sps:$4 sm:$0xff]  }
 0x30a   :  { %1098 = vmatprep.mubr.bf16.mxu1 %v969_v32  ;;  %v6952_v32 = vld [vmem:[#allocation2 + $0x484] ss:$8 sps:$4 sm:$0xff]  }
 0x30b   :  { %1099 = vmatmul.mubr.bf16.vlgmr.msra.gmra.mrb[0].mxu1 %v968_v48  ;;  %v6955_v48 = vld [vmem:[#allocation2 + $0x494] ss:$8 sps:$4 sm:$0xff]  }
 0x30c   :  { %1585 = vmatpush1.bf16.msra.mxu1 %v6878_v46  ;;  %1616 = vmatprep.mubr.bf16.mxu1 %v1261_v49  ;;  %v6950_v46 = vld [vmem:[#allocation2 + $0x480] ss:$8 sps:$4 sm:$0xff]   ;;  %v6958_v49 = vld [vmem:[#allocation2 + $0x4a4] ss:$8 sps:$4 sm:$0xff]  }
 0x30d   :  { %1586 = vmatprep.subr.bf16.mxu1 %v6883_v12  ;;  %v6953_v12 = vld [vmem:[#allocation2 + $0x490] ss:$8 sps:$4 sm:$0xff]  }
 0x310   :  { %1587 = vmatpush1.bf16.msra.mxu1 %v6881_v50  ;;  %v6956_v50 = vld [vmem:[#allocation2 + $0x4a0] ss:$8 sps:$4 sm:$0xff]  }
 0x311   :  { %1588 = vmatprep.subr.bf16.mxu1 %v6886_v51  ;;  %v6961_v51 = vld [vmem:[#allocation2 + $0x4b4] ss:$8 sps:$4 sm:$0xff]  }
 0x314   :  { %1589 = vmatpush1.bf16.msra.mxu1 %v6884_v52  ;;  %v6959_v52 = vld [vmem:[#allocation2 + $0x4b0] ss:$8 sps:$4 sm:$0xff]  }
 0x315   :  { %1590 = vmatprep.subr.bf16.mxu1 %v6889_v53  ;;  %v6964_v53 = vld [vmem:[#allocation2 + $0x4c4] ss:$8 sps:$4 sm:$0xff]  }
 0x318   :  { %1591 = vmatpush1.bf16.msra.mxu1 %v6887_v54  ;;  %v6962_v54 = vld [vmem:[#allocation2 + $0x4c0] ss:$8 sps:$4 sm:$0xff]  }
 0x319   :  { %1592 = vmatprep.subr.bf16.mxu1 %v6892_v56  ;;  %v6967_v56 = vld [vmem:[#allocation2 + $0x4d4] ss:$8 sps:$4 sm:$0xff]  }
 0x31c   :  { %1593 = vmatpush1.bf16.msra.mxu1 %v6890_v57  ;;  %v6965_v57 = vld [vmem:[#allocation2 + $0x4d0] ss:$8 sps:$4 sm:$0xff]  }
 0x31d   :  { %1594 = vmatprep.subr.bf16.mxu1 %v6895_v14  ;;  %v6970_v14 = vld [vmem:[#allocation2 + $0x4e4] ss:$8 sps:$4 sm:$0xff]  }
 0x320   :  { %1595 = vmatpush1.bf16.msra.mxu1 %v6893_v58  ;;  %v6968_v58 = vld [vmem:[#allocation2 + $0x4e0] ss:$8 sps:$4 sm:$0xff]  }
 0x321   :  { %1596 = vmatprep.subr.bf16.mxu1 %v6898_v59  ;;  %v6973_v59 = vld [vmem:[#allocation2 + $0x4f4] ss:$8 sps:$4 sm:$0xff]  }
 0x324   :  { %1597 = vmatpush1.bf16.msra.mxu1 %v6896_v60  ;;  %v6971_v60 = vld [vmem:[#allocation2 + $0x4f0] ss:$8 sps:$4 sm:$0xff]  }
 0x325   :  { %1598 = vmatprep.subr.bf16.mxu1 %v6901_v61  ;;  %v6974_v61 = vld [vmem:[#allocation4 + $0xc0] sm:$0xff]  }
 0x328   :  { %1599 = vmatpush1.bf16.msra.mxu1 %v6899_v62  ;;  %v6975_v62 = vld [vmem:[#allocation4 + $0x80] sm:$0xff]  }
 0x329   :  { %1600 = vmatprep.subr.bf16.mxu1 %v6904_v63  ;;  %v1262_v63 = vpack.c.bf16 %v7952_v18, %v7952_v18  ;;  %v7980_v18 = vld [vmem:[%s8260_s0 + $0x58] sm:$0xff] }
 0x32c   :  { %1601 = vmatpush1.bf16.msra.mxu1 %v6902_v0 }
 0x32d   :  { %1602 = vmatprep.subr.bf16.mxu1 %v6907_v1  ;;  %v6976_v1 = vld [vmem:[#allocation4 + $0xc8] sm:$0xff]  }
 0x330   :  { %1603 = vmatpush1.bf16.msra.mxu1 %v6905_v2 }
 0x331   :  { %1604 = vmatprep.subr.bf16.mxu1 %v6910_v3  ;;  %v6977_v3 = vld [vmem:[#allocation4 + $0x88] sm:$0xff]  }
 0x334   :  { %1605 = vmatpush1.bf16.msra.mxu1 %v6908_v4 }
 0x335   :  { %1606 = vmatprep.subr.bf16.mxu1 %v6913_v5 }
 0x338   :  { %1607 = vmatpush1.bf16.msra.mxu1 %v6911_v6  ;;  %v7975_v6 = vld [vmem:[%s8260_s0 + $0x50] sm:$0xff] }
 0x339   :  { %1608 = vmatprep.subr.bf16.mxu1 %v6916_v42 }
 0x33c   :  { %1609 = vmatpush1.bf16.msra.mxu1 %v6914_v7  ;;  %v2408_v7 = vadd.f32 %v7980_v18, %v7975_v6 }
 0x33d   :  { %1610 = vmatprep.subr.bf16.mxu1 %v6919_v41  ;;  %v6978_v41 = vld [vmem:[#allocation4 + $0xd0] sm:$0xff]  }
 0x340   :  { %1611 = vmatpush1.bf16.msra.mxu1 %v6917_v8  ;;  %v7987_v8 = vld [vmem:[%s8260_s0 + $0x60] sm:$0xff] }
 0x341   :  { %1612 = vmatprep.subr.bf16.mxu1 %v6922_v44  ;;  %v6979_v44 = vld [vmem:[#allocation4 + $0x90] sm:$0xff]   ;;  %v2409_v43 = vadd.f32 %v2408_v7, %v7987_v8 }
 0x344   :  { %1613 = vmatpush1.bf16.msra.mxu1 %v6920_v11  ;;  %v2410_v11 = vadd.f32 %v2409_v43, %v7993_v9 }
 0x345   :  { %1614 = vmatprep.subr.bf16.mxu1 %v6925_v47  ;;  %v6980_v47 = vld [vmem:[#allocation4 + $0xd8] sm:$0xff]  }
 0x348   :  { %1615 = vmatpush1.bf16.msra.mxu1 %v6923_v16  ;;  %v2411_v16 = vadd.f32 %v2410_v11, %v7999_v13 }
 0x349   :  { %1625 = vmatprep.subr.bf16.mxu1 %v6928_v19 }
 0x34a   :  { %v2412_v19 = vadd.f32 %v2411_v16, %v8005_v17 }
 0x34b   :  { %1617 = vmatmul.mubr.bf16.vlgmr.msra.gmra.mrb[4].mxu1 %v1260_v21  ;;  %v6983_v21 = vld [vmem:[#allocation4 + $0xa0] sm:$0xff]  }
 0x34c   :  { %1626 = vmatpush1.bf16.msra.mxu1 %v6926_v20  ;;  %1657 = vmatprep.mubr.bf16.mxu1 %v1263_v33  ;;  %v6982_v20 = vld [vmem:[#allocation4 + $0xe0] sm:$0xff]   ;;  %v6985_v33 = vld [vmem:[#allocation4 + $0xa8] sm:$0xff]  }
 0x34d   :  { %1627 = vmatprep.subr.bf16.mxu1 %v6931_v10  ;;  %2413 = vadd.xlane.f32.xlu0 %v2412_v19  ;;  %v6984_v10 = vld [vmem:[#allocation4 + $0xe8] sm:$0xff]  }
 0x350   :  { %1628 = vmatpush1.bf16.msra.mxu1 %v6929_v36  ;;  %v6986_v36 = vld [vmem:[#allocation4 + $0xf0] sm:$0xff]  }
 0x351   :  { %1629 = vmatprep.subr.bf16.mxu1 %v6934_v22  ;;  %v6987_v22 = vld [vmem:[#allocation4 + $0xb0] sm:$0xff]  }
 0x354   :  { %1630 = vmatpush1.bf16.msra.mxu1 %v6932_v45  ;;  %v6988_v45 = vld [vmem:[#allocation4 + $0xf8] sm:$0xff]  }
 0x355   :  { %1631 = vmatprep.subr.bf16.mxu1 %v6937_v23  ;;  %v6989_v23 = vld [vmem:[#allocation4 + $0xb8] sm:$0xff]  }
 0x358   :  { %1632 = vmatpush1.bf16.msra.mxu1 %v6935_v24  ;;  %v6990_v24 = vld [vmem:[#allocation2 + $0x900] ss:$8 sps:$4 sm:$0xff]  }
 0x359   :  { %1633 = vmatprep.subr.bf16.mxu1 %v6940_v25  ;;  %v6992_v25 = vld [vmem:[#allocation2 + $0x904] ss:$8 sps:$4 sm:$0xff]  }
 0x35a   :  { %2070 = vmatprep.subr.bf16.mxu0 %v6992_v25 }
 0x35b   :  { %2071 = vmatpush1.bf16.msra.mxu0 %v6990_v24 }
 0x35c   :  { %1634 = vmatpush1.bf16.msra.mxu1 %v6938_v26  ;;  %v6995_v26 = vld [vmem:[#allocation2 + $0x914] ss:$8 sps:$4 sm:$0xff]  }
 0x35d   :  { %1635 = vmatprep.subr.bf16.mxu1 %v6943_v27  ;;  %v6993_v27 = vld [vmem:[#allocation2 + $0x910] ss:$8 sps:$4 sm:$0xff]   ;;  %2072 = vmatprep.subr.bf16.mxu0 %v6995_v26 }
 0x35f   :  { %2073 = vmatpush1.bf16.msra.mxu0 %v6993_v27 }
 0x360   :  { %1636 = vmatpush1.bf16.msra.mxu1 %v6941_v55  ;;  %v6998_v55 = vld [vmem:[#allocation2 + $0x924] ss:$8 sps:$4 sm:$0xff]  }
 0x361   :  { %1637 = vmatprep.subr.bf16.mxu1 %v6946_v28  ;;  %v6996_v28 = vld [vmem:[#allocation2 + $0x920] ss:$8 sps:$4 sm:$0xff]   ;;  %2074 = vmatprep.subr.bf16.mxu0 %v6998_v55 }
 0x363   :  { %2075 = vmatpush1.bf16.msra.mxu0 %v6996_v28  ;;  %v7019_v28 = vld [vmem:[#allocation2 + $0x994] ss:$8 sps:$4 sm:$0xff]  }
 0x364   :  { %1638 = vmatpush1.bf16.msra.mxu1 %v6944_v29  ;;  %v7001_v29 = vld [vmem:[#allocation2 + $0x934] ss:$8 sps:$4 sm:$0xff]  }
 0x365   :  { %1639 = vmatprep.subr.bf16.mxu1 %v6949_v30  ;;  %v6999_v30 = vld [vmem:[#allocation2 + $0x930] ss:$8 sps:$4 sm:$0xff]   ;;  %2076 = vmatprep.subr.bf16.mxu0 %v7001_v29 }
 0x366   :  { %v7017_v29 = vld [vmem:[#allocation2 + $0x990] ss:$8 sps:$4 sm:$0xff]  }
 0x367   :  { %2077 = vmatpush1.bf16.msra.mxu0 %v6999_v30  ;;  %v7020_v30 = vld [vmem:[#allocation2 + $0x9a0] ss:$8 sps:$4 sm:$0xff]  }
 0x368   :  { %1640 = vmatpush1.bf16.msra.mxu1 %v6947_v31  ;;  %v7004_v31 = vld [vmem:[#allocation2 + $0x944] ss:$8 sps:$4 sm:$0xff]  }
 0x369   :  { %1641 = vmatprep.subr.bf16.mxu1 %v6952_v32  ;;  %v7002_v32 = vld [vmem:[#allocation2 + $0x940] ss:$8 sps:$4 sm:$0xff]   ;;  %2078 = vmatprep.subr.bf16.mxu0 %v7004_v31  ;;  %v7025_v31 = vld [vmem:[#allocation2 + $0x9b4] ss:$8 sps:$4 sm:$0xff]  }
 0x36b   :  { %2079 = vmatpush1.bf16.msra.mxu0 %v7002_v32  ;;  %v7023_v32 = vld [vmem:[#allocation2 + $0x9b0] ss:$8 sps:$4 sm:$0xff]  }
 0x36c   :  { %1642 = vmatpush1.bf16.msra.mxu1 %v6950_v46  ;;  %v7007_v46 = vld [vmem:[#allocation2 + $0x954] ss:$8 sps:$4 sm:$0xff]  }
 0x36d   :  { %1643 = vmatprep.subr.bf16.mxu1 %v6955_v48  ;;  %v7005_v48 = vld [vmem:[#allocation2 + $0x950] ss:$8 sps:$4 sm:$0xff]   ;;  %2080 = vmatprep.subr.bf16.mxu0 %v7007_v46  ;;  %v7026_v46 = vld [vmem:[#allocation2 + $0x9c0] ss:$8 sps:$4 sm:$0xff]  }
 0x36f   :  { %2081 = vmatpush1.bf16.msra.mxu0 %v7005_v48  ;;  %v7028_v48 = vld [vmem:[#allocation2 + $0x9c4] ss:$8 sps:$4 sm:$0xff]  }
 0x370   :  { %1644 = vmatpush1.bf16.msra.mxu1 %v6953_v12  ;;  %v7010_v12 = vld [vmem:[#allocation2 + $0x964] ss:$8 sps:$4 sm:$0xff]  }
 0x371   :  { %1645 = vmatprep.subr.bf16.mxu1 %v6958_v49  ;;  %v7008_v49 = vld [vmem:[#allocation2 + $0x960] ss:$8 sps:$4 sm:$0xff]   ;;  %2082 = vmatprep.subr.bf16.mxu0 %v7010_v12  ;;  %v7031_v12 = vld [vmem:[#allocation2 + $0x9d4] ss:$8 sps:$4 sm:$0xff]  }
 0x373   :  { %2083 = vmatpush1.bf16.msra.mxu0 %v7008_v49  ;;  %v7029_v49 = vld [vmem:[#allocation2 + $0x9d0] ss:$8 sps:$4 sm:$0xff]  }
 0x374   :  { %1646 = vmatpush1.bf16.msra.mxu1 %v6956_v50  ;;  %v7013_v50 = vld [vmem:[#allocation2 + $0x974] ss:$8 sps:$4 sm:$0xff]  }
 0x375   :  { %1647 = vmatprep.subr.bf16.mxu1 %v6961_v51  ;;  %v7011_v51 = vld [vmem:[#allocation2 + $0x970] ss:$8 sps:$4 sm:$0xff]   ;;  %2084 = vmatprep.subr.bf16.mxu0 %v7013_v50  ;;  %v7034_v50 = vld [vmem:[#allocation2 + $0x9e4] ss:$8 sps:$4 sm:$0xff]  }
 0x377   :  { %2085 = vmatpush1.bf16.msra.mxu0 %v7011_v51  ;;  %v7032_v51 = vld [vmem:[#allocation2 + $0x9e0] ss:$8 sps:$4 sm:$0xff]  }
 0x378   :  { %1648 = vmatpush1.bf16.msra.mxu1 %v6959_v52  ;;  %v7016_v52 = vld [vmem:[#allocation2 + $0x984] ss:$8 sps:$4 sm:$0xff]  }
 0x379   :  { %1649 = vmatprep.subr.bf16.mxu1 %v6964_v53  ;;  %v7014_v53 = vld [vmem:[#allocation2 + $0x980] ss:$8 sps:$4 sm:$0xff]   ;;  %2086 = vmatprep.subr.bf16.mxu0 %v7016_v52  ;;  %v7037_v52 = vld [vmem:[#allocation2 + $0x9f4] ss:$8 sps:$4 sm:$0xff]  }
 0x37b   :  { %2087 = vmatpush1.bf16.msra.mxu0 %v7014_v53  ;;  %v7035_v53 = vld [vmem:[#allocation2 + $0x9f0] ss:$8 sps:$4 sm:$0xff]  }
 0x37c   :  { %1650 = vmatpush1.bf16.msra.mxu1 %v6962_v54  ;;  %2088 = vmatprep.subr.bf16.mxu0 %v7019_v28 }
 0x37d   :  { %1651 = vmatprep.subr.bf16.mxu1 %v6967_v56 }
 0x37f   :  { %2089 = vmatpush1.bf16.msra.mxu0 %v7017_v29 }
 0x380   :  { %1652 = vmatpush1.bf16.msra.mxu1 %v6965_v57 }
 0x381   :  { %1653 = vmatprep.subr.bf16.mxu1 %v6970_v14 }
 0x384   :  { %1654 = vmatpush1.bf16.msra.mxu1 %v6968_v58 }
 0x385   :  { %1655 = vmatprep.subr.bf16.mxu1 %v6973_v59 }
 0x388   :  { %1656 = vmatpush1.bf16.msra.mxu1 %v6971_v60 }
 0x389   :  { %6400 = vmatprep.subr.bf16.mxu1 %v6974_v61 }
 0x38b   :  { %1658 = vmatmul.mubr.bf16.vlgmr.msra.gmra.mrb[4].mxu1 %v1262_v63 }
 0x38c   :  { %6401 = vmatpush3.bf16.msra.mxu1 %v6975_v62 }
 0x38d   :  { %6402 = vmatprep.subr.bf16.mxu1 %v6976_v1 }
 0x390   :  { %6403 = vmatpush3.bf16.msra.mxu1 %v6977_v3 }
 0x391   :  { %6404 = vmatprep.subr.bf16.mxu1 %v6978_v41 }
 0x394   :  { %6405 = vmatpush3.bf16.msra.mxu1 %v6979_v44 }
 0x395   :  { %6406 = vmatprep.subr.bf16.mxu1 %v6980_v47 }
 0x398   :  { %6407 = vmatpush3.bf16.msra.mxu1 %v6981_v15 }
 0x399   :  { %6408 = vmatprep.subr.bf16.mxu1 %v6982_v20 }
 0x39c   :  { %6409 = vmatpush3.bf16.msra.mxu1 %v6983_v21 }
 0x39d   :  { %6410 = vmatprep.subr.bf16.mxu1 %v6984_v10 }
 0x3a0   :  { %6411 = vmatpush3.bf16.msra.mxu1 %v6985_v33 }
 0x3a1   :  { %6412 = vmatprep.subr.bf16.mxu1 %v6986_v36 }
 0x3a4   :  { %6413 = vmatpush3.bf16.msra.mxu1 %v6987_v22 }
 0x3a5   :  { %6414 = vmatprep.subr.bf16.mxu1 %v6988_v45 }
 0x3a8   :  { %6415 = vmatpush3.bf16.msra.mxu1 %v6989_v23 }
 0x3da   :  { %v2414_v15 = vpop.xlane.xlu0 %2413 }
 0x3db   :  { %v2415_v19 = vmul.f32 0.0013020834, %v2414_v15 }
 0x3dd   :  { %v2416_v21 = vsub.f32 %v7975_v6, %v2415_v19  ;;  %v8010_v10 = vsub.f32 %v7980_v18, %v2415_v19  ;;  %v8013_v33 = vsub.f32 %v7987_v8, %v2415_v19  ;;  %v8016_v36 = vsub.f32 %v7993_v9, %v2415_v19 }
 0x3de   :  { %v6394_v0 = vpop.f32.mrb[0].mxu1  ;;  %v8019_v22 = vsub.f32 %v7999_v13, %v2415_v19  ;;  %v8026_v18 = vsub.f32 %v8005_v17, %v2415_v19  ;;  %v7022_v17 = vld [vmem:[#allocation2 + $0x9a4] ss:$8 sps:$4 sm:$0xff]  }
 0x3df   :  { %v6395_v2 = vpop.f32.mrb[1].mxu1  ;;  %v2422_v45 = vmul.f32 %v2416_v21, %v2416_v21  ;;  %v2423_v23 = vmul.f32 %v8010_v10, %v8010_v10  ;;  %v2424_v6 = vmul.f32 %v8013_v33, %v8013_v33  ;;  %v2425_v8 = vmul.f32 %v8016_v36, %v8016_v36  ;;  %2090 = vmatprep.subr.bf16.mxu0 %v7022_v17 }
 0x3e0   :  { %v7970_v4 = vadd.f32 %v6395_v2, %v6394_v0  ;;  %v6397_v5 = vpop.f32.mrb[2].mxu1  ;;  %v2426_v9 = vmul.f32 %v8019_v22, %v8019_v22  ;;  %v2427_v13 = vmul.f32 %v8026_v18, %v8026_v18  ;;  %2091 = vmatpush1.bf16.msra.mxu0 %v7020_v30 }
 0x3e1   :  { %v6398_v42 = vpop.f32.mrb[3].mxu1  ;;  %v2428_v24 = vadd.f32 %v2423_v23, %v2422_v45  ;;  %2092 = vmatprep.subr.bf16.mxu0 %v7025_v31 }
 0x3e3   :  { %v2429_v25 = vadd.f32 %v2428_v24, %v2424_v6 }
 0x3e4   :  { %2093 = vmatpush1.bf16.msra.mxu0 %v7023_v32 }
 0x3e5   :  { %v2430_v26 = vadd.f32 %v2429_v25, %v2425_v8  ;;  %2094 = vmatprep.subr.bf16.mxu0 %v7028_v48 }
 0x3e7   :  { %v2431_v27 = vadd.f32 %v2430_v26, %v2426_v9 }
 0x3e8   :  { %2095 = vmatpush1.bf16.msra.mxu0 %v7026_v46 }
 0x3e9   :  { %v2432_v55 = vadd.f32 %v2431_v27, %v2427_v13  ;;  %2096 = vmatprep.subr.bf16.mxu0 %v7031_v12 }
 0x3eb   :  { %2433 = vadd.xlane.f32.xlu1 %v2432_v55 }
 0x3ec   :  { %2097 = vmatpush1.bf16.msra.mxu0 %v7029_v49 }
 0x3ed   :  { %2098 = vmatprep.subr.bf16.mxu0 %v7034_v50 }
 0x3f0   :  { %2099 = vmatpush1.bf16.msra.mxu0 %v7032_v51 }
 0x3f1   :  { %2100 = vmatprep.subr.bf16.mxu0 %v7037_v52 }
 0x3f4   :  { %2101 = vmatpush1.bf16.msra.mxu0 %v7035_v53  ;;  %v1106_v53 = vmul.f32 0.5, %v7970_v4 }
 0x45e   :  { %v1659_v54 = vpop.f32.mrb[4].mxu1 }
 0x45f   :  { %v1668_v56 = vmul.f32 %v1659_v54, %v1659_v54  ;;  %v1661_v57 = vpop.f32.mrb[5].mxu1  ;;  %v1666_v7 = vmul.f32 0.5, %v1659_v54 }
 0x460   :  { %v1669_v14 = vmul.f32 %v1661_v57, %v1661_v57  ;;  %v1663_v58 = vpop.f32.mrb[6].mxu1  ;;  %v1667_v44 = vmul.f32 0.5, %v1661_v57 }
 0x461   :  { %v1670_v59 = vmul.f32 %v1668_v56, %v1659_v54  ;;  %v1664_v60 = vpop.f32.mrb[7].mxu1 }
 0x462   :  { %v1671_v61 = vmul.f32 %v1669_v14, %v1661_v57  ;;  %v2402_v60 = vld [vmem:[#allocation7 + $0x4] ss:$8 sm:$0x30] }
 0x463   :  { %v1672_v62 = vmul.f32 0.044715, %v1670_v59  ;;  %v2401_v59 = vld [vmem:[#allocation7 + $0x4] ss:$8 sm:$0xf] }
 0x464   :  { %v1673_v63 = vmul.f32 0.044715, %v1671_v61  ;;  %v2403_v61 = vor.u32 %v2402_v60, %v2401_v59 }
 0x465   :  { %v1674_v0 = vadd.f32 %v1672_v62, %v1659_v54  ;;  %v7040_v54 = vld [vmem:[#allocation2 + $0x504] ss:$8 sps:$4 sm:$0xff]  }
 0x466   :  { %v1675_v1 = vadd.f32 %v1673_v63, %v1661_v57  ;;  %3100 = vmatprep.subr.bf16.mxu0 %v7040_v54  ;;  %v2405_v62 = vld [vmem:[#allocation7 + $0x5] ss:$8 sm:$0xf]  ;;  %v2464_v23 = vrot.slane %v2403_v61, %v7900_v40  ;;  %v2452_v12 = vrot.slane %v2403_v61, %v7890_v34 }
 0x467   :  { %v1676_v2 = vmul.f32 0.7978846, %v1674_v0  ;;  %v2406_v63 = vld [vmem:[#allocation7 + $0x5] ss:$8 sm:$0x30] }
 0x468   :  { %v1677_v3 = vmul.f32 0.7978846, %v1675_v1  ;;  %v2407_v0 = vor.u32 %v2406_v63, %v2405_v62  ;;  %v7038_v62 = vld [vmem:[#allocation2 + $0x500] ss:$8 sps:$4 sm:$0xff]  }
 0x469   :  { %7526 = vtanh.f32 %v1676_v2  ;;  %v2448_v2 = vrot.slane %v2403_v61, %v7892_v35 }
 0x46a   :  { %7528 = vtanh.f32 %v1677_v3  ;;  %v2497_v24 = vrot.slane %v2407_v0, %v7894_v37  ;;  %v2493_v9 = vrot.slane %v2407_v0, %v7896_v38  ;;  %v2505_v26 = vrot.slane %v2407_v0, %v7898_v39 }
 0x473   :  { %v7527_v5 = vpop.eup %7526 }
 0x474   :  { %v7529_v42 = vpop.eup %7528  ;;  %v1680_v41 = vadd.f32 1.0, %v7527_v5  ;;  %v2485_v5 = vrot.slane %v2407_v0, %v7892_v35 }
 0x475   :  { %v1681_v43 = vadd.f32 1.0, %v7529_v42 }
 0x476   :  { %v1682_v11 = vmul.f32 %v1680_v41, %v1666_v7  ;;  %v1107_v7 = vmul.f32 %v7970_v4, %v7970_v4 }
 0x477   :  { %v1683_v47 = vmul.f32 %v1681_v43, %v1667_v44 }
 0x478   :  { %v1716_v20 = vpack.c.bf16 %v1682_v11, %v1682_v11  ;;  %v2434_v56 = vpop.xlane.xlu1 %2433  ;;  %v1108_v41 = vmul.f32 %v7970_v4, %v1107_v7  ;;  %v7055_v7 = vld [vmem:[#allocation2 + $0x554] ss:$8 sps:$4 sm:$0xff]  }
 0x479   :  { %v1717_v16 = vpack.c.bf16 %v1683_v47, %v1683_v47  ;;  %v2435_v57 = vmul.f32 0.0013020834, %v2434_v56  ;;  %v2460_v47 = vrot.slane %v2403_v61, %v7894_v37 }
 0x47a   :  { %v1109_v44 = vmul.f32 0.044715, %v1108_v41  ;;  %v7053_v41 = vld [vmem:[#allocation2 + $0x550] ss:$8 sps:$4 sm:$0xff]  }
 0x47b   :  { %1846 = vmatprep.mubr.bf16.mxu1 %v1717_v16  ;;  %v2436_v14 = vadd.f32 1e-05, %v2435_v57  ;;  %v2456_v16 = vrot.slane %v2403_v61, %v7896_v38 }
 0x47c   :  { %1847 = vmatmul.mubr.bf16.vlgmr.msra.gmra.mrb[8].mxu1 %v1716_v20  ;;  %v1110_v43 = vadd.f32 %v7970_v4, %v1109_v44  ;;  %v7049_v4 = vld [vmem:[#allocation2 + $0x534] ss:$8 sps:$4 sm:$0xff]   ;;  %v7058_v44 = vld [vmem:[#allocation2 + $0x564] ss:$8 sps:$4 sm:$0xff]  }
 0x47d   :  { %7530 = vrsqrt.f32 %v2436_v14 }
 0x47e   :  { %v1111_v37 = vmul.f32 0.7978846, %v1110_v43  ;;  %v7056_v43 = vld [vmem:[#allocation2 + $0x560] ss:$8 sps:$4 sm:$0xff]  }
 0x480   :  { %7532 = vtanh.f32 %v1111_v37  ;;  %v7091_v37 = vld [vmem:[#allocation2 + $0x614] ss:$8 sps:$4 sm:$0xff]  }
 0x487   :  { %v7531_v58 = vpop.eup %7530 }
 0x488   :  { %v2438_v1 = vmul.f32 %v7531_v58, %v2416_v21  ;;  %v2441_v11 = vmul.f32 %v7531_v58, %v8016_v36  ;;  %v2440_v15 = vmul.f32 %v7531_v58, %v8013_v33  ;;  %v2443_v20 = vmul.f32 %v7531_v58, %v8026_v18 }
 0x489   :  { %v2468_v21 = vrot.slane %v2403_v61, %v7898_v39  ;;  %v2442_v45 = vmul.f32 %v7531_v58, %v8019_v22  ;;  %v2501_v22 = vrot.slane %v2407_v0, %v7900_v40  ;;  %v2439_v39 = vmul.f32 %v7531_v58, %v8010_v10  ;;  %v7043_v10 = vld [vmem:[#allocation2 + $0x514] ss:$8 sps:$4 sm:$0xff]   ;;  %v7041_v58 = vld [vmem:[#allocation2 + $0x510] ss:$8 sps:$4 sm:$0xff]   ;;  %v7046_v61 = vld [vmem:[#allocation2 + $0x524] ss:$8 sps:$4 sm:$0xff]  }
 0x48a   :  { %v2475_v3 = vmul.f32 %v2448_v2, %v2438_v1  ;;  %v2478_v8 = vmul.f32 %v2460_v47, %v2441_v11  ;;  %v2477_v36 = vmul.f32 %v2456_v16, %v2440_v15  ;;  %v7533_v49 = vpop.eup %7532  ;;  %v2489_v40 = vrot.slane %v2407_v0, %v7890_v34  ;;  %v7044_v0 = vld [vmem:[#allocation2 + $0x520] ss:$8 sps:$4 sm:$0xff]   ;;  %v7047_v2 = vld [vmem:[#allocation2 + $0x530] ss:$8 sps:$4 sm:$0xff]   ;;  %v7061_v11 = vld [vmem:[#allocation2 + $0x574] ss:$8 sps:$4 sm:$0xff]  }
 0x48b   :  { %v2480_v13 = vmul.f32 %v2468_v21, %v2443_v20  ;;  %v2479_v27 = vmul.f32 %v2464_v23, %v2442_v45  ;;  %v2476_v50 = vmul.f32 %v2452_v12, %v2439_v39  ;;  %v1113_v51 = vadd.f32 1.0, %v7533_v49  ;;  %v7059_v47 = vld [vmem:[#allocation2 + $0x570] ss:$8 sps:$4 sm:$0xff]   ;;  %v7064_v15 = vld [vmem:[#allocation2 + $0x584] ss:$8 sps:$4 sm:$0xff]  }
 0x48c   :  { %v8036_v42 = vadd.f32 %v2485_v5, %v2475_v3  ;;  %v8053_v55 = vadd.f32 %v2497_v24, %v2478_v8  ;;  %v8055_v28 = vadd.f32 %v2493_v9, %v2477_v36  ;;  %v7052_v3 = vld [vmem:[#allocation2 + $0x544] ss:$8 sps:$4 sm:$0xff]   ;;  %v7050_v5 = vld [vmem:[#allocation2 + $0x540] ss:$8 sps:$4 sm:$0xff]   ;;  %v7065_v20 = vld [vmem:[#allocation2 + $0x590] ss:$8 sps:$4 sm:$0xff]  }
 0x48d   :  { %v8058_v17 = vadd.f32 %v2505_v26, %v2480_v13  ;;  %v8060_v30 = vadd.f32 %v2501_v22, %v2479_v27  ;;  %v2513_v57 = vadd.f32 %v2489_v40, %v2476_v50  ;;  %v1114_v14 = vmul.f32 %v1113_v51, %v1106_v53  ;;  %v7062_v16 = vld [vmem:[#allocation2 + $0x580] ss:$8 sps:$4 sm:$0xff]   ;;  %v7070_v21 = vld [vmem:[#allocation2 + $0x5a4] ss:$8 sps:$4 sm:$0xff]   ;;  %v7073_v23 = vld [vmem:[#allocation2 + $0x5b4] ss:$8 sps:$4 sm:$0xff]  }
 0x48e   :  { %v7068_v45 = vld [vmem:[#allocation2 + $0x5a0] ss:$8 sps:$4 sm:$0xff]   ;;  %v7076_v8 = vld [vmem:[#allocation2 + $0x5c4] ss:$8 sps:$4 sm:$0xff]   ;;  %v7079_v36 = vld [vmem:[#allocation2 + $0x5d4] ss:$8 sps:$4 sm:$0xff]  }
 0x48f   :  { %v2615_v63 = vpack.c.bf16 %v2513_v57, %v2513_v57  ;;  %v1895_v1 = vpack.c.bf16 %v1114_v14, %v1114_v14  ;;  %v7074_v24 = vld [vmem:[#allocation2 + $0x5c0] ss:$8 sps:$4 sm:$0xff]   ;;  %v7077_v9 = vld [vmem:[#allocation2 + $0x5d0] ss:$8 sps:$4 sm:$0xff]   ;;  %v7085_v13 = vld [vmem:[#allocation2 + $0x5f4] ss:$8 sps:$4 sm:$0xff]  }
 0x490   :  { %v7083_v26 = vld [vmem:[#allocation2 + $0x5f0] ss:$8 sps:$4 sm:$0xff]   ;;  %v7088_v27 = vld [vmem:[#allocation2 + $0x604] ss:$8 sps:$4 sm:$0xff]   ;;  %v7086_v22 = vld [vmem:[#allocation2 + $0x600] ss:$8 sps:$4 sm:$0xff]  }
 0x491   :  { %v7095_v39 = vld [vmem:[#allocation2 + $0x630] ss:$8 sps:$4 sm:$0xff]   ;;  %v7098_v12 = vld [vmem:[#allocation2 + $0x640] ss:$8 sps:$4 sm:$0xff]   ;;  %v7106_v50 = vld [vmem:[#allocation2 + $0x664] ss:$8 sps:$4 sm:$0xff]  }
 0x492   :  { %v7101_v49 = vld [vmem:[#allocation2 + $0x650] ss:$8 sps:$4 sm:$0xff]   ;;  %v7104_v40 = vld [vmem:[#allocation2 + $0x660] ss:$8 sps:$4 sm:$0xff]   ;;  %v7109_v51 = vld [vmem:[#allocation2 + $0x674] ss:$8 sps:$4 sm:$0xff]  }
 0x493   :  { %v7112_v53 = vld [vmem:[#allocation2 + $0x684] ss:$8 sps:$4 sm:$0xff]   ;;  %v7113_v57 = vld [vmem:[#allocation2 + $0x690] ss:$8 sps:$4 sm:$0xff]  }
 0x494   :  { %v7182_v14 = vld [vmem:[#allocation4 + $0x280] sm:$0xff]  }
 0x54f   :  { %v6416_v19 = vpop.f32.mrb[8].mxu1 }
 0x550   :  { %v6417_v6 = vpop.f32.mrb[9].mxu1 }
 0x551   :  { %v6418_v25 = vadd.f32 %v6417_v6, %v6416_v19  ;;  %v6419_v33 = vpop.f32.mrb[10].mxu1  ;;  %v7067_v19 = vld [vmem:[#allocation2 + $0x594] ss:$8 sps:$4 sm:$0xff]   ;;  %v7071_v6 = vld [vmem:[#allocation2 + $0x5b0] ss:$8 sps:$4 sm:$0xff]  }
 0x552   :  { %v6420_v18 = vpop.f32.mrb[11].mxu1  ;;  %v7080_v33 = vld [vmem:[#allocation2 + $0x5e0] ss:$8 sps:$4 sm:$0xff]  }
 0x553   :  { %v1855_v29 = vmul.f32 %v6418_v25, %v6418_v25  ;;  %v1854_v54 = vmul.f32 0.5, %v6418_v25  ;;  %v2614_v18 = vpack.c.bf16 %v8036_v42, %v8036_v42  ;;  %v7100_v42 = vld [vmem:[#allocation2 + $0x644] ss:$8 sps:$4 sm:$0xff]  }
 0x555   :  { %v1856_v31 = vmul.f32 %v6418_v25, %v1855_v29  ;;  %v2617_v29 = vpack.c.bf16 %v8053_v55, %v8053_v55  ;;  %v7103_v55 = vld [vmem:[#allocation2 + $0x654] ss:$8 sps:$4 sm:$0xff]  }
 0x557   :  { %v1857_v32 = vmul.f32 0.044715, %v1856_v31  ;;  %v7089_v31 = vld [vmem:[#allocation2 + $0x610] ss:$8 sps:$4 sm:$0xff]  }
 0x559   :  { %v1858_v46 = vadd.f32 %v6418_v25, %v1857_v32  ;;  %v7082_v25 = vld [vmem:[#allocation2 + $0x5e4] ss:$8 sps:$4 sm:$0xff]  }
 0x55a   :  { %v7094_v32 = vld [vmem:[#allocation2 + $0x624] ss:$8 sps:$4 sm:$0xff]  }
 0x55b   :  { %v1859_v48 = vmul.f32 0.7978846, %v1858_v46  ;;  %v7092_v46 = vld [vmem:[#allocation2 + $0x620] ss:$8 sps:$4 sm:$0xff]  }
 0x55d   :  { %7534 = vtanh.f32 %v1859_v48  ;;  %v7097_v48 = vld [vmem:[#allocation2 + $0x634] ss:$8 sps:$4 sm:$0xff]  }
 0x567   :  { %v7535_v52 = vpop.eup %7534 }
 0x568   :  { %v1861_v56 = vadd.f32 1.0, %v7535_v52  ;;  %v7107_v52 = vld [vmem:[#allocation2 + $0x670] ss:$8 sps:$4 sm:$0xff]  }
 0x56a   :  { %v1862_v59 = vmul.f32 %v1861_v56, %v1854_v54  ;;  %v7110_v54 = vld [vmem:[#allocation2 + $0x680] ss:$8 sps:$4 sm:$0xff]   ;;  %v7115_v56 = vld [vmem:[#allocation2 + $0x694] ss:$8 sps:$4 sm:$0xff]  }
 0x56c   :  { %v1896_v60 = vpack.c.bf16 %v1862_v59, %v1862_v59  ;;  %v7118_v59 = vld [vmem:[#allocation2 + $0x6a4] ss:$8 sps:$4 sm:$0xff]  }
 0x56e   :  { %2102 = vmatprep.mubr.bf16.mxu0 %v1896_v60  ;;  %v7697_v60 = vmov 0.0  }
 0x56f   :  { %2103 = vmatmul.mubr.bf16.vlgmr.msra.gmra.mrb[4].mxu0 %v1895_v1  ;;  %6577 = vmatprep.subr.bf16.mxu1 %v7697_v60  ;;  %v7121_v1 = vld [vmem:[#allocation2 + $0x6b4] ss:$8 sps:$4 sm:$0xff]  }
 0x570   :  { %3101 = vmatpush1.bf16.msra.mxu0 %v7038_v62  ;;  %3132 = vmatprep.mubr.bf16.mxu0 %v2615_v63  ;;  %v7183_v62 = vld [vmem:[#allocation4 + $0x288] sm:$0xff]  }
 0x571   :  { %3102 = vmatprep.subr.bf16.mxu0 %v7043_v10  ;;  %6578 = vmatpush3.bf16.msra.mxu1 %v7182_v14  ;;  %v7116_v63 = vld [vmem:[#allocation2 + $0x6a0] ss:$8 sps:$4 sm:$0xff]   ;;  %v7184_v10 = vld [vmem:[#allocation4 + $0x290] sm:$0xff]  }
 0x572   :  { %6579 = vmatprep.subr.bf16.mxu1 %v7697_v60  ;;  %6593 = vmatprep.mubr.msk.bf16.mxu1 %vm7698_vm0, %v7697_v60 }
 0x574   :  { %3103 = vmatpush1.bf16.msra.mxu0 %v7041_v58  ;;  %v7119_v58 = vld [vmem:[#allocation2 + $0x6b0] ss:$8 sps:$4 sm:$0xff]  }
 0x575   :  { %3104 = vmatprep.subr.bf16.mxu0 %v7046_v61  ;;  %6580 = vmatpush3.bf16.msra.mxu1 %v7183_v62  ;;  %v7124_v61 = vld [vmem:[#allocation2 + $0x6c4] ss:$8 sps:$4 sm:$0xff]  }
 0x576   :  { %6581 = vmatprep.subr.bf16.mxu1 %v7697_v60 }
 0x578   :  { %3105 = vmatpush1.bf16.msra.mxu0 %v7044_v0  ;;  %v7185_v0 = vld [vmem:[#allocation4 + $0x298] sm:$0xff]  }
 0x579   :  { %3106 = vmatprep.subr.bf16.mxu0 %v7049_v4  ;;  %6582 = vmatpush3.bf16.msra.mxu1 %v7184_v10  ;;  %v7122_v4 = vld [vmem:[#allocation2 + $0x6c0] ss:$8 sps:$4 sm:$0xff]  }
 0x57a   :  { %6583 = vmatprep.subr.bf16.mxu1 %v7697_v60 }
 0x57c   :  { %3107 = vmatpush1.bf16.msra.mxu0 %v7047_v2  ;;  %v7127_v2 = vld [vmem:[#allocation2 + $0x6d4] ss:$8 sps:$4 sm:$0xff]  }
 0x57d   :  { %3108 = vmatprep.subr.bf16.mxu0 %v7052_v3  ;;  %6584 = vmatpush3.bf16.msra.mxu1 %v7185_v0  ;;  %v7186_v3 = vld [vmem:[#allocation4 + $0x2a0] sm:$0xff]  }
 0x57e   :  { %6585 = vmatprep.subr.bf16.mxu1 %v7697_v60 }
 0x580   :  { %3109 = vmatpush1.bf16.msra.mxu0 %v7050_v5  ;;  %v7125_v5 = vld [vmem:[#allocation2 + $0x6d0] ss:$8 sps:$4 sm:$0xff]  }
 0x581   :  { %3110 = vmatprep.subr.bf16.mxu0 %v7055_v7  ;;  %v7130_v7 = vld [vmem:[#allocation2 + $0x6e4] ss:$8 sps:$4 sm:$0xff]   ;;  %6586 = vmatpush3.bf16.msra.mxu1 %v7186_v3 }
 0x582   :  { %6587 = vmatprep.subr.bf16.mxu1 %v7697_v60 }
 0x584   :  { %3111 = vmatpush1.bf16.msra.mxu0 %v7053_v41  ;;  %v7187_v41 = vld [vmem:[#allocation4 + $0x2a8] sm:$0xff]  }
 0x585   :  { %3112 = vmatprep.subr.bf16.mxu0 %v7058_v44  ;;  %v7128_v44 = vld [vmem:[#allocation2 + $0x6e0] ss:$8 sps:$4 sm:$0xff]   ;;  %6588 = vmatpush3.bf16.msra.mxu1 %v7187_v41  ;;  %v7193_v41 = vld [vmem:[#allocation2 + $0xb10] ss:$8 sps:$4 sm:$0xff]  }
 0x586   :  { %6589 = vmatprep.subr.bf16.mxu1 %v7697_v60 }
 0x588   :  { %3113 = vmatpush1.bf16.msra.mxu0 %v7056_v43  ;;  %v7133_v43 = vld [vmem:[#allocation2 + $0x6f4] ss:$8 sps:$4 sm:$0xff]  }
 0x589   :  { %3114 = vmatprep.subr.bf16.mxu0 %v7061_v11  ;;  %v7188_v11 = vld [vmem:[#allocation4 + $0x2b0] sm:$0xff]  }
 0x58a   :  { %6590 = vmatpush3.bf16.msra.mxu1 %v7188_v11 }
 0x58b   :  { %6591 = vmatprep.subr.bf16.mxu1 %v7697_v60 }
 0x58c   :  { %3115 = vmatpush1.bf16.msra.mxu0 %v7059_v47  ;;  %v7131_v47 = vld [vmem:[#allocation2 + $0x6f0] ss:$8 sps:$4 sm:$0xff]  }
 0x58d   :  { %3116 = vmatprep.subr.bf16.mxu0 %v7064_v15  ;;  %v7136_v15 = vld [vmem:[#allocation2 + $0x704] ss:$8 sps:$4 sm:$0xff]  }
 0x590   :  { %3117 = vmatpush1.bf16.msra.mxu0 %v7062_v16  ;;  %v7134_v16 = vld [vmem:[#allocation2 + $0x700] ss:$8 sps:$4 sm:$0xff]  }
 0x591   :  { %3118 = vmatprep.subr.bf16.mxu0 %v7067_v19  ;;  %v2616_v19 = vpack.c.bf16 %v8055_v28, %v8055_v28  ;;  %v7146_v28 = vld [vmem:[#allocation2 + $0x740] ss:$8 sps:$4 sm:$0xff]  }
 0x594   :  { %3119 = vmatpush1.bf16.msra.mxu0 %v7065_v20  ;;  %v7139_v20 = vld [vmem:[#allocation2 + $0x714] ss:$8 sps:$4 sm:$0xff]  }
 0x595   :  { %3120 = vmatprep.subr.bf16.mxu0 %v7070_v21  ;;  %v2619_v21 = vpack.c.bf16 %v8058_v17, %v8058_v17  ;;  %v7149_v17 = vld [vmem:[#allocation2 + $0x750] ss:$8 sps:$4 sm:$0xff]  }
 0x598   :  { %3121 = vmatpush1.bf16.msra.mxu0 %v7068_v45  ;;  %v7137_v45 = vld [vmem:[#allocation2 + $0x710] ss:$8 sps:$4 sm:$0xff]  }
 0x599   :  { %3122 = vmatprep.subr.bf16.mxu0 %v7073_v23  ;;  %v7142_v23 = vld [vmem:[#allocation2 + $0x724] ss:$8 sps:$4 sm:$0xff]  }
 0x59c   :  { %3123 = vmatpush1.bf16.msra.mxu0 %v7071_v6  ;;  %v7140_v6 = vld [vmem:[#allocation2 + $0x720] ss:$8 sps:$4 sm:$0xff]  }
 0x59d   :  { %3124 = vmatprep.subr.bf16.mxu0 %v7076_v8  ;;  %v7145_v8 = vld [vmem:[#allocation2 + $0x734] ss:$8 sps:$4 sm:$0xff]  }
 0x5a0   :  { %3125 = vmatpush1.bf16.msra.mxu0 %v7074_v24  ;;  %v7143_v24 = vld [vmem:[#allocation2 + $0x730] ss:$8 sps:$4 sm:$0xff]  }
 0x5a1   :  { %3126 = vmatprep.subr.bf16.mxu0 %v7079_v36  ;;  %v7148_v36 = vld [vmem:[#allocation2 + $0x744] ss:$8 sps:$4 sm:$0xff]  }
 0x5a4   :  { %3127 = vmatpush1.bf16.msra.mxu0 %v7077_v9  ;;  %v7151_v9 = vld [vmem:[#allocation2 + $0x754] ss:$8 sps:$4 sm:$0xff]  }
 0x5a5   :  { %3128 = vmatprep.subr.bf16.mxu0 %v7082_v25  ;;  %v7154_v25 = vld [vmem:[#allocation2 + $0x764] ss:$8 sps:$4 sm:$0xff]  }
 0x5a8   :  { %3129 = vmatpush1.bf16.msra.mxu0 %v7080_v33  ;;  %v7152_v33 = vld [vmem:[#allocation2 + $0x760] ss:$8 sps:$4 sm:$0xff]  }
 0x5a9   :  { %3130 = vmatprep.subr.bf16.mxu0 %v7085_v13  ;;  %v7157_v13 = vld [vmem:[#allocation2 + $0x774] ss:$8 sps:$4 sm:$0xff]  }
 0x5ac   :  { %3131 = vmatpush1.bf16.msra.mxu0 %v7083_v26  ;;  %v7155_v26 = vld [vmem:[#allocation2 + $0x770] ss:$8 sps:$4 sm:$0xff]  }
 0x5ad   :  { %3141 = vmatprep.subr.bf16.mxu0 %v7088_v27  ;;  %v7160_v27 = vld [vmem:[#allocation2 + $0x784] ss:$8 sps:$4 sm:$0xff]  }
 0x5af   :  { %3133 = vmatmul.mubr.bf16.vlgmr.msra.gmra.mrb[8].mxu0 %v2614_v18  ;;  %v7158_v18 = vld [vmem:[#allocation2 + $0x780] ss:$8 sps:$4 sm:$0xff]  }
 0x5b0   :  { %3142 = vmatpush1.bf16.msra.mxu0 %v7086_v22  ;;  %3173 = vmatprep.mubr.bf16.mxu0 %v2617_v29  ;;  %v7163_v22 = vld [vmem:[#allocation2 + $0x794] ss:$8 sps:$4 sm:$0xff]   ;;  %v7161_v29 = vld [vmem:[#allocation2 + $0x790] ss:$8 sps:$4 sm:$0xff]  }
 0x5b1   :  { %3143 = vmatprep.subr.bf16.mxu0 %v7091_v37  ;;  %v7166_v37 = vld [vmem:[#allocation2 + $0x7a4] ss:$8 sps:$4 sm:$0xff]  }
 0x5b4   :  { %3144 = vmatpush1.bf16.msra.mxu0 %v7089_v31  ;;  %v7164_v31 = vld [vmem:[#allocation2 + $0x7a0] ss:$8 sps:$4 sm:$0xff]  }
 0x5b5   :  { %3145 = vmatprep.subr.bf16.mxu0 %v7094_v32  ;;  %v7169_v32 = vld [vmem:[#allocation2 + $0x7b4] ss:$8 sps:$4 sm:$0xff]  }
 0x5b8   :  { %3146 = vmatpush1.bf16.msra.mxu0 %v7092_v46  ;;  %v7167_v46 = vld [vmem:[#allocation2 + $0x7b0] ss:$8 sps:$4 sm:$0xff]  }
 0x5b9   :  { %3147 = vmatprep.subr.bf16.mxu0 %v7097_v48  ;;  %v7172_v48 = vld [vmem:[#allocation2 + $0x7c4] ss:$8 sps:$4 sm:$0xff]  }
 0x5bc   :  { %3148 = vmatpush1.bf16.msra.mxu0 %v7095_v39  ;;  %v7170_v39 = vld [vmem:[#allocation2 + $0x7c0] ss:$8 sps:$4 sm:$0xff]  }
 0x5bd   :  { %3149 = vmatprep.subr.bf16.mxu0 %v7100_v42  ;;  %v7175_v42 = vld [vmem:[#allocation2 + $0x7d4] ss:$8 sps:$4 sm:$0xff]  }
 0x5c0   :  { %3150 = vmatpush1.bf16.msra.mxu0 %v7098_v12  ;;  %v7173_v12 = vld [vmem:[#allocation2 + $0x7d0] ss:$8 sps:$4 sm:$0xff]  }
 0x5c1   :  { %3151 = vmatprep.subr.bf16.mxu0 %v7103_v55  ;;  %v7178_v55 = vld [vmem:[#allocation2 + $0x7e4] ss:$8 sps:$4 sm:$0xff]  }
 0x5c4   :  { %3152 = vmatpush1.bf16.msra.mxu0 %v7101_v49  ;;  %v7176_v49 = vld [vmem:[#allocation2 + $0x7e0] ss:$8 sps:$4 sm:$0xff]  }
 0x5c5   :  { %3153 = vmatprep.subr.bf16.mxu0 %v7106_v50  ;;  %v7181_v50 = vld [vmem:[#allocation2 + $0x7f4] ss:$8 sps:$4 sm:$0xff]  }
 0x5c8   :  { %3154 = vmatpush1.bf16.msra.mxu0 %v7104_v40  ;;  %v7179_v40 = vld [vmem:[#allocation2 + $0x7f0] ss:$8 sps:$4 sm:$0xff]  }
 0x5c9   :  { %3155 = vmatprep.subr.bf16.mxu0 %v7109_v51  ;;  %v2618_v51 = vpack.c.bf16 %v8060_v30, %v8060_v30 }
 0x5cc   :  { %3156 = vmatpush1.bf16.msra.mxu0 %v7107_v52  ;;  %v7189_v52 = vld [vmem:[#allocation4 + $0x2b8] sm:$0xff]  }
 0x5cd   :  { %3157 = vmatprep.subr.bf16.mxu0 %v7112_v53  ;;  %6592 = vmatpush3.bf16.msra.mxu1 %v7189_v52  ;;  %v7192_v53 = vld [vmem:[#allocation2 + $0xb04] ss:$8 sps:$4 sm:$0xff]  }
 0x5ce   :  { %2339 = vmatprep.subr.bf16.mxu1 %v7192_v53 }
 0x5d0   :  { %3158 = vmatpush1.bf16.msra.mxu0 %v7110_v54  ;;  %v1898_v54 = vld [vmem:[#allocation7 + $0x32] ss:$8 sm:$0x3] }
 0x5d1   :  { %3159 = vmatprep.subr.bf16.mxu0 %v7115_v56  ;;  %v1903_v56 = vrot.slane %v1898_v54, %v7892_v35 }
 0x5d4   :  { %3160 = vmatpush1.bf16.msra.mxu0 %v7113_v57  ;;  %v1907_v57 = vrot.slane %v1898_v54, %v7890_v34 }
 0x5d5   :  { %3161 = vmatprep.subr.bf16.mxu0 %v7118_v59 }
 0x5d8   :  { %3162 = vmatpush1.bf16.msra.mxu0 %v7116_v63 }
 0x5d9   :  { %3163 = vmatprep.subr.bf16.mxu0 %v7121_v1 }
 0x5dc   :  { %3164 = vmatpush1.bf16.msra.mxu0 %v7119_v58 }
 0x5dd   :  { %3165 = vmatprep.subr.bf16.mxu0 %v7124_v61 }
 0x5e0   :  { %3166 = vmatpush1.bf16.msra.mxu0 %v7122_v4 }
 0x5e1   :  { %3167 = vmatprep.subr.bf16.mxu0 %v7127_v2  ;;  %v7190_v2 = vld [vmem:[#allocation2 + $0xb00] ss:$8 sps:$4 sm:$0xff]  }
 0x5e4   :  { %3168 = vmatpush1.bf16.msra.mxu0 %v7125_v5  ;;  %v7195_v5 = vld [vmem:[#allocation2 + $0xb14] ss:$8 sps:$4 sm:$0xff]  }
 0x5e5   :  { %3169 = vmatprep.subr.bf16.mxu0 %v7130_v7 }
 0x5e8   :  { %3170 = vmatpush1.bf16.msra.mxu0 %v7128_v44  ;;  %v7699_v44 = vmov 0  }
 0x5e9   :  { %3171 = vmatprep.subr.bf16.mxu0 %v7133_v43  ;;  %v7198_v43 = vld [vmem:[#allocation2 + $0xb24] ss:$8 sps:$4 sm:$0xff]  }
 0x5ec   :  { %3172 = vmatpush1.bf16.msra.mxu0 %v7131_v47  ;;  %v7196_v47 = vld [vmem:[#allocation2 + $0xb20] ss:$8 sps:$4 sm:$0xff]  }
 0x5ed   :  { %3182 = vmatprep.subr.bf16.mxu0 %v7136_v15  ;;  %v7201_v15 = vld [vmem:[#allocation2 + $0xb34] ss:$8 sps:$4 sm:$0xff]  }
 0x5ef   :  { %3174 = vmatmul.mubr.bf16.vlgmr.msra.gmra.mrb[8].mxu0 %v2616_v19  ;;  %v7204_v19 = vld [vmem:[#allocation2 + $0xb44] ss:$8 sps:$4 sm:$0xff]  }
 0x5f0   :  { %3183 = vmatpush1.bf16.msra.mxu0 %v7134_v16  ;;  %3214 = vmatprep.mubr.bf16.mxu0 %v2619_v21  ;;  %v7199_v16 = vld [vmem:[#allocation2 + $0xb30] ss:$8 sps:$4 sm:$0xff]   ;;  %v7207_v21 = vld [vmem:[#allocation2 + $0xb54] ss:$8 sps:$4 sm:$0xff]  }
 0x5f1   :  { %3184 = vmatprep.subr.bf16.mxu0 %v7139_v20  ;;  %v7202_v20 = vld [vmem:[#allocation2 + $0xb40] ss:$8 sps:$4 sm:$0xff]  }
 0x5f4   :  { %3185 = vmatpush1.bf16.msra.mxu0 %v7137_v45  ;;  %v7205_v45 = vld [vmem:[#allocation2 + $0xb50] ss:$8 sps:$4 sm:$0xff]  }
 0x5f5   :  { %3186 = vmatprep.subr.bf16.mxu0 %v7142_v23  ;;  %v7210_v23 = vld [vmem:[#allocation2 + $0xb64] ss:$8 sps:$4 sm:$0xff]  }
 0x5f8   :  { %3187 = vmatpush1.bf16.msra.mxu0 %v7140_v6 }
 0x5f9   :  { %3188 = vmatprep.subr.bf16.mxu0 %v7145_v8  ;;  %v7208_v8 = vld [vmem:[#allocation2 + $0xb60] ss:$8 sps:$4 sm:$0xff]  }
 0x5fc   :  { %3189 = vmatpush1.bf16.msra.mxu0 %v7143_v24  ;;  %v7213_v24 = vld [vmem:[#allocation2 + $0xb74] ss:$8 sps:$4 sm:$0xff]  }
 0x5fd   :  { %3190 = vmatprep.subr.bf16.mxu0 %v7148_v36 }
 0x600   :  { %3191 = vmatpush1.bf16.msra.mxu0 %v7146_v28 }
 0x601   :  { %3192 = vmatprep.subr.bf16.mxu0 %v7151_v9  ;;  %v7211_v9 = vld [vmem:[#allocation2 + $0xb70] ss:$8 sps:$4 sm:$0xff]  }
 0x604   :  { %3193 = vmatpush1.bf16.msra.mxu0 %v7149_v17 }
 0x605   :  { %3194 = vmatprep.subr.bf16.mxu0 %v7154_v25  ;;  %v7214_v25 = vld [vmem:[#allocation4 + $0x140] sm:$0xff]  }
 0x608   :  { %3195 = vmatpush1.bf16.msra.mxu0 %v7152_v33  ;;  %v7215_v33 = vld [vmem:[#allocation4 + $0x100] sm:$0xff]  }
 0x609   :  { %3196 = vmatprep.subr.bf16.mxu0 %v7157_v13 }
 0x60c   :  { %3197 = vmatpush1.bf16.msra.mxu0 %v7155_v26  ;;  %v7216_v26 = vld [vmem:[#allocation4 + $0x148] sm:$0xff]  }
 0x60d   :  { %3198 = vmatprep.subr.bf16.mxu0 %v7160_v27  ;;  %v7217_v27 = vld [vmem:[#allocation4 + $0x108] sm:$0xff]  }
 0x610   :  { %3199 = vmatpush1.bf16.msra.mxu0 %v7158_v18  ;;  %v7218_v18 = vld [vmem:[#allocation4 + $0x150] sm:$0xff]  }
 0x611   :  { %3200 = vmatprep.subr.bf16.mxu0 %v7163_v22  ;;  %v7219_v22 = vld [vmem:[#allocation4 + $0x110] sm:$0xff]  }
 0x614   :  { %3201 = vmatpush1.bf16.msra.mxu0 %v7161_v29  ;;  %v7220_v29 = vld [vmem:[#allocation4 + $0x158] sm:$0xff]  }
 0x615   :  { %3202 = vmatprep.subr.bf16.mxu0 %v7166_v37  ;;  %v7221_v37 = vld [vmem:[#allocation4 + $0x118] sm:$0xff]  }
 0x618   :  { %3203 = vmatpush1.bf16.msra.mxu0 %v7164_v31  ;;  %v7222_v31 = vld [vmem:[#allocation4 + $0x160] sm:$0xff]  }
 0x619   :  { %3204 = vmatprep.subr.bf16.mxu0 %v7169_v32  ;;  %v7223_v32 = vld [vmem:[#allocation4 + $0x120] sm:$0xff]  }
 0x61c   :  { %3205 = vmatpush1.bf16.msra.mxu0 %v7167_v46  ;;  %v7224_v46 = vld [vmem:[#allocation4 + $0x168] sm:$0xff]  }
 0x61d   :  { %3206 = vmatprep.subr.bf16.mxu0 %v7172_v48  ;;  %v7225_v48 = vld [vmem:[#allocation4 + $0x128] sm:$0xff]  }
 0x620   :  { %3207 = vmatpush1.bf16.msra.mxu0 %v7170_v39  ;;  %v7226_v39 = vld [vmem:[#allocation4 + $0x170] sm:$0xff]  }
 0x621   :  { %3208 = vmatprep.subr.bf16.mxu0 %v7175_v42  ;;  %v7227_v42 = vld [vmem:[#allocation4 + $0x130] sm:$0xff]  }
 0x624   :  { %3209 = vmatpush1.bf16.msra.mxu0 %v7173_v12  ;;  %v7228_v12 = vld [vmem:[#allocation4 + $0x178] sm:$0xff]  }
 0x625   :  { %3210 = vmatprep.subr.bf16.mxu0 %v7178_v55  ;;  %v7229_v55 = vld [vmem:[#allocation4 + $0x138] sm:$0xff]  }
 0x628   :  { %3211 = vmatpush1.bf16.msra.mxu0 %v7176_v49 }
 0x629   :  { %3212 = vmatprep.subr.bf16.mxu0 %v7181_v50 }
 0x62c   :  { %3213 = vmatpush1.bf16.msra.mxu0 %v7179_v40 }
 0x62d   :  { %6597 = vmatprep.subr.bf16.mxu0 %v7697_v60 }
 0x62f   :  { %3215 = vmatmul.mubr.bf16.vlgmr.msra.gmra.mrb[8].mxu0 %v2618_v51 }
 0x630   :  { %6613 = vmatprep.mubr.msk.bf16.mxu0 %vm7698_vm0, %v7697_v60 }
 0x642   :  { %v2104_v30 = vpop.f32.mrb[4].mxu0 }
 0x643   :  { %v2105_v14 = vadd.f32 %v2104_v30, %v1903_v56  ;;  %v2106_v59 = vpop.f32.mrb[5].mxu0 }
 0x644   :  { %v2107_v62 = vadd.f32 %v2106_v59, %v1907_v57  ;;  %v2108_v63 = vpop.f32.mrb[6].mxu0 }
 0x645   :  { %v2109_v1 = vpop.f32.mrb[7].mxu0  ;;  %2120 = vrot.lane.b32.xlu0 %v2105_v14, %s7686_s7 }
 0x646   :  { %v2112_v10 = vmul.f32 %v2107_v62, %v2107_v62  ;;  %v2111_v28 = vmul.f32 0.5, %v2107_v62 }
 0x648   :  { %v2113_v58 = vmul.f32 %v2112_v10, %v2107_v62 }
 0x64a   :  { %v2114_v4 = vmul.f32 0.044715, %v2113_v58 }
 0x64c   :  { %v2115_v7 = vadd.f32 %v2114_v4, %v2107_v62 }
 0x64e   :  { %v2116_v11 = vmul.f32 0.7978846, %v2115_v7 }
 0x650   :  { %7536 = vtanh.f32 %v2116_v11 }
 0x65a   :  { %v7537_v6 = vpop.eup %7536 }
 0x65b   :  { %v2118_v36 = vadd.f32 1.0, %v7537_v6 }
 0x65d   :  { %v2119_v17 = vmul.f32 %v2118_v36, %v2111_v28 }
 0x65f   :  { %v2245_v13 = vpack.c.bf16 %v2119_v17, %v2119_v17 }
 0x6b7   :  { %v2121_v61 = vpop.permute.xlu0 %2120 }
 0x6b8   :  { %v2122_v0 = vmul.f32 %v2121_v61, %v2105_v14 }
 0x6ba   :  { %v2139_v3 = vpack.c.bf16 %v2122_v0, %v2122_v0 }
 0x6bc   :  { %6594 = vmatmul.mubr.bf16.vlgmr.msra.gmra.mrb[12].mxu1 %v2139_v3 }
 0x6bd   :  { %2340 = vmatpush1.bf16.msra.mxu1 %v7190_v2  ;;  %2371 = vmatprep.mubr.bf16.mxu1 %v7699_v44 }
 0x6be   :  { %2341 = vmatprep.subr.bf16.mxu1 %v7195_v5 }
 0x6c1   :  { %2342 = vmatpush1.bf16.msra.mxu1 %v7193_v41 }
 0x6c2   :  { %2343 = vmatprep.subr.bf16.mxu1 %v7198_v43 }
 0x6c5   :  { %2344 = vmatpush1.bf16.msra.mxu1 %v7196_v47 }
 0x6c6   :  { %2345 = vmatprep.subr.bf16.mxu1 %v7201_v15  ;;  %v2247_v15 = vld [vmem:[#allocation7 + $0x34] ss:$8 sm:$0x3] }
 0x6c9   :  { %2346 = vmatpush1.bf16.msra.mxu1 %v7199_v16  ;;  %v2252_v16 = vrot.slane %v2247_v15, %v7892_v35 }
 0x6ca   :  { %2347 = vmatprep.subr.bf16.mxu1 %v7204_v19  ;;  %v2256_v19 = vrot.slane %v2247_v15, %v7890_v34  ;;  %v7247_v15 = vld [vmem:[#allocation2 + $0x854] ss:$8 sps:$4 sm:$0xff]  }
 0x6cd   :  { %2348 = vmatpush1.bf16.msra.mxu1 %v7202_v20 }
 0x6ce   :  { %2349 = vmatprep.subr.bf16.mxu1 %v7207_v21 }
 0x6d1   :  { %2350 = vmatpush1.bf16.msra.mxu1 %v7205_v45 }
 0x6d2   :  { %2351 = vmatprep.subr.bf16.mxu1 %v7210_v23 }
 0x6d5   :  { %2352 = vmatpush1.bf16.msra.mxu1 %v7208_v8 }
 0x6d6   :  { %2353 = vmatprep.subr.bf16.mxu1 %v7213_v24 }
 0x6d9   :  { %2354 = vmatpush1.bf16.msra.mxu1 %v7211_v9 }
 0x6da   :  { %6431 = vmatprep.subr.bf16.mxu1 %v7214_v25 }
 0x6dc   :  { %2372 = vmatmul.mubr.bf16.vlgmr.msra.gmra.mrb[16].mxu1 %v2245_v13 }
 0x6dd   :  { %6432 = vmatpush3.bf16.msra.mxu1 %v7215_v33 }
 0x6de   :  { %6433 = vmatprep.subr.bf16.mxu1 %v7216_v26 }
 0x6e1   :  { %6434 = vmatpush3.bf16.msra.mxu1 %v7217_v27 }
 0x6e2   :  { %6435 = vmatprep.subr.bf16.mxu1 %v7218_v18 }
 0x6e5   :  { %6436 = vmatpush3.bf16.msra.mxu1 %v7219_v22 }
 0x6e6   :  { %6437 = vmatprep.subr.bf16.mxu1 %v7220_v29 }
 0x6e9   :  { %6438 = vmatpush3.bf16.msra.mxu1 %v7221_v37 }
 0x6ea   :  { %6439 = vmatprep.subr.bf16.mxu1 %v7222_v31 }
 0x6ed   :  { %6440 = vmatpush3.bf16.msra.mxu1 %v7223_v32 }
 0x6ee   :  { %6441 = vmatprep.subr.bf16.mxu1 %v7224_v46  ;;  %v2140_v46 = vld [vmem:[#allocation7 + $0x33] ss:$0 sm:$0xff] }
 0x6f1   :  { %6442 = vmatpush3.bf16.msra.mxu1 %v7225_v48 }
 0x6f2   :  { %6443 = vmatprep.subr.bf16.mxu1 %v7226_v39 }
 0x6f5   :  { %6444 = vmatpush3.bf16.msra.mxu1 %v7227_v42 }
 0x6f6   :  { %6445 = vmatprep.subr.bf16.mxu1 %v7228_v12 }
 0x6f9   :  { %6446 = vmatpush3.bf16.msra.mxu1 %v7229_v55 }
 0x702   :  { %v3216_v49 = vpop.f32.mrb[8].mxu0 }
 0x703   :  { %v3225_v50 = vmul.f32 %v3216_v49, %v3216_v49  ;;  %v3218_v40 = vpop.f32.mrb[9].mxu0  ;;  %v3223_v58 = vmul.f32 0.5, %v3216_v49 }
 0x704   :  { %v3226_v51 = vmul.f32 %v3218_v40, %v3218_v40  ;;  %v3220_v52 = vpop.f32.mrb[10].mxu0  ;;  %v3224_v0 = vmul.f32 0.5, %v3218_v40 }
 0x705   :  { %v3227_v53 = vmul.f32 %v3225_v50, %v3216_v49  ;;  %v3221_v54 = vpop.f32.mrb[11].mxu0  ;;  %v7232_v50 = vld [vmem:[#allocation2 + $0x804] ss:$8 sps:$4 sm:$0xff]  }
 0x706   :  { %v3228_v56 = vmul.f32 %v3226_v51, %v3218_v40  ;;  %3533 = vmatprep.subr.bf16.mxu1 %v7232_v50  ;;  %v7233_v51 = vld [vmem:[#allocation2 + $0x810] ss:$8 sps:$4 sm:$0xff]   ;;  %v7238_v52 = vld [vmem:[#allocation2 + $0x824] ss:$8 sps:$4 sm:$0xff]  }
 0x707   :  { %v3229_v57 = vmul.f32 0.044715, %v3227_v53  ;;  %v7236_v53 = vld [vmem:[#allocation2 + $0x820] ss:$8 sps:$4 sm:$0xff]  }
 0x708   :  { %v3230_v30 = vmul.f32 0.044715, %v3228_v56  ;;  %v7265_v50 = vld [vmem:[#allocation4 + $0x1a8] sm:$0xff]  }
 0x709   :  { %v3231_v14 = vadd.f32 %v3229_v57, %v3216_v49  ;;  %v7230_v49 = vld [vmem:[#allocation2 + $0x800] ss:$8 sps:$4 sm:$0xff]  }
 0x70a   :  { %v3232_v59 = vadd.f32 %v3230_v30, %v3218_v40  ;;  %v7235_v40 = vld [vmem:[#allocation2 + $0x814] ss:$8 sps:$4 sm:$0xff]  }
 0x70b   :  { %v3233_v62 = vmul.f32 0.7978846, %v3231_v14 }
 0x70c   :  { %v3234_v63 = vmul.f32 0.7978846, %v3232_v59 }
 0x70d   :  { %7538 = vtanh.f32 %v3233_v62 }
 0x70e   :  { %7540 = vtanh.f32 %v3234_v63 }
 0x717   :  { %v7539_v1 = vpop.eup %7538 }
 0x718   :  { %v7541_v10 = vpop.eup %7540  ;;  %v3237_v61 = vadd.f32 1.0, %v7539_v1 }
 0x719   :  { %v3238_v4 = vadd.f32 1.0, %v7541_v10 }
 0x71a   :  { %v3239_v2 = vmul.f32 %v3237_v61, %v3223_v58 }
 0x71b   :  { %v3240_v3 = vmul.f32 %v3238_v4, %v3224_v0 }
 0x71c   :  { %v3273_v7 = vpack.c.bf16 %v3239_v2, %v3239_v2 }
 0x71d   :  { %v3274_v5 = vpack.c.bf16 %v3240_v3, %v3240_v3 }
 0x71f   :  { %3403 = vmatprep.mubr.bf16.mxu1 %v3274_v5 }
 0x720   :  { %3404 = vmatmul.mubr.bf16.vlgmr.msra.gmra.mrb[20].mxu1 %v3273_v7 }
 0x721   :  { %3565 = vmatprep.mubr.bf16.mxu1 %v7699_v44  ;;  %3534 = vmatpush1.bf16.msra.mxu1 %v7230_v49  ;;  %v7264_v49 = vld [vmem:[#allocation4 + $0x1e8] sm:$0xff]  }
 0x722   :  { %3535 = vmatprep.subr.bf16.mxu1 %v7235_v40  ;;  %v7266_v40 = vld [vmem:[#allocation4 + $0x1f0] sm:$0xff]  }
 0x725   :  { %3536 = vmatpush1.bf16.msra.mxu1 %v7233_v51  ;;  %v7267_v51 = vld [vmem:[#allocation4 + $0x1b0] sm:$0xff]  }
 0x726   :  { %3537 = vmatprep.subr.bf16.mxu1 %v7238_v52  ;;  %v7268_v52 = vld [vmem:[#allocation4 + $0x1f8] sm:$0xff]  }
 0x729   :  { %3538 = vmatpush1.bf16.msra.mxu1 %v7236_v53  ;;  %v7269_v53 = vld [vmem:[#allocation4 + $0x1b8] sm:$0xff]  }
 0x78f   :  { %v2223_v41 = vpop.f32.mrb[12].mxu1 }
 0x790   :  { %v6595_v43 = vpop.f32.mrb[13].mxu1  ;;  %v2224_v42 = vadd.f32 %v2223_v41, %v2140_v46  ;;  %v7241_v41 = vld [vmem:[#allocation2 + $0x834] ss:$8 sps:$4 sm:$0xff]  }
 0x791   :  { %v2226_v11 = vpop.f32.mrb[14].mxu1  ;;  %v7239_v43 = vld [vmem:[#allocation2 + $0x830] ss:$8 sps:$4 sm:$0xff]   ;;  %3539 = vmatprep.subr.bf16.mxu1 %v7241_v41 }
 0x792   :  { %v6596_v47 = vpop.f32.mrb[15].mxu1  ;;  %3540 = vmatpush1.bf16.msra.mxu1 %v7239_v43  ;;  %v7244_v11 = vld [vmem:[#allocation2 + $0x844] ss:$8 sps:$4 sm:$0xff]   ;;  %v7259_v46 = vld [vmem:[#allocation4 + $0x190] sm:$0xff]  }
 0x793   :  { %v7242_v47 = vld [vmem:[#allocation2 + $0x840] ss:$8 sps:$4 sm:$0xff]   ;;  %3541 = vmatprep.subr.bf16.mxu1 %v7244_v11 }
 0x796   :  { %3542 = vmatpush1.bf16.msra.mxu1 %v7242_v47 }
 0x797   :  { %3543 = vmatprep.subr.bf16.mxu1 %v7247_v15 }
 0x7af   :  { %v2373_v20 = vpop.f32.mrb[16].mxu1 }
 0x7b0   :  { %v2374_v21 = vadd.f32 %v2373_v20, %v2252_v16  ;;  %v2375_v45 = vpop.f32.mrb[17].mxu1  ;;  %v7245_v16 = vld [vmem:[#allocation2 + $0x850] ss:$8 sps:$4 sm:$0xff]   ;;  %v7248_v20 = vld [vmem:[#allocation2 + $0x860] ss:$8 sps:$4 sm:$0xff]  }
 0x7b1   :  { %v2376_v23 = vadd.f32 %v2375_v45, %v2256_v19  ;;  %v2377_v6 = vpop.f32.mrb[18].mxu1  ;;  %v7250_v19 = vld [vmem:[#allocation2 + $0x864] ss:$8 sps:$4 sm:$0xff]   ;;  %3544 = vmatpush1.bf16.msra.mxu1 %v7245_v16  ;;  %v7251_v45 = vld [vmem:[#allocation2 + $0x870] ss:$8 sps:$4 sm:$0xff]  }
 0x7b2   :  { %v2382_v8 = vmul.f32 %v2374_v21, %v2374_v21  ;;  %v2378_v24 = vpop.f32.mrb[19].mxu1  ;;  %v2380_v29 = vmul.f32 0.5, %v2374_v21  ;;  %3545 = vmatprep.subr.bf16.mxu1 %v7250_v19 }
 0x7b3   :  { %v2383_v36 = vmul.f32 %v2376_v23, %v2376_v23  ;;  %v2381_v31 = vmul.f32 0.5, %v2376_v23 }
 0x7b4   :  { %v2384_v28 = vmul.f32 %v2382_v8, %v2374_v21 }
 0x7b5   :  { %v2385_v9 = vmul.f32 %v2383_v36, %v2376_v23  ;;  %3546 = vmatpush1.bf16.msra.mxu1 %v7248_v20 }
 0x7b6   :  { %v2386_v17 = vmul.f32 0.044715, %v2384_v28 }
 0x7b7   :  { %v2387_v25 = vmul.f32 0.044715, %v2385_v9 }
 0x7b8   :  { %v2388_v33 = vadd.f32 %v2386_v17, %v2374_v21  ;;  %v7253_v21 = vld [vmem:[#allocation2 + $0x874] ss:$8 sps:$4 sm:$0xff]  }
 0x7b9   :  { %v2389_v13 = vadd.f32 %v2387_v25, %v2376_v23  ;;  %3547 = vmatprep.subr.bf16.mxu1 %v7253_v21  ;;  %v3420_v25 = vld [vmem:[#allocation7 + $0x6] ss:$0 sm:$0xff] }
 0x7ba   :  { %v2390_v26 = vmul.f32 0.7978846, %v2388_v33  ;;  %3548 = vmatpush1.bf16.msra.mxu1 %v7251_v45  ;;  %v7270_v45 = vld [vmem:[#allocation2 + $0x880] ss:$8 sps:$4 sm:$0xff]  }
 0x7bb   :  { %v2391_v27 = vmul.f32 0.7978846, %v2389_v13  ;;  %v3421_v13 = vld [vmem:[#allocation7 + $0x7] ss:$0 sm:$0xff] }
 0x7bc   :  { %7542 = vtanh.f32 %v2390_v26 }
 0x7bd   :  { %7544 = vtanh.f32 %v2391_v27 }
 0x7c6   :  { %v7543_v18 = vpop.eup %7542 }
 0x7c7   :  { %v7545_v22 = vpop.eup %7544  ;;  %v2394_v37 = vadd.f32 1.0, %v7543_v18 }
 0x7c8   :  { %v2395_v32 = vadd.f32 1.0, %v7545_v22  ;;  %v7254_v22 = vld [vmem:[#allocation4 + $0x1c0] sm:$0xff]  }
 0x7c9   :  { %v2396_v48 = vmul.f32 %v2394_v37, %v2380_v29  ;;  %v7255_v29 = vld [vmem:[#allocation4 + $0x180] sm:$0xff]   ;;  %6453 = vmatprep.subr.bf16.mxu1 %v7254_v22  ;;  %v7256_v37 = vld [vmem:[#allocation4 + $0x1c8] sm:$0xff]  }
 0x7ca   :  { %v2397_v39 = vmul.f32 %v2395_v32, %v2381_v31  ;;  %v7257_v31 = vld [vmem:[#allocation4 + $0x188] sm:$0xff]   ;;  %v7258_v32 = vld [vmem:[#allocation4 + $0x1d0] sm:$0xff]  }
 0x7cb   :  { %v7290_v22 = vld [vmem:[#allocation2 + $0x8e4] ss:$8 sps:$4 sm:$0xff]  }
 0x7cc   :  { %v2398_v12 = vadd.f32 %v2397_v39, %v2396_v48  ;;  %v7260_v48 = vld [vmem:[#allocation4 + $0x1d8] sm:$0xff]  }
 0x7cd   :  { %v7261_v39 = vld [vmem:[#allocation4 + $0x198] sm:$0xff]  }
 0x7ce   :  { %v8096_v55 = vadd.f32 %v2398_v12, %v2224_v42  ;;  %v7262_v42 = vld [vmem:[#allocation4 + $0x1e0] sm:$0xff]  }
 0x7cf   :  { %v7263_v12 = vld [vmem:[#allocation4 + $0x1a0] sm:$0xff]  }
 0x7d0   :  { %3422 = vadd.xlane.f32.xlu1 %v8096_v55 }
 0x7f3   :  { %v6447_v54 = vpop.f32.mrb[20].mxu1 }
 0x7f4   :  { %v6448_v56 = vpop.f32.mrb[21].mxu1 }
 0x7f5   :  { %v6449_v57 = vadd.f32 %v6448_v56, %v6447_v54  ;;  %v6450_v30 = vpop.f32.mrb[22].mxu1  ;;  %v7272_v54 = vld [vmem:[#allocation2 + $0x884] ss:$8 sps:$4 sm:$0xff]  }
 0x7f6   :  { %v6451_v14 = vpop.f32.mrb[23].mxu1 }
 0x7f7   :  { %v3412_v59 = vmul.f32 %v6449_v57, %v6449_v57  ;;  %v3411_v5 = vmul.f32 0.5, %v6449_v57 }
 0x7f9   :  { %v3413_v62 = vmul.f32 %v6449_v57, %v3412_v59 }
 0x7fb   :  { %v3414_v63 = vmul.f32 0.044715, %v3413_v62 }
 0x7fd   :  { %v3415_v1 = vadd.f32 %v6449_v57, %v3414_v63 }
 0x7ff   :  { %v3416_v10 = vmul.f32 0.7978846, %v3415_v1 }
 0x801   :  { %7546 = vtanh.f32 %v3416_v10 }
 0x80b   :  { %v7547_v0 = vpop.eup %7546 }
 0x80c   :  { %v3418_v3 = vadd.f32 1.0, %v7547_v0 }
 0x80e   :  { %v8100_v7 = vmul.f32 %v3418_v3, %v3411_v5 }
 0x85d   :  { %v3423_v58 = vpop.xlane.xlu1 %3422 }
 0x85e   :  { %v3425_v61 = vmul.f32 0.0078125, %v3423_v58 }
 0x860   :  { %v3426_v4 = vsub.f32 %v8096_v55, %v3425_v61 }
 0x862   :  { %v3427_v2 = vmul.f32 %v3426_v4, %v3426_v4 }
 0x864   :  { %3428 = vadd.xlane.f32.xlu1 %v3427_v2 }
 0x868   :  { %3774 = vadd.xlane.f32.xlu1 %v8100_v7 }
 0x8f1   :  { %v3429_v23 = vpop.xlane.xlu1 %3428 }
 0x8f2   :  { %v3430_v6 = vmul.f32 0.0078125, %v3429_v23 }
 0x8f4   :  { %v3431_v8 = vadd.f32 1e-05, %v3430_v6  ;;  %v7275_v6 = vld [vmem:[#allocation2 + $0x894] ss:$8 sps:$4 sm:$0xff]  }
 0x8f5   :  { %v3775_v24 = vpop.xlane.xlu1 %3774 }
 0x8f6   :  { %7548 = vrsqrt.f32 %v3431_v8  ;;  %v3776_v36 = vmul.f32 0.0078125, %v3775_v24  ;;  %v7273_v24 = vld [vmem:[#allocation2 + $0x890] ss:$8 sps:$4 sm:$0xff]  }
 0x8f8   :  { %v8104_v28 = vsub.f32 %v8100_v7, %v3776_v36  ;;  %v7278_v36 = vld [vmem:[#allocation2 + $0x8a4] ss:$8 sps:$4 sm:$0xff]  }
 0x8fa   :  { %v3778_v9 = vmul.f32 %v8104_v28, %v8104_v28 }
 0x8fc   :  { %3779 = vadd.xlane.f32.xlu1 %v3778_v9  ;;  %v7276_v9 = vld [vmem:[#allocation2 + $0x8a0] ss:$8 sps:$4 sm:$0xff]  }
 0x900   :  { %v7549_v17 = vpop.eup %7548 }
 0x901   :  { %v3433_v33 = vmul.f32 %v7549_v17, %v3426_v4  ;;  %v7281_v17 = vld [vmem:[#allocation2 + $0x8b4] ss:$8 sps:$4 sm:$0xff]  }
 0x903   :  { %v3434_v26 = vmul.f32 %v3433_v33, %v3420_v25  ;;  %v7279_v25 = vld [vmem:[#allocation2 + $0x8b0] ss:$8 sps:$4 sm:$0xff]   ;;  %v7284_v33 = vld [vmem:[#allocation2 + $0x8c4] ss:$8 sps:$4 sm:$0xff]  }
 0x905   :  { %v3435_v27 = vadd.f32 %v3434_v26, %v3421_v13  ;;  %v7282_v13 = vld [vmem:[#allocation2 + $0x8c0] ss:$8 sps:$4 sm:$0xff]   ;;  %v7287_v26 = vld [vmem:[#allocation2 + $0x8d4] ss:$8 sps:$4 sm:$0xff]  }
 0x907   :  { %v3452_v18 = vpack.c.bf16 %v3435_v27, %v3435_v27 }
 0x909   :  { %3566 = vmatmul.mubr.bf16.vlgmr.msra.gmra.mrb[24].mxu1 %v3452_v18  ;;  %v7285_v18 = vld [vmem:[#allocation2 + $0x8d0] ss:$8 sps:$4 sm:$0xff]  }
 0x90a   :  { %6454 = vmatpush3.bf16.msra.mxu1 %v7255_v29 }
 0x90b   :  { %6455 = vmatprep.subr.bf16.mxu1 %v7256_v37  ;;  %v3772_v37 = vld [vmem:[#allocation7 + $0x30] ss:$0 sm:$0xff] }
 0x90e   :  { %6456 = vmatpush3.bf16.msra.mxu1 %v7257_v31  ;;  %v7288_v31 = vld [vmem:[#allocation2 + $0x8e0] ss:$8 sps:$4 sm:$0xff]  }
 0x90f   :  { %6457 = vmatprep.subr.bf16.mxu1 %v7258_v32  ;;  %v7293_v32 = vld [vmem:[#allocation2 + $0x8f4] ss:$8 sps:$4 sm:$0xff]  }
 0x912   :  { %6458 = vmatpush3.bf16.msra.mxu1 %v7259_v46 }
 0x913   :  { %6459 = vmatprep.subr.bf16.mxu1 %v7260_v48  ;;  %v3773_v48 = vld [vmem:[#allocation7 + $0x31] ss:$0 sm:$0xff] }
 0x916   :  { %6460 = vmatpush3.bf16.msra.mxu1 %v7261_v39  ;;  %v7291_v39 = vld [vmem:[#allocation2 + $0x8f0] ss:$8 sps:$4 sm:$0xff]  }
 0x917   :  { %6461 = vmatprep.subr.bf16.mxu1 %v7262_v42 }
 0x91a   :  { %6462 = vmatpush3.bf16.msra.mxu1 %v7263_v12 }
 0x91b   :  { %6463 = vmatprep.subr.bf16.mxu1 %v7264_v49  ;;  %v7294_v49 = vld [vmem:[#allocation4 + $0x240] sm:$0xff]  }
 0x91e   :  { %6464 = vmatpush3.bf16.msra.mxu1 %v7265_v50  ;;  %v7295_v50 = vld [vmem:[#allocation4 + $0x200] sm:$0xff]  }
 0x91f   :  { %6465 = vmatprep.subr.bf16.mxu1 %v7266_v40  ;;  %v7296_v40 = vld [vmem:[#allocation4 + $0x248] sm:$0xff]  }
 0x922   :  { %6466 = vmatpush3.bf16.msra.mxu1 %v7267_v51  ;;  %v7298_v51 = vld [vmem:[#allocation4 + $0x250] sm:$0xff]  }
 0x923   :  { %6467 = vmatprep.subr.bf16.mxu1 %v7268_v52  ;;  %v7299_v52 = vld [vmem:[#allocation4 + $0x210] sm:$0xff]  }
 0x926   :  { %6468 = vmatpush3.bf16.msra.mxu1 %v7269_v53  ;;  %v7300_v53 = vld [vmem:[#allocation4 + $0x258] sm:$0xff]  }
 0x927   :  { %3884 = vmatprep.subr.bf16.mxu1 %v7272_v54  ;;  %v7301_v54 = vld [vmem:[#allocation4 + $0x218] sm:$0xff]  }
 0x989   :  { %v3780_v15 = vpop.xlane.xlu1 %3779 }
 0x98a   :  { %v3781_v20 = vmul.f32 0.0078125, %v3780_v15 }
 0x98c   :  { %v3782_v8 = vadd.f32 1e-05, %v3781_v20 }
 0x9dc   :  { %v3567_v56 = vpop.f32.mrb[24].mxu1 }
 0x9dd   :  { %v3576_v57 = vmul.f32 %v3567_v56, %v3567_v56  ;;  %v3569_v30 = vpop.f32.mrb[25].mxu1  ;;  %v3574_v41 = vmul.f32 0.5, %v3567_v56 }
 0x9de   :  { %v3577_v14 = vmul.f32 %v3569_v30, %v3569_v30  ;;  %v3571_v59 = vpop.f32.mrb[26].mxu1  ;;  %v3575_v11 = vmul.f32 0.5, %v3569_v30 }
 0x9df   :  { %v3578_v62 = vmul.f32 %v3576_v57, %v3567_v56  ;;  %v3572_v63 = vpop.f32.mrb[27].mxu1  ;;  %v7303_v57 = vld [vmem:[#allocation4 + $0x220] sm:$0xff]   ;;  %v7306_v59 = vld [vmem:[#allocation4 + $0x270] sm:$0xff]  }
 0x9e0   :  { %v3579_v1 = vmul.f32 %v3577_v14, %v3569_v30  ;;  %v7305_v14 = vld [vmem:[#allocation4 + $0x228] sm:$0xff]   ;;  %v7308_v63 = vld [vmem:[#allocation4 + $0x278] sm:$0xff]  }
 0x9e1   :  { %v3580_v10 = vmul.f32 0.044715, %v3578_v62  ;;  %v7307_v62 = vld [vmem:[#allocation4 + $0x230] sm:$0xff]  }
 0x9e2   :  { %v3581_v58 = vmul.f32 0.044715, %v3579_v1  ;;  %v7309_v1 = vld [vmem:[#allocation4 + $0x238] sm:$0xff]  }
 0x9e3   :  { %v3582_v61 = vadd.f32 %v3580_v10, %v3567_v56  ;;  %v7302_v56 = vld [vmem:[#allocation4 + $0x260] sm:$0xff]  }
 0x9e4   :  { %v3583_v0 = vadd.f32 %v3581_v58, %v3569_v30  ;;  %v7304_v30 = vld [vmem:[#allocation4 + $0x268] sm:$0xff]  }
 0x9e5   :  { %v3584_v4 = vmul.f32 0.7978846, %v3582_v61  ;;  %v7312_v10 = vld [vmem:[#allocation2 + $0xa04] ss:$8 sps:$4 sm:$0xff]  }
 0x9e6   :  { %v3585_v2 = vmul.f32 0.7978846, %v3583_v0 }
 0x9e7   :  { %7550 = vtanh.f32 %v3584_v4 }
 0x9e8   :  { %7552 = vtanh.f32 %v3585_v2 }
 0x9e9   :  { %7554 = vrsqrt.f32 %v3782_v8 }
 0x9f1   :  { %v7551_v3 = vpop.eup %7550 }
 0x9f2   :  { %v7553_v5 = vpop.eup %7552  ;;  %v3588_v43 = vadd.f32 1.0, %v7551_v3 }
 0x9f3   :  { %v3589_v47 = vadd.f32 1.0, %v7553_v5  ;;  %v7555_v27 = vpop.eup %7554 }
 0x9f4   :  { %v3590_v16 = vmul.f32 %v3588_v43, %v3574_v41  ;;  %v3784_v29 = vmul.f32 %v7555_v27, %v8104_v28  ;;  %v7297_v28 = vld [vmem:[#allocation4 + $0x208] sm:$0xff]  }
 0x9f5   :  { %v3591_v19 = vmul.f32 %v3589_v47, %v3575_v11  ;;  %v7310_v27 = vld [vmem:[#allocation2 + $0xa00] ss:$8 sps:$4 sm:$0xff]  }
 0x9f6   :  { %v3624_v23 = vpack.c.bf16 %v3590_v16, %v3590_v16  ;;  %v3785_v46 = vmul.f32 %v3784_v29, %v3772_v37  ;;  %v7313_v29 = vld [vmem:[#allocation2 + $0xa10] ss:$8 sps:$4 sm:$0xff]   ;;  %v7318_v37 = vld [vmem:[#allocation2 + $0xa24] ss:$8 sps:$4 sm:$0xff]  }
 0x9f7   :  { %v3625_v21 = vpack.c.bf16 %v3591_v19, %v3591_v19 }
 0x9f8   :  { %v3786_v42 = vadd.f32 %v3785_v46, %v3773_v48  ;;  %v7319_v46 = vld [vmem:[#allocation2 + $0xa30] ss:$8 sps:$4 sm:$0xff]   ;;  %v7324_v48 = vld [vmem:[#allocation2 + $0xa44] ss:$8 sps:$4 sm:$0xff]  }
 0x9f9   :  { %3754 = vmatprep.mubr.bf16.mxu1 %v3625_v21 }
 0x9fa   :  { %3755 = vmatmul.mubr.bf16.vlgmr.msra.gmra.mrb[28].mxu1 %v3624_v23  ;;  %v3803_v12 = vpack.c.bf16 %v3786_v42, %v3786_v42  ;;  %v7327_v42 = vld [vmem:[#allocation2 + $0xa54] ss:$8 sps:$4 sm:$0xff]  }
 0x9fb   :  { %3885 = vmatpush1.bf16.msra.mxu1 %v7270_v45  ;;  %3916 = vmatprep.mubr.bf16.mxu1 %v7699_v44 }
 0x9fc   :  { %3886 = vmatprep.subr.bf16.mxu1 %v7275_v6 }
 0x9ff   :  { %3887 = vmatpush1.bf16.msra.mxu1 %v7273_v24 }
 0xa00   :  { %3888 = vmatprep.subr.bf16.mxu1 %v7278_v36 }
 0xa03   :  { %3889 = vmatpush1.bf16.msra.mxu1 %v7276_v9 }
 0xa04   :  { %3890 = vmatprep.subr.bf16.mxu1 %v7281_v17 }
 0xa07   :  { %3891 = vmatpush1.bf16.msra.mxu1 %v7279_v25 }
 0xa08   :  { %3892 = vmatprep.subr.bf16.mxu1 %v7284_v33 }
 0xa0b   :  { %3893 = vmatpush1.bf16.msra.mxu1 %v7282_v13 }
 0xa0c   :  { %3894 = vmatprep.subr.bf16.mxu1 %v7287_v26 }
 0xa0f   :  { %3895 = vmatpush1.bf16.msra.mxu1 %v7285_v18 }
 0xa10   :  { %3896 = vmatprep.subr.bf16.mxu1 %v7290_v22  ;;  %v7315_v22 = vld [vmem:[#allocation2 + $0xa14] ss:$8 sps:$4 sm:$0xff]  }
 0xa13   :  { %3897 = vmatpush1.bf16.msra.mxu1 %v7288_v31  ;;  %v7316_v31 = vld [vmem:[#allocation2 + $0xa20] ss:$8 sps:$4 sm:$0xff]  }
 0xa14   :  { %3898 = vmatprep.subr.bf16.mxu1 %v7293_v32  ;;  %v7321_v32 = vld [vmem:[#allocation2 + $0xa34] ss:$8 sps:$4 sm:$0xff]  }
 0xa17   :  { %3899 = vmatpush1.bf16.msra.mxu1 %v7291_v39  ;;  %v7322_v39 = vld [vmem:[#allocation2 + $0xa40] ss:$8 sps:$4 sm:$0xff]  }
 0xa18   :  { %6475 = vmatprep.subr.bf16.mxu1 %v7294_v49  ;;  %v7330_v49 = vld [vmem:[#allocation2 + $0xa64] ss:$8 sps:$4 sm:$0xff]  }
 0xa1a   :  { %3917 = vmatmul.mubr.bf16.vlgmr.msra.gmra.mrb[32].mxu1 %v3803_v12  ;;  %v7325_v12 = vld [vmem:[#allocation2 + $0xa50] ss:$8 sps:$4 sm:$0xff]  }
 0xa1b   :  { %6476 = vmatpush3.bf16.msra.mxu1 %v7295_v50  ;;  %v7328_v50 = vld [vmem:[#allocation2 + $0xa60] ss:$8 sps:$4 sm:$0xff]  }
 0xa1c   :  { %6477 = vmatprep.subr.bf16.mxu1 %v7296_v40  ;;  %v7333_v40 = vld [vmem:[#allocation2 + $0xa74] ss:$8 sps:$4 sm:$0xff]  }
 0xa1f   :  { %6478 = vmatpush3.bf16.msra.mxu1 %v7297_v28  ;;  %v7331_v28 = vld [vmem:[#allocation2 + $0xa70] ss:$8 sps:$4 sm:$0xff]  }
 0xa20   :  { %6479 = vmatprep.subr.bf16.mxu1 %v7298_v51  ;;  %v7336_v51 = vld [vmem:[#allocation2 + $0xa84] ss:$8 sps:$4 sm:$0xff]  }
 0xa23   :  { %6480 = vmatpush3.bf16.msra.mxu1 %v7299_v52  ;;  %v7334_v52 = vld [vmem:[#allocation2 + $0xa80] ss:$8 sps:$4 sm:$0xff]  }
 0xa24   :  { %6481 = vmatprep.subr.bf16.mxu1 %v7300_v53  ;;  %v7339_v53 = vld [vmem:[#allocation2 + $0xa94] ss:$8 sps:$4 sm:$0xff]  }
 0xa27   :  { %6482 = vmatpush3.bf16.msra.mxu1 %v7301_v54  ;;  %v7337_v54 = vld [vmem:[#allocation2 + $0xa90] ss:$8 sps:$4 sm:$0xff]  }
 0xa28   :  { %6483 = vmatprep.subr.bf16.mxu1 %v7302_v56  ;;  %v7342_v56 = vld [vmem:[#allocation2 + $0xaa4] ss:$8 sps:$4 sm:$0xff]  }
 0xa2b   :  { %6484 = vmatpush3.bf16.msra.mxu1 %v7303_v57  ;;  %v7340_v57 = vld [vmem:[#allocation2 + $0xaa0] ss:$8 sps:$4 sm:$0xff]  }
 0xa2c   :  { %6485 = vmatprep.subr.bf16.mxu1 %v7304_v30  ;;  %v7345_v30 = vld [vmem:[#allocation2 + $0xab4] ss:$8 sps:$4 sm:$0xff]  }
 0xa2f   :  { %6486 = vmatpush3.bf16.msra.mxu1 %v7305_v14  ;;  %v7343_v14 = vld [vmem:[#allocation2 + $0xab0] ss:$8 sps:$4 sm:$0xff]  }
 0xa30   :  { %6487 = vmatprep.subr.bf16.mxu1 %v7306_v59  ;;  %v7348_v59 = vld [vmem:[#allocation2 + $0xac4] ss:$8 sps:$4 sm:$0xff]  }
 0xa33   :  { %6488 = vmatpush3.bf16.msra.mxu1 %v7307_v62  ;;  %v7346_v62 = vld [vmem:[#allocation2 + $0xac0] ss:$8 sps:$4 sm:$0xff]  }
 0xa34   :  { %6489 = vmatprep.subr.bf16.mxu1 %v7308_v63  ;;  %v7351_v63 = vld [vmem:[#allocation2 + $0xad4] ss:$8 sps:$4 sm:$0xff]  }
 0xa37   :  { %6490 = vmatpush3.bf16.msra.mxu1 %v7309_v1  ;;  %v7349_v1 = vld [vmem:[#allocation2 + $0xad0] ss:$8 sps:$4 sm:$0xff]  }
 0xa38   :  { %4330 = vmatprep.subr.bf16.mxu1 %v7312_v10  ;;  %v7354_v10 = vld [vmem:[#allocation2 + $0xae4] ss:$8 sps:$4 sm:$0xff]  }
 0xacd   :  { %v6469_v58 = vpop.f32.mrb[28].mxu1 }
 0xace   :  { %v6470_v61 = vpop.f32.mrb[29].mxu1 }
 0xacf   :  { %v8110_v0 = vadd.f32 %v6470_v61, %v6469_v58  ;;  %v6472_v4 = vpop.f32.mrb[30].mxu1  ;;  %v7352_v58 = vld [vmem:[#allocation2 + $0xae0] ss:$8 sps:$4 sm:$0xff]   ;;  %v7357_v61 = vld [vmem:[#allocation2 + $0xaf4] ss:$8 sps:$4 sm:$0xff]  }
 0xad0   :  { %v6473_v2 = vpop.f32.mrb[31].mxu1  ;;  %v7355_v4 = vld [vmem:[#allocation2 + $0xaf0] ss:$8 sps:$4 sm:$0xff]  }
 0xad1   :  { %v3763_v2 = vmul.f32 %v8110_v0, %v8110_v0 }
 0xaed   :  { %v3918_v3 = vpop.f32.mrb[32].mxu1 }
 0xaee   :  { %v3927_v5 = vmul.f32 %v3918_v3, %v3918_v3  ;;  %v3920_v41 = vpop.f32.mrb[33].mxu1  ;;  %v3925_v36 = vmul.f32 0.5, %v3918_v3 }
 0xaef   :  { %v3928_v43 = vmul.f32 %v3920_v41, %v3920_v41  ;;  %v3922_v11 = vpop.f32.mrb[34].mxu1  ;;  %v3926_v17 = vmul.f32 0.5, %v3920_v41 }
 0xaf0   :  { %v3929_v47 = vmul.f32 %v3927_v5, %v3918_v3  ;;  %v3923_v15 = vpop.f32.mrb[35].mxu1 }
 0xaf1   :  { %v3930_v16 = vmul.f32 %v3928_v43, %v3920_v41 }
 0xaf2   :  { %v3931_v19 = vmul.f32 0.044715, %v3929_v47 }
 0xaf3   :  { %v3932_v20 = vmul.f32 0.044715, %v3930_v16 }
 0xaf4   :  { %v3933_v21 = vadd.f32 %v3931_v19, %v3918_v3  ;;  %v3764_v3 = vmul.f32 %v8110_v0, %v3763_v2  ;;  %v7375_v2 = vld [vmem:[#allocation2 + $0xbb0] ss:$8 sps:$4 sm:$0xff]  }
 0xaf5   :  { %v3934_v45 = vadd.f32 %v3932_v20, %v3920_v41 }
 0xaf6   :  { %v3935_v23 = vmul.f32 0.7978846, %v3933_v21  ;;  %v3765_v5 = vmul.f32 0.044715, %v3764_v3  ;;  %v7380_v3 = vld [vmem:[#allocation2 + $0xbc4] ss:$8 sps:$4 sm:$0xff]  }
 0xaf7   :  { %v3936_v6 = vmul.f32 0.7978846, %v3934_v45 }
 0xaf8   :  { %7556 = vtanh.f32 %v3935_v23  ;;  %v3766_v41 = vadd.f32 %v8110_v0, %v3765_v5  ;;  %v7378_v5 = vld [vmem:[#allocation2 + $0xbc0] ss:$8 sps:$4 sm:$0xff]  }
 0xaf9   :  { %7558 = vtanh.f32 %v3936_v6 }
 0xafa   :  { %v3767_v16 = vmul.f32 0.7978846, %v3766_v41  ;;  %v7383_v41 = vld [vmem:[#allocation2 + $0xbd4] ss:$8 sps:$4 sm:$0xff]  }
 0xafc   :  { %7560 = vtanh.f32 %v3767_v16  ;;  %v7389_v16 = vld [vmem:[#allocation2 + $0xbf4] ss:$8 sps:$4 sm:$0xff]  }
 0xb02   :  { %v7557_v8 = vpop.eup %7556 }
 0xb03   :  { %v7559_v24 = vpop.eup %7558  ;;  %v3939_v9 = vadd.f32 1.0, %v7557_v8 }
 0xb04   :  { %v3940_v25 = vadd.f32 1.0, %v7559_v24 }
 0xb05   :  { %v3941_v33 = vmul.f32 %v3939_v9, %v3925_v36  ;;  %v3762_v36 = vmul.f32 0.5, %v8110_v0  ;;  %v7360_v0 = vld [vmem:[#allocation4 + $0x2d0] sm:$0xff]  }
 0xb06   :  { %v3942_v13 = vmul.f32 %v3940_v25, %v3926_v17  ;;  %v7561_v8 = vpop.eup %7560 }
 0xb07   :  { %v3975_v18 = vpack.c.bf16 %v3941_v33, %v3941_v33  ;;  %v3769_v24 = vadd.f32 1.0, %v7561_v8  ;;  %v7391_v8 = vld [vmem:[#allocation4 + $0x308] sm:$0xff]  }
 0xb08   :  { %v3976_v26 = vpack.c.bf16 %v3942_v13, %v3942_v13 }
 0xb09   :  { %v3770_v17 = vmul.f32 %v3769_v24, %v3762_v36  ;;  %v7392_v24 = vld [vmem:[#allocation4 + $0x310] sm:$0xff]   ;;  %v7393_v36 = vld [vmem:[#allocation4 + $0x318] sm:$0xff]  }
 0xb0a   :  { %4105 = vmatprep.mubr.bf16.mxu1 %v3976_v26 }
 0xb0b   :  { %4106 = vmatmul.mubr.bf16.vlgmr.msra.gmra.mrb[36].mxu1 %v3975_v18  ;;  %v3771_v26 = vadd.f32 %v3770_v17, %v8096_v55  ;;  %v7361_v55 = vld [vmem:[#allocation4 + $0x2d8] sm:$0xff]   ;;  %v7395_v17 = vld [vmem:[#allocation4 + $0x328] sm:$0xff]  }
 0xb0c   :  { %4331 = vmatpush1.bf16.msra.mxu1 %v7310_v27 }
 0xb0d   :  { %4332 = vmatprep.subr.bf16.mxu1 %v7315_v22  ;;  %v4155_v22 = vpack.c.bf16 %v3771_v26, %v3771_v26 }
 0xb10   :  { %4333 = vmatpush1.bf16.msra.mxu1 %v7313_v29  ;;  %v7358_v29 = vld [vmem:[#allocation4 + $0x2c0] sm:$0xff]  }
 0xb11   :  { %4334 = vmatprep.subr.bf16.mxu1 %v7318_v37  ;;  %6598 = vmatpush3.bf16.msra.mxu0 %v7358_v29  ;;  %v7359_v37 = vld [vmem:[#allocation4 + $0x2c8] sm:$0xff]  }
 0xb12   :  { %6599 = vmatprep.subr.bf16.mxu0 %v7697_v60 }
 0xb14   :  { %4335 = vmatpush1.bf16.msra.mxu1 %v7316_v31  ;;  %v7363_v31 = vld [vmem:[#allocation4 + $0x2e8] sm:$0xff]  }
 0xb15   :  { %4336 = vmatprep.subr.bf16.mxu1 %v7321_v32  ;;  %6600 = vmatpush3.bf16.msra.mxu0 %v7359_v37  ;;  %v7364_v32 = vld [vmem:[#allocation4 + $0x2f0] sm:$0xff]  }
 0xb16   :  { %6601 = vmatprep.subr.bf16.mxu0 %v7697_v60 }
 0xb18   :  { %4337 = vmatpush1.bf16.msra.mxu1 %v7319_v46  ;;  %v7365_v46 = vld [vmem:[#allocation4 + $0x2f8] sm:$0xff]  }
 0xb19   :  { %4338 = vmatprep.subr.bf16.mxu1 %v7324_v48  ;;  %6602 = vmatpush3.bf16.msra.mxu0 %v7360_v0  ;;  %v7368_v48 = vld [vmem:[#allocation2 + $0xb84] ss:$8 sps:$4 sm:$0xff]  }
 0xb1a   :  { %6603 = vmatprep.subr.bf16.mxu0 %v7697_v60 }
 0xb1c   :  { %4339 = vmatpush1.bf16.msra.mxu1 %v7322_v39  ;;  %v4158_v39 = vld [vmem:[#allocation7 + $0x35] ss:$8 sm:$0x3] }
 0xb1d   :  { %4340 = vmatprep.subr.bf16.mxu1 %v7327_v42  ;;  %6604 = vmatpush3.bf16.msra.mxu0 %v7361_v55  ;;  %v4163_v42 = vrot.slane %v4158_v39, %v7892_v35 }
 0xb1e   :  { %6605 = vmatprep.subr.bf16.mxu0 %v7697_v60 }
 0xb20   :  { %4341 = vmatpush1.bf16.msra.mxu1 %v7325_v12 }
 0xb21   :  { %4342 = vmatprep.subr.bf16.mxu1 %v7330_v49 }
 0xb24   :  { %4343 = vmatpush1.bf16.msra.mxu1 %v7328_v50 }
 0xb25   :  { %4344 = vmatprep.subr.bf16.mxu1 %v7333_v40 }
 0xb28   :  { %4345 = vmatpush1.bf16.msra.mxu1 %v7331_v28 }
 0xb29   :  { %4346 = vmatprep.subr.bf16.mxu1 %v7336_v51  ;;  %v4167_v51 = vrot.slane %v4158_v39, %v7890_v34 }
 0xb2c   :  { %4347 = vmatpush1.bf16.msra.mxu1 %v7334_v52 }
 0xb2d   :  { %4348 = vmatprep.subr.bf16.mxu1 %v7339_v53 }
 0xb30   :  { %4349 = vmatpush1.bf16.msra.mxu1 %v7337_v54 }
 0xb31   :  { %4350 = vmatprep.subr.bf16.mxu1 %v7342_v56 }
 0xb34   :  { %4351 = vmatpush1.bf16.msra.mxu1 %v7340_v57 }
 0xb35   :  { %4352 = vmatprep.subr.bf16.mxu1 %v7345_v30 }
 0xb38   :  { %4353 = vmatpush1.bf16.msra.mxu1 %v7343_v14  ;;  %v7366_v14 = vld [vmem:[#allocation2 + $0xb80] ss:$8 sps:$4 sm:$0xff]  }
 0xb39   :  { %4354 = vmatprep.subr.bf16.mxu1 %v7348_v59 }
 0xb3c   :  { %4355 = vmatpush1.bf16.msra.mxu1 %v7346_v62  ;;  %v7371_v62 = vld [vmem:[#allocation2 + $0xb94] ss:$8 sps:$4 sm:$0xff]  }
 0xb3d   :  { %4356 = vmatprep.subr.bf16.mxu1 %v7351_v63 }
 0xb40   :  { %4357 = vmatpush1.bf16.msra.mxu1 %v7349_v1  ;;  %v7369_v1 = vld [vmem:[#allocation2 + $0xb90] ss:$8 sps:$4 sm:$0xff]  }
 0xb41   :  { %4358 = vmatprep.subr.bf16.mxu1 %v7354_v10  ;;  %v7374_v10 = vld [vmem:[#allocation2 + $0xba4] ss:$8 sps:$4 sm:$0xff]  }
 0xb44   :  { %4359 = vmatpush1.bf16.msra.mxu1 %v7352_v58 }
 0xb45   :  { %4360 = vmatprep.subr.bf16.mxu1 %v7357_v61  ;;  %v7372_v61 = vld [vmem:[#allocation2 + $0xba0] ss:$8 sps:$4 sm:$0xff]  }
 0xb48   :  { %4361 = vmatpush1.bf16.msra.mxu1 %v7355_v4  ;;  %v7377_v4 = vld [vmem:[#allocation2 + $0xbb4] ss:$8 sps:$4 sm:$0xff]  }
 0xb49   :  { %6617 = vmatprep.subr.bf16.mxu1 %v7697_v60 }
 0xbde   :  { %v6491_v43 = vpop.f32.mrb[36].mxu1 }
 0xbdf   :  { %v6492_v11 = vpop.f32.mrb[37].mxu1 }
 0xbe0   :  { %v6493_v47 = vadd.f32 %v6492_v11, %v6491_v43  ;;  %v6494_v15 = vpop.f32.mrb[38].mxu1  ;;  %v7381_v43 = vld [vmem:[#allocation2 + $0xbd0] ss:$8 sps:$4 sm:$0xff]   ;;  %v7386_v11 = vld [vmem:[#allocation2 + $0xbe4] ss:$8 sps:$4 sm:$0xff]  }
 0xbe1   :  { %v6495_v19 = vpop.f32.mrb[39].mxu1  ;;  %v7384_v15 = vld [vmem:[#allocation2 + $0xbe0] ss:$8 sps:$4 sm:$0xff]  }
 0xbe2   :  { %v4114_v20 = vmul.f32 %v6493_v47, %v6493_v47  ;;  %v4113_v25 = vmul.f32 0.5, %v6493_v47 }
 0xbe4   :  { %v4115_v21 = vmul.f32 %v6493_v47, %v4114_v20 }
 0xbe6   :  { %v4116_v45 = vmul.f32 0.044715, %v4115_v21  ;;  %v7387_v21 = vld [vmem:[#allocation2 + $0xbf0] ss:$8 sps:$4 sm:$0xff]  }
 0xbe8   :  { %v4117_v23 = vadd.f32 %v6493_v47, %v4116_v45 }
 0xbea   :  { %v4118_v6 = vmul.f32 0.7978846, %v4117_v23 }
 0xbec   :  { %7562 = vtanh.f32 %v4118_v6  ;;  %v7390_v6 = vld [vmem:[#allocation4 + $0x300] sm:$0xff]  }
 0xbf6   :  { %v7563_v9 = vpop.eup %7562 }
 0xbf7   :  { %v4120_v33 = vadd.f32 1.0, %v7563_v9  ;;  %v7394_v9 = vld [vmem:[#allocation4 + $0x320] sm:$0xff]  }
 0xbf9   :  { %v4121_v13 = vmul.f32 %v4120_v33, %v4113_v25  ;;  %v7396_v25 = vld [vmem:[#allocation4 + $0x330] sm:$0xff]   ;;  %v7397_v33 = vld [vmem:[#allocation4 + $0x338] sm:$0xff]  }
 0xbfb   :  { %v4122_v27 = vadd.f32 %v4121_v13, %v8100_v7  ;;  %v7362_v7 = vld [vmem:[#allocation4 + $0x2e0] sm:$0xff]  }
 0xbfc   :  { %6606 = vmatpush3.bf16.msra.mxu0 %v7362_v7 }
 0xbfd   :  { %v4156_v18 = vpack.c.bf16 %v4122_v27, %v4122_v27  ;;  %6607 = vmatprep.subr.bf16.mxu0 %v7697_v60 }
 0xbff   :  { %4362 = vmatprep.mubr.bf16.mxu1 %v4156_v18 }
 0xc00   :  { %4363 = vmatmul.mubr.bf16.vlgmr.msra.gmra.mrb[40].mxu1 %v4155_v22  ;;  %6608 = vmatpush3.bf16.msra.mxu0 %v7363_v31  ;;  %v4507_v22 = vld [vmem:[#allocation7 + $0x37] ss:$8 sm:$0x3] }
 0xc01   :  { %6633 = vmatprep.mubr.msk.bf16.mxu1 %vm7698_vm0, %v7697_v60  ;;  %6609 = vmatprep.subr.bf16.mxu0 %v7697_v60  ;;  %v4512_v29 = vrot.slane %v4507_v22, %v7892_v35  ;;  %v4516_v37 = vrot.slane %v4507_v22, %v7890_v34  ;;  %v7407_v22 = vld [vmem:[#allocation6 + $0x48] ss:$12 sps:$4 sm:$0xff]  }
 0xc02   :  { %6618 = vmatpush3.bf16.msra.mxu1 %v7390_v6  ;;  %v7398_v6 = vld [vmem:[#allocation6] ss:$12 sps:$4 sm:$0xff]  }
 0xc03   :  { %6619 = vmatprep.subr.bf16.mxu1 %v7697_v60 }
 0xc04   :  { %6610 = vmatpush3.bf16.msra.mxu0 %v7364_v32 }
 0xc05   :  { %6611 = vmatprep.subr.bf16.mxu0 %v7697_v60 }
 0xc06   :  { %6620 = vmatpush3.bf16.msra.mxu1 %v7391_v8  ;;  %v7400_v8 = vld [vmem:[#allocation6 + $0x4] ss:$12 sps:$4 sm:$0xff]  }
 0xc07   :  { %6621 = vmatprep.subr.bf16.mxu1 %v7697_v60 }
 0xc08   :  { %6612 = vmatpush3.bf16.msra.mxu0 %v7365_v46 }
 0xc09   :  { %4599 = vmatprep.subr.bf16.mxu0 %v7368_v48 }
 0xc0a   :  { %6622 = vmatpush3.bf16.msra.mxu1 %v7392_v24  ;;  %v7403_v24 = vld [vmem:[#allocation6 + $0x1c] ss:$12 sps:$4 sm:$0xff]  }
 0xc0b   :  { %6623 = vmatprep.subr.bf16.mxu1 %v7697_v60 }
 0xc0e   :  { %6624 = vmatpush3.bf16.msra.mxu1 %v7393_v36  ;;  %v7401_v36 = vld [vmem:[#allocation6 + $0x18] ss:$12 sps:$4 sm:$0xff]  }
 0xc0f   :  { %6625 = vmatprep.subr.bf16.mxu1 %v7697_v60 }
 0xc12   :  { %6626 = vmatpush3.bf16.msra.mxu1 %v7394_v9  ;;  %v7406_v9 = vld [vmem:[#allocation6 + $0x34] ss:$12 sps:$4 sm:$0xff]  }
 0xc13   :  { %6627 = vmatprep.subr.bf16.mxu1 %v7697_v60 }
 0xc16   :  { %6628 = vmatpush3.bf16.msra.mxu1 %v7395_v17  ;;  %v7425_v17 = vld [vmem:[#allocation6 + $0xc8] ss:$12 sps:$4 sm:$0xff]  }
 0xc17   :  { %6629 = vmatprep.subr.bf16.mxu1 %v7697_v60 }
 0xc1a   :  { %6630 = vmatpush3.bf16.msra.mxu1 %v7396_v25  ;;  %v7426_v25 = vld [vmem:[#allocation6 + $0x8] ss:$12 sps:$4 sm:$0xff]  }
 0xc1b   :  { %6631 = vmatprep.subr.bf16.mxu1 %v7697_v60 }
 0xc1e   :  { %6632 = vmatpush3.bf16.msra.mxu1 %v7397_v33  ;;  %v7404_v33 = vld [vmem:[#allocation6 + $0x30] ss:$12 sps:$4 sm:$0xff]  }
 0xc1f   :  { %6515 = vmatprep.subr.bf16.mxu1 %v7425_v17  ;;  %v7457_v17 = vld [vmem:[#allocation6 + $0x168] ss:$12 sps:$4 sm:$0xff]  }
 0xcd3   :  { %v4364_v12 = vpop.f32.mrb[40].mxu1 }
 0xcd4   :  { %v4365_v49 = vadd.f32 %v4364_v12, %v4163_v42  ;;  %v4366_v50 = vpop.f32.mrb[41].mxu1 }
 0xcd5   :  { %v4368_v40 = vpop.f32.mrb[42].mxu1  ;;  %v4367_v52 = vadd.f32 %v4366_v50, %v4167_v51 }
 0xcd6   :  { %v4369_v28 = vpop.f32.mrb[43].mxu1  ;;  %4380 = vrot.lane.b32.xlu1 %v4365_v49, %s7686_s7 }
 0xcd7   :  { %v4372_v53 = vmul.f32 %v4367_v52, %v4367_v52  ;;  %v4371_v20 = vmul.f32 0.5, %v4367_v52 }
 0xcd9   :  { %v4373_v54 = vmul.f32 %v4372_v53, %v4367_v52 }
 0xcdb   :  { %v4374_v30 = vmul.f32 0.044715, %v4373_v54 }
 0xcdd   :  { %v4375_v63 = vadd.f32 %v4374_v30, %v4367_v52 }
 0xcdf   :  { %v4376_v58 = vmul.f32 0.7978846, %v4375_v63 }
 0xce1   :  { %7564 = vtanh.f32 %v4376_v58 }
 0xceb   :  { %v7565_v47 = vpop.eup %7564 }
 0xcec   :  { %v4378_v19 = vadd.f32 1.0, %v7565_v47 }
 0xcee   :  { %v4379_v45 = vmul.f32 %v4378_v19, %v4371_v20 }
 0xcf0   :  { %v4505_v23 = vpack.c.bf16 %v4379_v45, %v4379_v45 }
 0xd48   :  { %v4381_v56 = vpop.permute.xlu1 %4380 }
 0xd49   :  { %v4382_v57 = vmul.f32 %v4381_v56, %v4365_v49 }
 0xd4b   :  { %v4399_v59 = vpack.c.bf16 %v4382_v57, %v4382_v57 }
 0xd4d   :  { %6614 = vmatmul.mubr.bf16.vlgmr.msra.gmra.mrb[12].mxu0 %v4399_v59  ;;  %v4400_v59 = vld [vmem:[#allocation7 + $0x36] ss:$0 sm:$0xff] }
 0xd4e   :  { %4600 = vmatpush1.bf16.msra.mxu0 %v7366_v14  ;;  %4631 = vmatprep.mubr.bf16.mxu0 %v7699_v44 }
 0xd4f   :  { %4601 = vmatprep.subr.bf16.mxu0 %v7371_v62 }
 0xd52   :  { %4602 = vmatpush1.bf16.msra.mxu0 %v7369_v1 }
 0xd53   :  { %4603 = vmatprep.subr.bf16.mxu0 %v7374_v10 }
 0xd56   :  { %4604 = vmatpush1.bf16.msra.mxu0 %v7372_v61 }
 0xd57   :  { %4605 = vmatprep.subr.bf16.mxu0 %v7377_v4 }
 0xd5a   :  { %4606 = vmatpush1.bf16.msra.mxu0 %v7375_v2 }
 0xd5b   :  { %4607 = vmatprep.subr.bf16.mxu0 %v7380_v3 }
 0xd5e   :  { %4608 = vmatpush1.bf16.msra.mxu0 %v7378_v5 }
 0xd5f   :  { %4609 = vmatprep.subr.bf16.mxu0 %v7383_v41  ;;  %v4677_v41 = vld [vmem:[#allocation7 + $0x60] ss:$0 sm:$0xff] }
 0xd62   :  { %4610 = vmatpush1.bf16.msra.mxu0 %v7381_v43 }
 0xd63   :  { %4611 = vmatprep.subr.bf16.mxu0 %v7386_v11 }
 0xd66   :  { %4612 = vmatpush1.bf16.msra.mxu0 %v7384_v15 }
 0xd67   :  { %4613 = vmatprep.subr.bf16.mxu0 %v7389_v16 }
 0xd6a   :  { %4614 = vmatpush1.bf16.msra.mxu0 %v7387_v21 }
 0xd6b   :  { %5319 = vmatprep.subr.bf16.mxu0 %v7400_v8  ;;  %v7452_v8 = vld [vmem:[#allocation6 + $0x150] ss:$12 sps:$4 sm:$0xff]  }
 0xd6d   :  { %4632 = vmatmul.mubr.bf16.vlgmr.msra.gmra.mrb[16].mxu0 %v4505_v23 }
 0xd6e   :  { %5320 = vmatpush1.bf16.msra.mxu0 %v7398_v6  ;;  %v7455_v6 = vld [vmem:[#allocation6 + $0x158] ss:$12 sps:$4 sm:$0xff]  }
 0xd6f   :  { %5321 = vmatprep.subr.bf16.mxu0 %v7403_v24  ;;  %v7456_v24 = vld [vmem:[#allocation6 + $0x98] ss:$12 sps:$4 sm:$0xff]  }
 0xd72   :  { %5322 = vmatpush1.bf16.msra.mxu0 %v7401_v36  ;;  %v7459_v36 = vld [vmem:[#allocation6 + $0x16c] ss:$12 sps:$4 sm:$0xff]  }
 0xd73   :  { %5323 = vmatprep.subr.bf16.mxu0 %v7406_v9  ;;  %v7460_v9 = vld [vmem:[#allocation6 + $0x170] ss:$12 sps:$4 sm:$0xff]  }
 0xd76   :  { %5324 = vmatpush1.bf16.msra.mxu0 %v7404_v33  ;;  %v7464_v33 = vld [vmem:[#allocation6 + $0x184] ss:$12 sps:$4 sm:$0xff]  }
 0xe20   :  { %v4483_v13 = vpop.f32.mrb[12].mxu0 }
 0xe21   :  { %v6615_v26 = vpop.f32.mrb[13].mxu0  ;;  %v4484_v1 = vadd.f32 %v4483_v13, %v4400_v59  ;;  %v7430_v13 = vld [vmem:[#allocation6 + $0xe0] ss:$12 sps:$4 sm:$0xff]  }
 0xe22   :  { %v4486_v27 = vpop.f32.mrb[14].mxu0  ;;  %v7409_v26 = vld [vmem:[#allocation6 + $0x4c] ss:$12 sps:$4 sm:$0xff]  }
 0xe23   :  { %v6616_v18 = vpop.f32.mrb[15].mxu0  ;;  %v7431_v27 = vld [vmem:[#allocation6 + $0x20] ss:$12 sps:$4 sm:$0xff]   ;;  %5325 = vmatprep.subr.bf16.mxu0 %v7409_v26 }
 0xe24   :  { %v7435_v18 = vld [vmem:[#allocation6 + $0xf8] ss:$12 sps:$4 sm:$0xff]   ;;  %5326 = vmatpush1.bf16.msra.mxu0 %v7407_v22  ;;  %v4773_v22 = vld [vmem:[#allocation7 + $0x61] ss:$0 sm:$0xff] }
 0xe40   :  { %v4633_v0 = vpop.f32.mrb[16].mxu0 }
 0xe41   :  { %v4634_v55 = vadd.f32 %v4633_v0, %v4512_v29  ;;  %v4635_v7 = vpop.f32.mrb[17].mxu0  ;;  %v7412_v29 = vld [vmem:[#allocation6 + $0x64] ss:$12 sps:$4 sm:$0xff]  }
 0xe42   :  { %v4636_v31 = vadd.f32 %v4635_v7, %v4516_v37  ;;  %v4637_v32 = vpop.f32.mrb[18].mxu0  ;;  %v7436_v0 = vld [vmem:[#allocation6 + $0x38] ss:$12 sps:$4 sm:$0xff]   ;;  %5327 = vmatprep.subr.bf16.mxu0 %v7412_v29  ;;  %v7415_v7 = vld [vmem:[#allocation6 + $0x7c] ss:$12 sps:$4 sm:$0xff]  }
 0xe43   :  { %v4642_v46 = vmul.f32 %v4634_v55, %v4634_v55  ;;  %v4638_v48 = vpop.f32.mrb[19].mxu0  ;;  %v4640_v56 = vmul.f32 0.5, %v4634_v55 }
 0xe44   :  { %v4643_v39 = vmul.f32 %v4636_v31, %v4636_v31  ;;  %v4641_v30 = vmul.f32 0.5, %v4636_v31 }
 0xe45   :  { %v4644_v42 = vmul.f32 %v4642_v46, %v4634_v55  ;;  %v7413_v46 = vld [vmem:[#allocation6 + $0x78] ss:$12 sps:$4 sm:$0xff]  }
 0xe46   :  { %v4645_v12 = vmul.f32 %v4643_v39, %v4636_v31  ;;  %v7418_v39 = vld [vmem:[#allocation6 + $0x94] ss:$12 sps:$4 sm:$0xff]  }
 0xe47   :  { %v4646_v49 = vmul.f32 0.044715, %v4644_v42  ;;  %v7416_v42 = vld [vmem:[#allocation6 + $0x90] ss:$12 sps:$4 sm:$0xff]  }
 0xe48   :  { %v4647_v50 = vmul.f32 0.044715, %v4645_v12  ;;  %v7421_v12 = vld [vmem:[#allocation6 + $0xac] ss:$12 sps:$4 sm:$0xff]  }
 0xe49   :  { %v4648_v40 = vadd.f32 %v4646_v49, %v4634_v55  ;;  %v7410_v55 = vld [vmem:[#allocation6 + $0x60] ss:$12 sps:$4 sm:$0xff]   ;;  %v7419_v49 = vld [vmem:[#allocation6 + $0xa8] ss:$12 sps:$4 sm:$0xff]  }
 0xe4a   :  { %v4649_v28 = vadd.f32 %v4647_v50, %v4636_v31  ;;  %5328 = vmatpush1.bf16.msra.mxu0 %v7410_v55  ;;  %v7424_v50 = vld [vmem:[#allocation6 + $0xc4] ss:$12 sps:$4 sm:$0xff]  }
 0xe4b   :  { %v4650_v51 = vmul.f32 0.7978846, %v4648_v40  ;;  %5329 = vmatprep.subr.bf16.mxu0 %v7415_v7  ;;  %v7422_v40 = vld [vmem:[#allocation6 + $0xc0] ss:$12 sps:$4 sm:$0xff]  }
 0xe4c   :  { %v4651_v52 = vmul.f32 0.7978846, %v4649_v28 }
 0xe4d   :  { %7566 = vtanh.f32 %v4650_v51  ;;  %v4788_v51 = vld [vmem:[#allocation7 + $0x63] ss:$0 sm:$0xff] }
 0xe4e   :  { %7568 = vtanh.f32 %v4651_v52  ;;  %5330 = vmatpush1.bf16.msra.mxu0 %v7413_v46  ;;  %v7429_v52 = vld [vmem:[#allocation6 + $0xdc] ss:$12 sps:$4 sm:$0xff]  }
 0xe4f   :  { %5331 = vmatprep.subr.bf16.mxu0 %v7418_v39  ;;  %v7465_v46 = vld [vmem:[#allocation6 + $0x188] ss:$12 sps:$4 sm:$0xff]  }
 0xe50   :  { %v7468_v39 = vld [vmem:[#allocation6 + $0x19c] ss:$12 sps:$4 sm:$0xff]  }
 0xe52   :  { %5332 = vmatpush1.bf16.msra.mxu0 %v7416_v42 }
 0xe53   :  { %5333 = vmatprep.subr.bf16.mxu0 %v7421_v12  ;;  %v7466_v12 = vld [vmem:[#allocation6 + $0x198] ss:$12 sps:$4 sm:$0xff]  }
 0xe56   :  { %5334 = vmatpush1.bf16.msra.mxu0 %v7419_v49  ;;  %v7469_v49 = vld [vmem:[#allocation6 + $0x1a0] ss:$12 sps:$4 sm:$0xff]  }
 0xe57   :  { %v7567_v53 = vpop.eup %7566  ;;  %5335 = vmatprep.subr.bf16.mxu0 %v7424_v50  ;;  %v7472_v50 = vld [vmem:[#allocation6 + $0x1b4] ss:$12 sps:$4 sm:$0xff]  }
 0xe58   :  { %v7569_v54 = vpop.eup %7568  ;;  %v4654_v57 = vadd.f32 1.0, %v7567_v53 }
 0xe59   :  { %v4655_v14 = vadd.f32 1.0, %v7569_v54  ;;  %v4789_v54 = vld [vmem:[#allocation7 + $0x64] ss:$0 sm:$0xff] }
 0xe5a   :  { %v8142_v62 = vmul.f32 %v4654_v57, %v4640_v56  ;;  %5336 = vmatpush1.bf16.msra.mxu0 %v7422_v40  ;;  %v7427_v57 = vld [vmem:[#allocation6 + $0xd8] ss:$12 sps:$4 sm:$0xff]   ;;  %v7470_v40 = vld [vmem:[#allocation6 + $0x1b0] ss:$12 sps:$4 sm:$0xff]  }
 0xe5b   :  { %v4657_v63 = vmul.f32 %v4655_v14, %v4641_v30  ;;  %5337 = vmatprep.subr.bf16.mxu0 %v7429_v52  ;;  %v7434_v30 = vld [vmem:[#allocation6 + $0xf4] ss:$12 sps:$4 sm:$0xff]  }
 0xe5c   :  { %v7474_v52 = vld [vmem:[#allocation6 + $0x1c8] ss:$12 sps:$4 sm:$0xff]  }
 0xe5d   :  { %4790 = vadd.xlane.f32.xlu0 %v4657_v63  ;;  %v4658_v10 = vadd.f32 %v4657_v63, %v8142_v62 }
 0xe5e   :  { %5338 = vmatpush1.bf16.msra.mxu0 %v7427_v57  ;;  %v7484_v57 = vld [vmem:[#allocation6 + $0x1fc] ss:$12 sps:$4 sm:$0xff]  }
 0xe5f   :  { %v4659_v58 = vadd.f32 %v4658_v10, %v4484_v1  ;;  %5339 = vmatprep.subr.bf16.mxu0 %v7434_v30 }
 0xe61   :  { %4805 = vadd.xlane.f32.xlu0 %v8142_v62  ;;  %v4676_v61 = vpack.c.bf16 %v4659_v58, %v4659_v58 }
 0xe63   :  { %6634 = vmatmul.mubr.bf16.vlgmr.msra.gmra.mrb[44].mxu1 %v4676_v61 }
 0xe64   :  { %6516 = vmatpush3.bf16.msra.mxu1 %v7426_v25  ;;  %v7461_v25 = vld [vmem:[#allocation6 + $0xb0] ss:$12 sps:$4 sm:$0xff]  }
 0xe65   :  { %6517 = vmatprep.subr.bf16.mxu1 %v7430_v13 }
 0xe68   :  { %6518 = vmatpush3.bf16.msra.mxu1 %v7431_v27 }
 0xe69   :  { %6519 = vmatprep.subr.bf16.mxu1 %v7435_v18 }
 0xe6c   :  { %6520 = vmatpush3.bf16.msra.mxu1 %v7436_v0 }
 0xeea   :  { %v4791_v4 = vpop.xlane.xlu0 %4790 }
 0xeeb   :  { %v4792_v2 = vmul.f32 0.0078125, %v4791_v4 }
 0xeed   :  { %v8146_v3 = vsub.f32 %v4657_v63, %v4792_v2  ;;  %v7432_v63 = vld [vmem:[#allocation6 + $0xf0] ss:$12 sps:$4 sm:$0xff]  }
 0xeee   :  { %v4806_v37 = vpop.xlane.xlu0 %4805  ;;  %5340 = vmatpush1.bf16.msra.mxu0 %v7432_v63 }
 0xeef   :  { %v4794_v5 = vmul.f32 %v8146_v3, %v8146_v3  ;;  %v4807_v10 = vmul.f32 0.0078125, %v4806_v37  ;;  %v4774_v37 = vld [vmem:[#allocation7 + $0x62] ss:$0 sm:$0xff] }
 0xef1   :  { %4795 = vadd.xlane.f32.xlu0 %v4794_v5  ;;  %v8156_v4 = vsub.f32 %v8142_v62, %v4807_v10  ;;  %v7439_v5 = vld [vmem:[#allocation6 + $0x10c] ss:$12 sps:$4 sm:$0xff]   ;;  %v7449_v62 = vld [vmem:[#allocation6 + $0x13c] ss:$12 sps:$4 sm:$0xff]   ;;  %v4803_v10 = vld [vmem:[#allocation7 + $0x65] ss:$0 sm:$0xff] }
 0xef2   :  { %5341 = vmatprep.subr.bf16.mxu0 %v7439_v5  ;;  %v4804_v5 = vld [vmem:[#allocation7 + $0x66] ss:$0 sm:$0xff] }
 0xf36   :  { %v4760_v43 = vpop.f32.mrb[44].mxu1 }
 0xf37   :  { %v4761_v11 = vadd.f32 %v4760_v43, %v4677_v41  ;;  %v6635_v47 = vpop.f32.mrb[45].mxu1  ;;  %v7440_v41 = vld [vmem:[#allocation6 + $0x110] ss:$12 sps:$4 sm:$0xff]   ;;  %v7437_v43 = vld [vmem:[#allocation6 + $0x108] ss:$12 sps:$4 sm:$0xff]  }
 0xf38   :  { %v4763_v15 = vpop.f32.mrb[46].mxu1  ;;  %6521 = vmatprep.subr.bf16.mxu1 %v7440_v41  ;;  %5342 = vmatpush1.bf16.msra.mxu0 %v7437_v43  ;;  %v7444_v47 = vld [vmem:[#allocation6 + $0x124] ss:$12 sps:$4 sm:$0xff]   ;;  %v7490_v41 = vld [vmem:[#allocation6 + $0x228] ss:$12 sps:$4 sm:$0xff]  }
 0xf39   :  { %v6281_v16 = vmul.f32 -1.442695, %v4761_v11  ;;  %v6636_v19 = vpop.f32.mrb[47].mxu1  ;;  %v7441_v11 = vld [vmem:[#allocation6 + $0x50] ss:$12 sps:$4 sm:$0xff]   ;;  %5343 = vmatprep.subr.bf16.mxu0 %v7444_v47  ;;  %v7494_v47 = vld [vmem:[%s8264_s4 + $0x80] sm:$0xff]  }
 0xf3a   :  { %6522 = vmatpush3.bf16.msra.mxu1 %v7441_v11  ;;  %v7445_v15 = vld [vmem:[#allocation6 + $0x128] ss:$12 sps:$4 sm:$0xff]   ;;  %v7493_v43 = vld [vmem:[#allocation6 + $0x230] ss:$12 sps:$4 sm:$0xff]  }
 0xf3b   :  { %7570 = vpow2.f32 %v6281_v16  ;;  %v7442_v16 = vld [vmem:[#allocation6 + $0x120] ss:$12 sps:$4 sm:$0xff]   ;;  %v7446_v19 = vld [vmem:[#allocation6 + $0x68] ss:$12 sps:$4 sm:$0xff]   ;;  %6523 = vmatprep.subr.bf16.mxu1 %v7445_v15 }
 0xf3c   :  { %5344 = vmatpush1.bf16.msra.mxu0 %v7442_v16  ;;  %v7495_v15 = vld [vmem:[%s8264_s4 + $0x40] sm:$0xff]  }
 0xf3d   :  { %5345 = vmatprep.subr.bf16.mxu0 %v7449_v62  ;;  %v7496_v16 = vld [vmem:[%s8264_s4] sm:$0xff]   ;;  %v7498_v62 = vld [vmem:[%s8264_s4 + $0x48] sm:$0xff]  }
 0xf3e   :  { %6524 = vmatpush3.bf16.msra.mxu1 %v7446_v19  ;;  %v7497_v19 = vld [vmem:[%s8264_s4 + $0x88] sm:$0xff]  }
 0xf45   :  { %v7571_v20 = vpop.eup %7570 }
 0xf46   :  { %v4769_v21 = vadd.f32 1.0, %v7571_v20  ;;  %v7450_v20 = vld [vmem:[#allocation6 + $0x140] ss:$12 sps:$4 sm:$0xff]  }
 0xf47   :  { %6525 = vmatprep.subr.bf16.mxu1 %v7450_v20  ;;  %v7499_v20 = vld [vmem:[%s8264_s4 + $0x8] sm:$0xff]  }
 0xf48   :  { %7572 = vrcp.f32 %v4769_v21  ;;  %v7447_v21 = vld [vmem:[#allocation6 + $0x138] ss:$12 sps:$4 sm:$0xff]  }
 0xf49   :  { %5346 = vmatpush1.bf16.msra.mxu0 %v7447_v21  ;;  %v7500_v21 = vld [vmem:[%s8264_s4 + $0x90] sm:$0xff]  }
 0xf52   :  { %v7573_v45 = vpop.eup %7572 }
 0xf53   :  { %v8150_v23 = vmul.f32 %v7573_v45, %v4659_v58  ;;  %v7451_v45 = vld [vmem:[#allocation6 + $0x80] ss:$12 sps:$4 sm:$0xff]  }
 0xf54   :  { %6526 = vmatpush3.bf16.msra.mxu1 %v7451_v45  ;;  %v7501_v45 = vld [vmem:[%s8264_s4 + $0x50] sm:$0xff]  }
 0xf55   :  { %4775 = vadd.xlane.f32.xlu1 %v8150_v23  ;;  %6527 = vmatprep.subr.bf16.mxu1 %v7455_v6  ;;  %v7503_v6 = vld [vmem:[%s8264_s4 + $0x98] sm:$0xff]  }
 0xf58   :  { %6528 = vmatpush3.bf16.msra.mxu1 %v7456_v24  ;;  %v7505_v24 = vld [vmem:[%s8264_s4 + $0x18] sm:$0xff]  }
 0xf59   :  { %6529 = vmatprep.subr.bf16.mxu1 %v7460_v9  ;;  %v7507_v9 = vld [vmem:[%s8264_s4 + $0x60] sm:$0xff]  }
 0xf5c   :  { %6530 = vmatpush3.bf16.msra.mxu1 %v7461_v25  ;;  %v7510_v25 = vld [vmem:[%s8264_s4 + $0x68] sm:$0xff]  }
 0xf5d   :  { %6637 = vmatprep.subr.bf16.mxu1 %v7697_v60 }
 0xf7e   :  { %v4796_v31 = vpop.xlane.xlu0 %4795 }
 0xf7f   :  { %v4797_v32 = vmul.f32 0.0078125, %v4796_v31 }
 0xf81   :  { %v4798_v48 = vadd.f32 1e-05, %v4797_v32  ;;  %v7462_v32 = vld [vmem:[#allocation6 + $0x180] ss:$12 sps:$4 sm:$0xff]  }
 0xf83   :  { %7574 = vrsqrt.f32 %v4798_v48 }
 0xf8d   :  { %v7575_v28 = vpop.eup %7574 }
 0xf8e   :  { %v4800_v53 = vmul.f32 %v7575_v28, %v8146_v3  ;;  %v4809_v3 = vmul.f32 %v8156_v4, %v8156_v4  ;;  %v7473_v28 = vld [vmem:[#allocation6 + $0x1b8] ss:$12 sps:$4 sm:$0xff]  }
 0xf90   :  { %v4801_v56 = vmul.f32 %v4800_v53, %v4788_v51  ;;  %v7476_v51 = vld [vmem:[#allocation6 + $0x1cc] ss:$12 sps:$4 sm:$0xff]   ;;  %v7477_v53 = vld [vmem:[#allocation6 + $0x1d0] ss:$12 sps:$4 sm:$0xff]  }
 0xf92   :  { %v4802_v14 = vadd.f32 %v4801_v56, %v4789_v54  ;;  %v7478_v54 = vld [vmem:[#allocation6 + $0x1e0] ss:$12 sps:$4 sm:$0xff]   ;;  %v7481_v56 = vld [vmem:[#allocation6 + $0x1e8] ss:$12 sps:$4 sm:$0xff]  }
 0xf94   :  { %v4915_v59 = vpack.c.bf16 %v4802_v14, %v4802_v14  ;;  %v7482_v14 = vld [vmem:[#allocation6 + $0x1f8] ss:$12 sps:$4 sm:$0xff]  }
 0xf96   :  { %5351 = vmatprep.mubr.bf16.mxu0 %v4915_v59  ;;  %5433 = vmatprep.mubr.bf16.mxu1 %v4915_v59  ;;  %v7485_v59 = vld [vmem:[#allocation6 + $0x200] ss:$12 sps:$4 sm:$0xff]  }
 0xfe2   :  { %v4776_v1 = vpop.xlane.xlu1 %4775 }
 0xfe3   :  { %v4777_v58 = vmul.f32 0.0078125, %v4776_v1  ;;  %v7488_v1 = vld [vmem:[#allocation6 + $0x214] ss:$12 sps:$4 sm:$0xff]  }
 0xfe5   :  { %v4778_v61 = vsub.f32 %v8150_v23, %v4777_v58  ;;  %v7454_v23 = vld [vmem:[#allocation6 + $0x154] ss:$12 sps:$4 sm:$0xff]   ;;  %v7486_v58 = vld [vmem:[#allocation6 + $0x210] ss:$12 sps:$4 sm:$0xff]  }
 0xfe6   :  { %5347 = vmatprep.subr.bf16.mxu0 %v7454_v23  ;;  %v7502_v23 = vld [vmem:[%s8264_s4 + $0x10] sm:$0xff]  }
 0xfe7   :  { %v4779_v2 = vmul.f32 %v4778_v61, %v4778_v61  ;;  %5348 = vmatpush1.bf16.msra.mxu0 %v7452_v8  ;;  %v7504_v8 = vld [vmem:[%s8264_s4 + $0x58] sm:$0xff]  }
 0xfe8   :  { %5349 = vmatprep.subr.bf16.mxu0 %v7459_v36  ;;  %v7506_v36 = vld [vmem:[%s8264_s4 + $0xa0] sm:$0xff]  }
 0xfe9   :  { %4780 = vadd.xlane.f32.xlu0 %v4779_v2  ;;  %v7492_v2 = vld [vmem:[#allocation6 + $0x22c] ss:$12 sps:$4 sm:$0xff]  }
 0xfeb   :  { %5350 = vmatpush1.bf16.msra.mxu0 %v7457_v17  ;;  %v7508_v17 = vld [vmem:[%s8264_s4 + $0x20] sm:$0xff]  }
 0xfec   :  { %5360 = vmatprep.subr.bf16.mxu0 %v7464_v33  ;;  %v7509_v33 = vld [vmem:[%s8264_s4 + $0xa8] sm:$0xff]  }
 0xfed   :  { %4810 = vadd.xlane.f32.xlu0 %v4809_v3 }
0x1076   :  { %v4781_v13 = vpop.xlane.xlu0 %4780 }
0x1077   :  { %v4782_v26 = vmul.f32 0.0078125, %v4781_v13  ;;  %v7511_v13 = vld [vmem:[%s8264_s4 + $0x28] sm:$0xff]  }
0x1079   :  { %v4783_v27 = vadd.f32 1e-05, %v4782_v26  ;;  %v7513_v26 = vld [vmem:[%s8264_s4 + $0x70] sm:$0xff]  }
0x107a   :  { %v4811_v0 = vpop.xlane.xlu0 %4810 }
0x107b   :  { %7576 = vrsqrt.f32 %v4783_v27  ;;  %v4812_v31 = vmul.f32 0.0078125, %v4811_v0  ;;  %v7512_v27 = vld [vmem:[%s8264_s4 + $0xb0] sm:$0xff]  }
0x107d   :  { %v4813_v42 = vadd.f32 1e-05, %v4812_v31 }
0x107f   :  { %7578 = vrsqrt.f32 %v4813_v42 }
0x1085   :  { %v7577_v18 = vpop.eup %7576 }
0x1086   :  { %v4785_v29 = vmul.f32 %v7577_v18, %v4778_v61  ;;  %v7489_v61 = vld [vmem:[#allocation6 + $0x218] ss:$12 sps:$4 sm:$0xff]   ;;  %v7514_v18 = vld [vmem:[%s8264_s4 + $0x30] sm:$0xff]  }
0x1088   :  { %v4786_v55 = vmul.f32 %v4785_v29, %v4773_v22  ;;  %v7516_v22 = vld [vmem:[%s8264_s4 + $0x78] sm:$0xff]  }
0x1089   :  { %v7579_v30 = vpop.eup %7578  ;;  %v7515_v29 = vld [vmem:[%s8264_s4 + $0xb8] sm:$0xff]  }
0x108a   :  { %v4787_v7 = vadd.f32 %v4786_v55, %v4774_v37  ;;  %v4815_v63 = vmul.f32 %v7579_v30, %v8156_v4  ;;  %v7517_v37 = vld [vmem:[%s8264_s4 + $0x38] sm:$0xff]  }
0x108c   :  { %v4914_v48 = vpack.c.bf16 %v4787_v7, %v4787_v7  ;;  %v4816_v3 = vmul.f32 %v4815_v63, %v4803_v10 }
0x108e   :  { %5352 = vmatmul.mubr.bf16.vlgmr.msra.gmra.mrb[20].mxu0 %v4914_v48  ;;  %5434 = vmatmul.mubr.bf16.vlgmr.msra.gmra.mrb[48].mxu1 %v4914_v48  ;;  %v4817_v4 = vadd.f32 %v4816_v3, %v4804_v5 }
0x108f   :  { %5361 = vmatpush1.bf16.msra.mxu0 %v7462_v32  ;;  %6638 = vmatpush3.bf16.msra.mxu1 %v7465_v46  ;;  %v4918_v46 = vld [vmem:[#allocation7 + $0x67] ss:$8 sm:$0x7] }
0x1090   :  { %5362 = vmatprep.subr.bf16.mxu0 %v7468_v39  ;;  %6639 = vmatprep.subr.bf16.mxu1 %v7697_v60  ;;  %v4916_v11 = vpack.c.bf16 %v4817_v4, %v4817_v4  ;;  %v4931_v48 = vrot.slane %v4918_v46, %v7896_v38  ;;  %v4923_v39 = vrot.slane %v4918_v46, %v7892_v35 }
0x1091   :  { %5392 = vmatprep.mubr.bf16.mxu0 %v7699_v44  ;;  %6653 = vmatprep.mubr.msk.bf16.mxu1 %vm7698_vm0, %v7697_v60  ;;  %v7480_v44 = vld [vmem:[#allocation6 + $0x1e4] ss:$12 sps:$4 sm:$0xff]  }
0x1093   :  { %5363 = vmatpush1.bf16.msra.mxu0 %v7466_v12  ;;  %6640 = vmatpush3.bf16.msra.mxu1 %v7469_v49 }
0x1094   :  { %5364 = vmatprep.subr.bf16.mxu0 %v7472_v50  ;;  %6641 = vmatprep.subr.bf16.mxu1 %v7697_v60 }
0x1097   :  { %5365 = vmatpush1.bf16.msra.mxu0 %v7470_v40  ;;  %6642 = vmatpush3.bf16.msra.mxu1 %v7473_v28 }
0x1098   :  { %5366 = vmatprep.subr.bf16.mxu0 %v7476_v51  ;;  %6643 = vmatprep.subr.bf16.mxu1 %v7697_v60 }
0x109b   :  { %5367 = vmatpush1.bf16.msra.mxu0 %v7474_v52  ;;  %6644 = vmatpush3.bf16.msra.mxu1 %v7477_v53 }
0x109c   :  { %5368 = vmatprep.subr.bf16.mxu0 %v7480_v44  ;;  %6645 = vmatprep.subr.bf16.mxu1 %v7697_v60 }
0x109f   :  { %5369 = vmatpush1.bf16.msra.mxu0 %v7478_v54  ;;  %6646 = vmatpush3.bf16.msra.mxu1 %v7481_v56 }
0x10a0   :  { %5370 = vmatprep.subr.bf16.mxu0 %v7484_v57  ;;  %6647 = vmatprep.subr.bf16.mxu1 %v7697_v60 }
0x10a3   :  { %5371 = vmatpush1.bf16.msra.mxu0 %v7482_v14  ;;  %6648 = vmatpush3.bf16.msra.mxu1 %v7485_v59 }
0x10a4   :  { %5372 = vmatprep.subr.bf16.mxu0 %v7488_v1  ;;  %6649 = vmatprep.subr.bf16.mxu1 %v7697_v60 }
0x10a7   :  { %5373 = vmatpush1.bf16.msra.mxu0 %v7486_v58  ;;  %6650 = vmatpush3.bf16.msra.mxu1 %v7489_v61 }
0x10a8   :  { %5374 = vmatprep.subr.bf16.mxu0 %v7492_v2  ;;  %6651 = vmatprep.subr.bf16.mxu1 %v7697_v60 }
0x10ab   :  { %5375 = vmatpush1.bf16.msra.mxu0 %v7490_v41  ;;  %6652 = vmatpush3.bf16.msra.mxu1 %v7493_v43 }
0x10ac   :  { %6657 = vmatprep.subr.bf16.mxu0 %v7697_v60  ;;  %6546 = vmatprep.subr.bf16.mxu1 %v7495_v15 }
0x10ae   :  { %5393 = vmatmul.mubr.bf16.vlgmr.msra.gmra.mrb[20].mxu0 %v4916_v11  ;;  %6654 = vmatmul.mubr.bf16.vlgmr.msra.gmra.mrb[52].mxu1 %v4916_v11 }
0x10af   :  { %6673 = vmatprep.mubr.msk.bf16.mxu0 %vm7698_vm0, %v7697_v60  ;;  %6658 = vmatpush3.bf16.msra.mxu0 %v7494_v47 }
0x10b0   :  { %6659 = vmatprep.subr.bf16.mxu0 %v7697_v60  ;;  %6547 = vmatpush3.bf16.msra.mxu1 %v7496_v16 }
0x10b1   :  { %6548 = vmatprep.subr.bf16.mxu1 %v7498_v62 }
0x10b3   :  { %6660 = vmatpush3.bf16.msra.mxu0 %v7497_v19 }
0x10b4   :  { %6661 = vmatprep.subr.bf16.mxu0 %v7697_v60  ;;  %6549 = vmatpush3.bf16.msra.mxu1 %v7499_v20 }
0x10b5   :  { %6550 = vmatprep.subr.bf16.mxu1 %v7501_v45 }
0x10b7   :  { %6662 = vmatpush3.bf16.msra.mxu0 %v7500_v21 }
0x10b8   :  { %6663 = vmatprep.subr.bf16.mxu0 %v7697_v60  ;;  %6551 = vmatpush3.bf16.msra.mxu1 %v7502_v23 }
0x10b9   :  { %6552 = vmatprep.subr.bf16.mxu1 %v7504_v8 }
0x10bb   :  { %6664 = vmatpush3.bf16.msra.mxu0 %v7503_v6 }
0x10bc   :  { %6665 = vmatprep.subr.bf16.mxu0 %v7697_v60  ;;  %6553 = vmatpush3.bf16.msra.mxu1 %v7505_v24 }
0x10bd   :  { %6554 = vmatprep.subr.bf16.mxu1 %v7507_v9 }
0x10bf   :  { %6666 = vmatpush3.bf16.msra.mxu0 %v7506_v36 }
0x10c0   :  { %6667 = vmatprep.subr.bf16.mxu0 %v7697_v60  ;;  %6555 = vmatpush3.bf16.msra.mxu1 %v7508_v17 }
0x10c1   :  { %6556 = vmatprep.subr.bf16.mxu1 %v7510_v25  ;;  %v5559_v25 = vld [vmem:[#allocation7 + $0x90] ss:$0 sm:$0xff] }
0x10c3   :  { %6668 = vmatpush3.bf16.msra.mxu0 %v7509_v33 }
0x10c4   :  { %6669 = vmatprep.subr.bf16.mxu0 %v7697_v60  ;;  %6557 = vmatpush3.bf16.msra.mxu1 %v7511_v13 }
0x10c5   :  { %6558 = vmatprep.subr.bf16.mxu1 %v7513_v26 }
0x10c7   :  { %6670 = vmatpush3.bf16.msra.mxu0 %v7512_v27 }
0x10c8   :  { %6671 = vmatprep.subr.bf16.mxu0 %v7697_v60  ;;  %6559 = vmatpush3.bf16.msra.mxu1 %v7514_v18  ;;  %v4927_v60 = vrot.slane %v4918_v46, %v7890_v34 }
0x10c9   :  { %6560 = vmatprep.subr.bf16.mxu1 %v7516_v22 }
0x10cb   :  { %6672 = vmatpush3.bf16.msra.mxu0 %v7515_v29 }
0x10cc   :  { %6561 = vmatpush3.bf16.msra.mxu1 %v7517_v37 }
0x1161   :  { %v6531_v0 = vpop.f32.mrb[48].mxu1 }
0x1162   :  { %v6532_v55 = vpop.f32.mrb[49].mxu1 }
0x1163   :  { %v6533_v7 = vadd.f32 %v6532_v55, %v6531_v0  ;;  %v6534_v31 = vpop.f32.mrb[50].mxu1 }
0x1164   :  { %v6535_v32 = vpop.f32.mrb[51].mxu1 }
0x1165   :  { %v5436_v42 = vadd.f32 %v6533_v7, %v4931_v48 }
0x1181   :  { %v5394_v12 = vpop.f32.mrb[20].mxu0  ;;  %v5475_v49 = vpop.f32.mrb[52].mxu1 }
0x1182   :  { %v6677_v50 = vadd.f32 %v5394_v12, %v4923_v39  ;;  %v5476_v40 = vadd.f32 %v5475_v49, %v5436_v42  ;;  %v5396_v28 = vpop.f32.mrb[21].mxu0  ;;  %v6655_v51 = vpop.f32.mrb[53].mxu1 }
0x1183   :  { %v6678_v52 = vadd.f32 %v5396_v28, %v4927_v60  ;;  %v5398_v53 = vpop.f32.mrb[22].mxu0  ;;  %v5478_v44 = vpop.f32.mrb[54].mxu1 }
0x1184   :  { %v5484_v54 = vmul.f32 %v6677_v50, %v6677_v50  ;;  %v5486_v56 = vmul.f32 %v5476_v40, %v5476_v40  ;;  %v5399_v57 = vpop.f32.mrb[23].mxu0  ;;  %v6656_v30 = vpop.f32.mrb[55].mxu1  ;;  %v5481_v47 = vmul.f32 0.5, %v6677_v50  ;;  %v5483_v15 = vmul.f32 0.5, %v5476_v40 }
0x1185   :  { %v5485_v14 = vmul.f32 %v6678_v52, %v6678_v52  ;;  %v5482_v19 = vmul.f32 0.5, %v6678_v52 }
0x1186   :  { %v5487_v38 = vmul.f32 %v6677_v50, %v5484_v54  ;;  %v5489_v59 = vmul.f32 %v5486_v56, %v5476_v40 }
0x1187   :  { %v5488_v35 = vmul.f32 %v6678_v52, %v5485_v14 }
0x1188   :  { %v5490_v63 = vmul.f32 0.044715, %v5487_v38  ;;  %v5492_v34 = vmul.f32 0.044715, %v5489_v59 }
0x1189   :  { %v5491_v1 = vmul.f32 0.044715, %v5488_v35 }
0x118a   :  { %v5493_v10 = vadd.f32 %v6677_v50, %v5490_v63  ;;  %v5495_v58 = vadd.f32 %v5492_v34, %v5476_v40 }
0x118b   :  { %v5494_v61 = vadd.f32 %v6678_v52, %v5491_v1 }
0x118c   :  { %v5496_v2 = vmul.f32 0.7978846, %v5493_v10  ;;  %v5498_v3 = vmul.f32 0.7978846, %v5495_v58 }
0x118d   :  { %v5497_v5 = vmul.f32 0.7978846, %v5494_v61 }
0x118e   :  { %7580 = vtanh.f32 %v5496_v2 }
0x118f   :  { %7582 = vtanh.f32 %v5498_v3 }
0x1190   :  { %7584 = vtanh.f32 %v5497_v5 }
0x1198   :  { %v7581_v41 = vpop.eup %7580 }
0x1199   :  { %v7583_v43 = vpop.eup %7582  ;;  %v5502_v4 = vadd.f32 1.0, %v7581_v41 }
0x119a   :  { %v7585_v11 = vpop.eup %7584  ;;  %v5504_v16 = vadd.f32 1.0, %v7583_v43 }
0x119b   :  { %v5503_v62 = vadd.f32 1.0, %v7585_v11  ;;  %v5505_v21 = vmul.f32 %v5502_v4, %v5481_v47 }
0x119c   :  { %v5507_v20 = vmul.f32 %v5504_v16, %v5483_v15 }
0x119d   :  { %v5506_v45 = vmul.f32 %v5503_v62, %v5482_v19  ;;  %v5556_v8 = vpack.c.bf16 %v5505_v21, %v5505_v21 }
0x119e   :  { %v5558_v23 = vpack.c.bf16 %v5507_v20, %v5507_v20 }
0x119f   :  { %v5557_v6 = vpack.c.bf16 %v5506_v45, %v5506_v45 }
0x11a0   :  { %6674 = vmatmul.mubr.bf16.vlgmr.msra.gmra.mrb[24].mxu0 %v5558_v23 }
0x11a1   :  { %5736 = vmatprep.mubr.bf16.mxu1 %v5557_v6 }
0x11a2   :  { %5737 = vmatmul.mubr.bf16.vlgmr.msra.gmra.mrb[56].mxu1 %v5556_v8 }
0x1273   :  { %v5778_v24 = vpop.f32.mrb[24].mxu0 }
0x1274   :  { %v6675_v36 = vpop.f32.mrb[25].mxu0 }
0x1275   :  { %v6562_v9 = vpop.f32.mrb[56].mxu1  ;;  %v5781_v17 = vpop.f32.mrb[26].mxu0 }
0x1276   :  { %v6563_v33 = vpop.f32.mrb[57].mxu1  ;;  %v6676_v13 = vpop.f32.mrb[27].mxu0 }
0x1277   :  { %v6564_v26 = vadd.f32 %v6563_v33, %v6562_v9  ;;  %v6565_v27 = vpop.f32.mrb[58].mxu1 }
0x1278   :  { %v6566_v18 = vpop.f32.mrb[59].mxu1 }
0x1279   :  { %v5739_v22 = vadd.f32 %v6564_v26, %v5559_v25 }
0x127b   :  { %v5779_v29 = vadd.f32 %v5778_v24, %v5739_v22 }
0x127d   :  { %5785 = vst.msk [vmem:[%s8266_s6] sm:$0xff] %vm5784_vm1, %v5779_v29 }
0x127e   :  { %5790 = vsyncpa [#allocation3], 1 }
0x127f   :  { %5791 = vsyncpa [#allocation5], 1 }
0x1280   :  { %5792 = vsyncpa [#allocation8], 1 }

</bundles_post_ra>
